<compile_context>
chip_gen: v5e
topology: v5e:2x2
jax: 0.10.0
libtpu: 0.0.40
codegen_flags: <defaults>
</compile_context>

<pallas_src>
import functools

import jax
import jax.numpy as jnp
from jax import lax
from jax.experimental import pallas as pl
from jax.experimental.pallas import tpu as pltpu


def _hgcn_fused_kernel(seq_ref, w_ref, adj_ref, b_ref, a_ref,
                       aw_ref, ab_ref, aq_ref,
                       out_ref,
                       acc_ref, h_ref, x_ref, sc_ref):
    """Fused HGCN forward.

    grid = (P, N // TM, N // TK):
      p : meta-path          (arbitrary -- h/x/score scratch carried across it)
      i : node row tile      (arbitrary -- score scratch carried across it)
      k : contraction tile   (arbitrary, innermost reduction)
    """
    p = pl.program_id(0)
    i = pl.program_id(1)
    k = pl.program_id(2)
    n_i = pl.num_programs(1)
    n_k = pl.num_programs(2)

    n_paths = sc_ref.shape[0]          # static P
    n_nodes = h_ref.shape[0]           # static N
    tm = acc_ref.shape[0]
    tk = adj_ref.shape[2]
    n_row_tiles = n_nodes // tm

    # ---- global init: zero the per-path attention-score accumulators --------
    @pl.when((p == 0) & (i == 0) & (k == 0))
    def _():
        sc_ref[...] = jnp.zeros_like(sc_ref)

    k_start = pl.multiple_of(k * tk, tk)

    # ---- incremental h_p: compute the k-th (tk, F) block of seq @ W_p just
    # ---- before it is first consumed (overlaps with the first adj DMAs). ----
    @pl.when(i == 0)
    def _():
        h_blk = jnp.dot(seq_ref[pl.ds(k_start, tk), :].astype(jnp.bfloat16),
                        w_ref[0], preferred_element_type=jnp.float32)
        h_ref[pl.ds(k_start, tk), :] = h_blk.astype(h_ref.dtype)

    # ---- tiled adj @ h accumulation over k; adj streamed f32 from HBM and ----
    # ---- cast to bf16 in-register (free VPU work under MXU slack).        ----
    @pl.when(k == 0)
    def _():
        acc_ref[...] = jnp.zeros_like(acc_ref)

    acc_ref[...] += jnp.dot(adj_ref[0].astype(jnp.bfloat16),
                            h_ref[pl.ds(k_start, tk), :],
                            preferred_element_type=jnp.float32)

    # ---- k == last: bias + PReLU, stash x tile (bf16), accumulate score ------
    @pl.when(k == n_k - 1)
    def _():
        m = acc_ref[...] + b_ref[0]                       # (TM, F) f32
        alpha = a_ref[p]                                  # scalar from SMEM
        x_tile = jnp.where(m >= 0.0, m, alpha * m)        # PReLU, f32
        row0 = pl.multiple_of(p * n_nodes + i * tm, tm)
        x_ref[pl.ds(row0, tm), :] = x_tile.astype(x_ref.dtype)

        h_att = jnp.tanh(
            jnp.dot(x_tile.astype(jnp.bfloat16), aw_ref[...],
                    preferred_element_type=jnp.float32)
            + ab_ref[...].astype(jnp.float32))                       # (TM, H)
        s = jnp.sum(h_att * aq_ref[...].astype(jnp.float32),
                    axis=-1, keepdims=True)                          # (TM, 1)
        sc_ref[p] = sc_ref[p] + jnp.sum(s, axis=0, keepdims=True)    # (1, 1)

    # ---- final grid step: softmax over paths + tiled weighted sum ------------
    @pl.when((p == n_paths - 1) & (i == n_i - 1) & (k == n_k - 1))
    def _():
        inv_n = 1.0 / float(n_nodes)                      # mean over N
        scores = [sc_ref[q] * inv_n for q in range(n_paths)]   # P x (1, 1)
        m_s = scores[0]
        for q in range(1, n_paths):
            m_s = jnp.maximum(m_s, scores[q])
        exps = [jnp.exp(s - m_s) for s in scores]
        denom = exps[0]
        for q in range(1, n_paths):
            denom = denom + exps[q]
        inv_denom = pl.reciprocal(denom, approx=True)     # EUP slot, ~free
        weights = [e * inv_denom for e in exps]           # P x (1, 1)

        def body(t, carry):
            acc = None
            for q in range(n_paths):
                start = pl.multiple_of(q * n_nodes + t * tm, tm)
                contrib = weights[q] * \
                    x_ref[pl.ds(start, tm), :].astype(jnp.float32)
                acc = contrib if acc is None else acc + contrib
            out0 = pl.multiple_of(t * tm, tm)
            out_ref[pl.ds(out0, tm), :] = acc.astype(out_ref.dtype)
            return carry

        lax.fori_loop(0, n_row_tiles, body, 0)


def _vmem_budget_bytes(P, N, in_ft, out_ft, hid_ft, tm, tk):
    """Working-set estimate for the fused kernel (bytes)."""
    seq_b = N * in_ft * 4                         # resident f32 seq
    w_b = 2 * in_ft * out_ft * 2                  # bf16 W_p, double-buffered
    adj_b = 2 * tm * tk * 4                       # f32 adj tile, double-buffered
    bias_b = 2 * out_ft * 4
    att_b = (out_ft * hid_ft + 2 * hid_ft) * 2    # bf16 attention weights
    out_b = N * out_ft * 4                        # resident output block
    acc_b = tm * out_ft * 4                       # f32 accumulator scratch
    h_b = N * out_ft * 2                          # bf16 h scratch
    x_b = P * N * out_ft * 2                      # bf16 per-path outputs
    return seq_b + w_b + adj_b + bias_b + att_b + out_b + acc_b + h_b + x_b


def hgcn_forward(seq, adjs, params, *, tile_m=256, tile_k=512):
    P, N, _ = adjs.shape
    in_ft = seq.shape[1]
    out_ft = params["gcn_w"].shape[-1]
    hid_ft = params["att_w"].shape[-1]

    tm = min(tile_m, N)
    tk = min(tile_k, N)
    if N % tm or N % tk:
        raise ValueError("N must be divisible by the row/contraction tile size")

    # Only small, invariant operands are pre-cast (tiny, one-time).  The
    # dominant HBM stream (adj) is read as f32 and cast inside the kernel.
    gcn_w_bf16 = params["gcn_w"].astype(jnp.bfloat16)
    att_w_bf16 = params["att_w"].astype(jnp.bfloat16)
    att_b_bf16 = params["att_b"].astype(jnp.bfloat16)
    att_q_bf16 = params["att_q"].astype(jnp.bfloat16)

    # Per-problem VMEM budget with headroom, capped under v7x's 64 MiB / TC.
    vmem_need = _vmem_budget_bytes(P, N, in_ft, out_ft, hid_ft, tm, tk)
    vmem_limit = int(min(max(1.4 * vmem_need + (8 << 20), 32 << 20), 56 << 20))

    # NOTE: the full (P*N, out_ft) bf16 x scratch is held in VMEM; for very
    # large N spill x to HBM and add a second weighted-sum pass.
    out = pl.pallas_call(
        _hgcn_fused_kernel,
        out_shape=jax.ShapeDtypeStruct((N, out_ft), jnp.float32),
        grid=(P, N // tm, N // tk),
        in_specs=[
            pl.BlockSpec((N, in_ft), lambda p, i, k: (0, 0)),             # seq (f32)
            pl.BlockSpec((1, in_ft, out_ft), lambda p, i, k: (p, 0, 0)),  # W_p (bf16)
            pl.BlockSpec((1, tm, tk), lambda p, i, k: (p, i, k)),         # adj tile (f32)
            pl.BlockSpec((1, 1, out_ft), lambda p, i, k: (p, 0, 0)),      # bias_p (f32)
            pl.BlockSpec(memory_space=pltpu.MemorySpace.SMEM),            # prelu alpha (P,)
            pl.BlockSpec((out_ft, hid_ft), lambda p, i, k: (0, 0)),       # att_w (bf16)
            pl.BlockSpec((1, hid_ft), lambda p, i, k: (0, 0)),            # att_b (bf16)
            pl.BlockSpec((1, hid_ft), lambda p, i, k: (0, 0)),            # att_q (bf16)
        ],
        out_specs=pl.BlockSpec((N, out_ft), lambda p, i, k: (0, 0)),
        scratch_shapes=[
            pltpu.VMEM((tm, out_ft), jnp.float32),       # adj-matmul accumulator
            pltpu.VMEM((N, out_ft), jnp.bfloat16),       # h_p = seq @ W_p
            pltpu.VMEM((P * N, out_ft), jnp.bfloat16),   # all per-path GCN outputs
            pltpu.VMEM((P, 1, 1), jnp.float32),          # per-path score sums
        ],
        compiler_params=pltpu.CompilerParams(
            # TODO(synk): v7x megacore -- split the row-tile axis across the 2
            # TensorCores with per-core partial scores + a small reduction
            # pass; as written all axes must stay "arbitrary" because the
            # sc/h/x scratches carry state across them.
            dimension_semantics=("arbitrary", "arbitrary", "arbitrary"),
            vmem_limit_bytes=vmem_limit,
        ),
    )(seq, gcn_w_bf16, adjs, params["gcn_b"], params["prelu_a"],
      att_w_bf16, att_b_bf16, att_q_bf16)

    return out[None]                                     # torch.unsqueeze(out, 0)


def hgcn_reference(seq, adjs, params):
    # Pure-JAX f32 reference mirroring the PyTorch forward, for verification.
    P, N, _ = adjs.shape
    xs = []
    for p in range(P):
        h = seq @ params["gcn_w"][p]
        m = adjs[p] @ h + params["gcn_b"][p, 0]
        a = params["prelu_a"][p]
        xs.append(jnp.where(m >= 0.0, m, a * m))
    x = jnp.stack(xs, axis=0)                            # (P, N, F) == cat(dim=0)
    F_ = x.shape[-1]
    flat = x.reshape(P * N, F_)
    h = jnp.tanh(flat @ params["att_w"] + params["att_b"])
    s = (h @ params["att_q"].T).reshape(P, N)
    att = jax.nn.softmax(jnp.mean(s, axis=1, keepdims=True), axis=0)  # (P, 1)
    out = jnp.sum(x * att[:, :, None], axis=0)
    return out[None]


def make_params(key, P, in_ft, out_ft, hid_ft):
    ks = jax.random.split(key, 5)
    return {
        "gcn_w": 0.1 * jax.random.normal(ks[0], (P, in_ft, out_ft), jnp.float32),
        "gcn_b": 0.01 * jax.random.normal(ks[1], (P, 1, out_ft), jnp.float32),
        "prelu_a": jnp.full((P,), 0.25, jnp.float32),     # nn.PReLU() default
        "att_w": 0.1 * jax.random.normal(ks[2], (out_ft, hid_ft), jnp.float32),
        "att_b": 0.1 * jax.random.normal(ks[3], (1, hid_ft), jnp.float32),
        "att_q": 0.1 * jax.random.normal(ks[4], (1, hid_ft), jnp.float32),
    }


if __name__ == "__main__":
    # Small, lane-dense demo shapes.  tile_m=tile_k=256 with N=512 exercises
    # multiple row tiles AND multiple contraction tiles (grid = (3, 2, 2)).
    P, N, in_ft, out_ft, hid_ft = 3, 512, 128, 128, 128

    key = jax.random.PRNGKey(0)
    k_seq, k_adj, k_par = jax.random.split(key, 3)

    seq = jax.random.normal(k_seq, (N, in_ft), jnp.float32)
    # random row-normalized dense adjacencies (one per meta-path)
    raw = jax.random.uniform(k_adj, (P, N, N), jnp.float32)
    adjs = raw / jnp.sum(raw, axis=-1, keepdims=True)

    params = make_params(k_par, P, in_ft, out_ft, hid_ft)

    fwd = jax.jit(functools.partial(hgcn_forward, tile_m=256, tile_k=256))
    out = fwd(seq, adjs, params)
    out = jax.block_until_ready(out)

    ref = hgcn_reference(seq, adjs, params)
    assert out.shape == (1, N, out_ft), out.shape
    max_err = float(jnp.max(jnp.abs(out - ref)))
    # bf16 MXU inputs + bf16 x scratch (f32 accumulation) -> relaxed tolerance.
    assert jnp.allclose(out, ref, atol=3e-2, rtol=3e-2), max_err
    print("KERNEL_OK")
</pallas_src>

<mosaic_0001>
module attributes {stable_mosaic.version = 11 : i64} {
  func.func @_hgcn_fused_kernel(%arg0: i32, %arg1: i32, %arg2: i32, %arg3: memref<512x128xf32, #tpu.memory_space<vmem>>, %arg4: memref<1x128x128xbf16, #tpu.memory_space<vmem>>, %arg5: memref<1x256x256xf32, #tpu.memory_space<vmem>>, %arg6: memref<1x1x128xf32, #tpu.memory_space<vmem>>, %arg7: memref<3xf32, #tpu.memory_space<smem>>, %arg8: memref<128x128xbf16, #tpu.memory_space<vmem>>, %arg9: memref<1x128xbf16, #tpu.memory_space<vmem>>, %arg10: memref<1x128xbf16, #tpu.memory_space<vmem>>, %arg11: memref<512x128xf32, #tpu.memory_space<vmem>>, %arg12: memref<256x128xf32, #tpu.memory_space<vmem>>, %arg13: memref<512x128xbf16, #tpu.memory_space<vmem>>, %arg14: memref<1536x128xbf16, #tpu.memory_space<vmem>>, %arg15: memref<3x1x1xf32, #tpu.memory_space<vmem>>) attributes {dimension_semantics = [#tpu.dimension_semantics<arbitrary>, #tpu.dimension_semantics<arbitrary>, #tpu.dimension_semantics<arbitrary>], iteration_bounds = array<i64: 3, 2, 2>, scalar_prefetch = 0 : i64, scratch_operands = 4 : i64, tpu.core_type = #tpu.core_type<tc>, window_params = [{pipeline_mode = #tpu.pipeline_mode<synchronous>, transform_indices = @transform_0, window_bounds = array<i64: 512, 128>}, {transform_indices = @transform_1, window_bounds = array<i64: 1, 128, 128>}, {transform_indices = @transform_2, window_bounds = array<i64: 1, 256, 256>}, {transform_indices = @transform_3, window_bounds = array<i64: 1, 1, 128>}, {transform_indices = @transform_4, window_bounds = array<i64: 3>}, {pipeline_mode = #tpu.pipeline_mode<synchronous>, transform_indices = @transform_5, window_bounds = array<i64: 128, 128>}, {pipeline_mode = #tpu.pipeline_mode<synchronous>, transform_indices = @transform_6, window_bounds = array<i64: 1, 128>}, {pipeline_mode = #tpu.pipeline_mode<synchronous>, transform_indices = @transform_7, window_bounds = array<i64: 1, 128>}, {pipeline_mode = #tpu.pipeline_mode<synchronous>, transform_indices = @transform_8, window_bounds = array<i64: 512, 128>}]} {
    %c0_i32 = arith.constant 0 : i32
    %0 = arith.cmpi eq, %arg0, %c0_i32 : i32
    %c0_i32_0 = arith.constant 0 : i32
    %1 = arith.cmpi eq, %arg1, %c0_i32_0 : i32
    %2 = arith.andi %0, %1 : i1
    %c0_i32_1 = arith.constant 0 : i32
    %3 = arith.cmpi eq, %arg2, %c0_i32_1 : i32
    %4 = arith.andi %2, %3 : i1
    %5 = arith.extui %4 : i1 to i32
    %c0_i32_2 = arith.constant 0 : i32
    %6 = arith.cmpi ne, %5, %c0_i32_2 : i32
    scf.if %6 {
      %cst_18 = arith.constant 0.000000e+00 : f32
      %34 = vector.broadcast %cst_18 : f32 to vector<3x1x1xf32>
      %c0_19 = arith.constant 0 : index
      %c0_20 = arith.constant 0 : index
      %c0_21 = arith.constant 0 : index
      %35 = vector.load %arg15[%c0_19, %c0_20, %c0_21] : memref<3x1x1xf32, #tpu.memory_space<vmem>>, vector<3x1x1xf32>
      tpu.vector_store %arg15[%c0_19, %c0_20, %c0_21], %34 {strides = array<i32>} : memref<3x1x1xf32, #tpu.memory_space<vmem>>, vector<3x1x1xf32>,
    } else {
    }
    %c256_i32 = arith.constant 256 : i32
    %7 = arith.muli %arg2, %c256_i32 : i32
    %8 = tpu.assume_multiple %7, 256 : i32
    %c0_i32_3 = arith.constant 0 : i32
    %9 = arith.cmpi eq, %arg1, %c0_i32_3 : i32
    %10 = arith.extui %9 : i1 to i32
    %c0_i32_4 = arith.constant 0 : i32
    %11 = arith.cmpi ne, %10, %c0_i32_4 : i32
    scf.if %11 {
      %34 = arith.index_cast %8 : i32 to index
      %c0_18 = arith.constant 0 : index
      %35 = vector.load %arg3[%34, %c0_18] : memref<512x128xf32, #tpu.memory_space<vmem>>, vector<256x128xf32>
      %36 = arith.truncf %35 : vector<256x128xf32> to vector<256x128xbf16>
      %c0_19 = arith.constant 0 : index
      %c0_20 = arith.constant 0 : index
      %c0_21 = arith.constant 0 : index
      %37 = vector.load %arg4[%c0_19, %c0_20, %c0_21] : memref<1x128x128xbf16, #tpu.memory_space<vmem>>, vector<1x128x128xbf16>
      %38 = vector.shape_cast %37 : vector<1x128x128xbf16> to vector<128x128xbf16>
      %cst_22 = arith.constant dense<0.000000e+00> : vector<256x128xf32>
      %39 = tpu.matmul %36, %38, %cst_22 {dimension_numbers = #tpu.dot_dimension_numbers<[1], [0], [0], [1], [0, 0, 1, 1], [], []>} : vector<256x128xbf16>, vector<128x128xbf16>, vector<256x128xf32> -> vector<256x128xf32>
      %40 = arith.truncf %39 : vector<256x128xf32> to vector<256x128xbf16>
      %41 = arith.index_cast %8 : i32 to index
      %c0_23 = arith.constant 0 : index
      %42 = vector.load %arg13[%41, %c0_23] : memref<512x128xbf16, #tpu.memory_space<vmem>>, vector<256x128xbf16>
      tpu.vector_store %arg13[%41, %c0_23], %40 {strides = array<i32>} : memref<512x128xbf16, #tpu.memory_space<vmem>>, vector<256x128xbf16>,
    } else {
    }
    %c0_i32_5 = arith.constant 0 : i32
    %12 = arith.cmpi eq, %arg2, %c0_i32_5 : i32
    %13 = arith.extui %12 : i1 to i32
    %c0_i32_6 = arith.constant 0 : i32
    %14 = arith.cmpi ne, %13, %c0_i32_6 : i32
    scf.if %14 {
      %cst_18 = arith.constant 0.000000e+00 : f32
      %34 = vector.broadcast %cst_18 : f32 to vector<256x128xf32>
      %c0_19 = arith.constant 0 : index
      %c0_20 = arith.constant 0 : index
      %35 = vector.load %arg12[%c0_19, %c0_20] : memref<256x128xf32, #tpu.memory_space<vmem>>, vector<256x128xf32>
      tpu.vector_store %arg12[%c0_19, %c0_20], %34 {strides = array<i32>} : memref<256x128xf32, #tpu.memory_space<vmem>>, vector<256x128xf32>,
    } else {
    }
    %c0 = arith.constant 0 : index
    %c0_7 = arith.constant 0 : index
    %15 = vector.load %arg12[%c0, %c0_7] : memref<256x128xf32, #tpu.memory_space<vmem>>, vector<256x128xf32>
    %c0_8 = arith.constant 0 : index
    %c0_9 = arith.constant 0 : index
    %c0_10 = arith.constant 0 : index
    %16 = vector.load %arg5[%c0_8, %c0_9, %c0_10] : memref<1x256x256xf32, #tpu.memory_space<vmem>>, vector<1x256x256xf32>
    %17 = vector.shape_cast %16 : vector<1x256x256xf32> to vector<256x256xf32>
    %18 = arith.truncf %17 : vector<256x256xf32> to vector<256x256xbf16>
    %19 = arith.index_cast %8 : i32 to index
    %c0_11 = arith.constant 0 : index
    %20 = vector.load %arg13[%19, %c0_11] : memref<512x128xbf16, #tpu.memory_space<vmem>>, vector<256x128xbf16>
    %cst = arith.constant dense<0.000000e+00> : vector<256x128xf32>
    %21 = tpu.matmul %18, %20, %cst {dimension_numbers = #tpu.dot_dimension_numbers<[1], [0], [0], [1], [0, 0, 1, 1], [], []>} : vector<256x256xbf16>, vector<256x128xbf16>, vector<256x128xf32> -> vector<256x128xf32>
    %22 = arith.addf %15, %21 : vector<256x128xf32>
    %c0_12 = arith.constant 0 : index
    %c0_13 = arith.constant 0 : index
    %23 = vector.load %arg12[%c0_12, %c0_13] : memref<256x128xf32, #tpu.memory_space<vmem>>, vector<256x128xf32>
    tpu.vector_store %arg12[%c0_12, %c0_13], %22 {strides = array<i32>} : memref<256x128xf32, #tpu.memory_space<vmem>>, vector<256x128xf32>,
    %c1_i32 = arith.constant 1 : i32
    %24 = arith.cmpi eq, %arg2, %c1_i32 : i32
    %25 = arith.extui %24 : i1 to i32
    %c0_i32_14 = arith.constant 0 : i32
    %26 = arith.cmpi ne, %25, %c0_i32_14 : i32
    scf.if %26 {
      %c0_18 = arith.constant 0 : index
      %c0_19 = arith.constant 0 : index
      %34 = vector.load %arg12[%c0_18, %c0_19] : memref<256x128xf32, #tpu.memory_space<vmem>>, vector<256x128xf32>
      %c0_20 = arith.constant 0 : index
      %c0_21 = arith.constant 0 : index
      %c0_22 = arith.constant 0 : index
      %35 = vector.load %arg6[%c0_20, %c0_21, %c0_22] : memref<1x1x128xf32, #tpu.memory_space<vmem>>, vector<1x1x128xf32>
      %36 = vector.shape_cast %35 : vector<1x1x128xf32> to vector<1x128xf32>
      %37 = vector.broadcast %36 : vector<1x128xf32> to vector<256x128xf32>
      %38 = arith.addf %34, %37 : vector<256x128xf32>
      %39 = arith.index_cast %arg0 : i32 to index
      %40 = memref.load %arg7[%39] : memref<3xf32, #tpu.memory_space<smem>>
      %cst_23 = arith.constant 0.000000e+00 : f32
      %41 = vector.broadcast %cst_23 : f32 to vector<256x128xf32>
      %42 = arith.cmpf oge, %38, %41 : vector<256x128xf32>
      %43 = vector.broadcast %40 : f32 to vector<256x128xf32>
      %44 = arith.mulf %43, %38 : vector<256x128xf32>
      %45 = arith.select %42, %38, %44 : vector<256x128xi1>, vector<256x128xf32>
      %c512_i32 = arith.constant 512 : i32
      %46 = arith.muli %arg0, %c512_i32 : i32
      %c256_i32_24 = arith.constant 256 : i32
      %47 = arith.muli %arg1, %c256_i32_24 : i32
      %48 = arith.addi %46, %47 : i32
      %49 = tpu.assume_multiple %48, 256 : i32
      %50 = arith.truncf %45 : vector<256x128xf32> to vector<256x128xbf16>
      %51 = arith.index_cast %49 : i32 to index
      %c0_25 = arith.constant 0 : index
      %52 = vector.load %arg14[%51, %c0_25] : memref<1536x128xbf16, #tpu.memory_space<vmem>>, vector<256x128xbf16>
      tpu.vector_store %arg14[%51, %c0_25], %50 {strides = array<i32>} : memref<1536x128xbf16, #tpu.memory_space<vmem>>, vector<256x128xbf16>,
      %53 = arith.truncf %45 : vector<256x128xf32> to vector<256x128xbf16>
      %c0_26 = arith.constant 0 : index
      %c0_27 = arith.constant 0 : index
      %54 = vector.load %arg8[%c0_26, %c0_27] : memref<128x128xbf16, #tpu.memory_space<vmem>>, vector<128x128xbf16>
      %cst_28 = arith.constant dense<0.000000e+00> : vector<256x128xf32>
      %55 = tpu.matmul %53, %54, %cst_28 {dimension_numbers = #tpu.dot_dimension_numbers<[1], [0], [0], [1], [0, 0, 1, 1], [], []>} : vector<256x128xbf16>, vector<128x128xbf16>, vector<256x128xf32> -> vector<256x128xf32>
      %c0_29 = arith.constant 0 : index
      %c0_30 = arith.constant 0 : index
      %56 = vector.load %arg9[%c0_29, %c0_30] : memref<1x128xbf16, #tpu.memory_space<vmem>>, vector<1x128xbf16>
      %57 = arith.extf %56 : vector<1x128xbf16> to vector<1x128xf32>
      %58 = vector.broadcast %57 : vector<1x128xf32> to vector<256x128xf32>
      %59 = arith.addf %55, %58 : vector<256x128xf32>
      %60 = math.tanh %59 : vector<256x128xf32>
      %c0_31 = arith.constant 0 : index
      %c0_32 = arith.constant 0 : index
      %61 = vector.load %arg10[%c0_31, %c0_32] : memref<1x128xbf16, #tpu.memory_space<vmem>>, vector<1x128xbf16>
      %62 = arith.extf %61 : vector<1x128xbf16> to vector<1x128xf32>
      %63 = vector.broadcast %62 : vector<1x128xf32> to vector<256x128xf32>
      %64 = arith.mulf %60, %63 : vector<256x128xf32>
      %cst_33 = arith.constant dense<0.000000e+00> : vector<256xf32>
      %65 = vector.multi_reduction <add>, %64, %cst_33 [1] : vector<256x128xf32> to vector<256xf32>
      %66 = vector.shape_cast %65 : vector<256xf32> to vector<256x1xf32>
      %67 = arith.index_cast %arg0 : i32 to index
      %c0_34 = arith.constant 0 : index
      %c0_35 = arith.constant 0 : index
      %68 = vector.load %arg15[%67, %c0_34, %c0_35] : memref<3x1x1xf32, #tpu.memory_space<vmem>>, vector<1x1x1xf32>
      %69 = vector.shape_cast %68 : vector<1x1x1xf32> to vector<1x1xf32>
      %cst_36 = arith.constant dense<0.000000e+00> : vector<1xf32>
      %70 = vector.multi_reduction <add>, %66, %cst_36 [0] : vector<256x1xf32> to vector<1xf32>
      %71 = vector.shape_cast %70 : vector<1xf32> to vector<1x1xf32>
      %72 = arith.addf %69, %71 : vector<1x1xf32>
      %73 = arith.index_cast %arg0 : i32 to index
      %c0_37 = arith.constant 0 : index
      %c0_38 = arith.constant 0 : index
      %74 = vector.load %arg15[%73, %c0_37, %c0_38] : memref<3x1x1xf32, #tpu.memory_space<vmem>>, vector<1x1x1xf32>
      %75 = vector.shape_cast %74 : vector<1x1x1xf32> to vector<1x1xf32>
      %76 = vector.shape_cast %72 : vector<1x1xf32> to vector<1x1x1xf32>
      tpu.vector_store %arg15[%73, %c0_37, %c0_38], %76 {strides = array<i32>} : memref<3x1x1xf32, #tpu.memory_space<vmem>>, vector<1x1x1xf32>,
    } else {
    }
    %c2_i32 = arith.constant 2 : i32
    %27 = arith.cmpi eq, %arg0, %c2_i32 : i32
    %c1_i32_15 = arith.constant 1 : i32
    %28 = arith.cmpi eq, %arg1, %c1_i32_15 : i32
    %29 = arith.andi %27, %28 : i1
    %c1_i32_16 = arith.constant 1 : i32
    %30 = arith.cmpi eq, %arg2, %c1_i32_16 : i32
    %31 = arith.andi %29, %30 : i1
    %32 = arith.extui %31 : i1 to i32
    %c0_i32_17 = arith.constant 0 : i32
    %33 = arith.cmpi ne, %32, %c0_i32_17 : i32
    scf.if %33 {
      %c0_18 = arith.constant 0 : index
      %c0_19 = arith.constant 0 : index
      %c0_20 = arith.constant 0 : index
      %34 = vector.load %arg15[%c0_18, %c0_19, %c0_20] : memref<3x1x1xf32, #tpu.memory_space<vmem>>, vector<1x1x1xf32>
      %35 = vector.shape_cast %34 : vector<1x1x1xf32> to vector<1x1xf32>
      %cst_21 = arith.constant 0.001953125 : f32
      %36 = vector.broadcast %cst_21 : f32 to vector<1x1xf32>
      %37 = arith.mulf %35, %36 : vector<1x1xf32>
      %c1 = arith.constant 1 : index
      %c0_22 = arith.constant 0 : index
      %c0_23 = arith.constant 0 : index
      %38 = vector.load %arg15[%c1, %c0_22, %c0_23] : memref<3x1x1xf32, #tpu.memory_space<vmem>>, vector<1x1x1xf32>
      %39 = vector.shape_cast %38 : vector<1x1x1xf32> to vector<1x1xf32>
      %cst_24 = arith.constant 0.001953125 : f32
      %40 = vector.broadcast %cst_24 : f32 to vector<1x1xf32>
      %41 = arith.mulf %39, %40 : vector<1x1xf32>
      %c2 = arith.constant 2 : index
      %c0_25 = arith.constant 0 : index
      %c0_26 = arith.constant 0 : index
      %42 = vector.load %arg15[%c2, %c0_25, %c0_26] : memref<3x1x1xf32, #tpu.memory_space<vmem>>, vector<1x1x1xf32>
      %43 = vector.shape_cast %42 : vector<1x1x1xf32> to vector<1x1xf32>
      %cst_27 = arith.constant 0.001953125 : f32
      %44 = vector.broadcast %cst_27 : f32 to vector<1x1xf32>
      %45 = arith.mulf %43, %44 : vector<1x1xf32>
      %46 = arith.maximumf %37, %41 : vector<1x1xf32>
      %47 = arith.maximumf %46, %45 : vector<1x1xf32>
      %48 = arith.subf %37, %47 : vector<1x1xf32>
      %49 = math.exp %48 : vector<1x1xf32>
      %50 = arith.subf %41, %47 : vector<1x1xf32>
      %51 = math.exp %50 : vector<1x1xf32>
      %52 = arith.subf %45, %47 : vector<1x1xf32>
      %53 = math.exp %52 : vector<1x1xf32>
      %54 = arith.addf %49, %51 : vector<1x1xf32>
      %55 = arith.addf %54, %53 : vector<1x1xf32>
      %56 = tpu.reciprocal %55 {approx = true} : vector<1x1xf32> -> vector<1x1xf32>
      %57 = arith.mulf %49, %56 : vector<1x1xf32>
      %58 = arith.mulf %51, %56 : vector<1x1xf32>
      %59 = arith.mulf %53, %56 : vector<1x1xf32>
      %c0_i32_28 = arith.constant 0 : i32
      %c2_i32_29 = arith.constant 2 : i32
      %60 = arith.addi %c0_i32_28, %c2_i32_29 : i32
      %c1_i32_30 = arith.constant 1 : i32
      scf.for %arg16 = %c0_i32_28 to %60 step %c1_i32_30  : i32 {
        %c256_i32_32 = arith.constant 256 : i32
        %61 = arith.muli %arg16, %c256_i32_32 : i32
        %c0_i32_33 = arith.constant 0 : i32
        %62 = arith.addi %c0_i32_33, %61 : i32
        %63 = tpu.assume_multiple %62, 256 : i32
        %64 = arith.index_cast %63 : i32 to index
        %c0_34 = arith.constant 0 : index
        %65 = vector.load %arg14[%64, %c0_34] : memref<1536x128xbf16, #tpu.memory_space<vmem>>, vector<256x128xbf16>
        %66 = arith.extf %65 : vector<256x128xbf16> to vector<256x128xf32>
        %67 = vector.broadcast %57 : vector<1x1xf32> to vector<256x128xf32>
        %68 = arith.mulf %67, %66 : vector<256x128xf32>
        %c256_i32_35 = arith.constant 256 : i32
        %69 = arith.muli %arg16, %c256_i32_35 : i32
        %c512_i32 = arith.constant 512 : i32
        %70 = arith.addi %c512_i32, %69 : i32
        %71 = tpu.assume_multiple %70, 256 : i32
        %72 = arith.index_cast %71 : i32 to index
        %c0_36 = arith.constant 0 : index
        %73 = vector.load %arg14[%72, %c0_36] : memref<1536x128xbf16, #tpu.memory_space<vmem>>, vector<256x128xbf16>
        %74 = arith.extf %73 : vector<256x128xbf16> to vector<256x128xf32>
        %75 = vector.broadcast %58 : vector<1x1xf32> to vector<256x128xf32>
        %76 = arith.mulf %75, %74 : vector<256x128xf32>
        %77 = arith.addf %68, %76 : vector<256x128xf32>
        %c256_i32_37 = arith.constant 256 : i32
        %78 = arith.muli %arg16, %c256_i32_37 : i32
        %c1024_i32 = arith.constant 1024 : i32
        %79 = arith.addi %c1024_i32, %78 : i32
        %80 = tpu.assume_multiple %79, 256 : i32
        %81 = arith.index_cast %80 : i32 to index
        %c0_38 = arith.constant 0 : index
        %82 = vector.load %arg14[%81, %c0_38] : memref<1536x128xbf16, #tpu.memory_space<vmem>>, vector<256x128xbf16>
        %83 = arith.extf %82 : vector<256x128xbf16> to vector<256x128xf32>
        %84 = vector.broadcast %59 : vector<1x1xf32> to vector<256x128xf32>
        %85 = arith.mulf %84, %83 : vector<256x128xf32>
        %86 = arith.addf %77, %85 : vector<256x128xf32>
        %c256_i32_39 = arith.constant 256 : i32
        %87 = arith.muli %arg16, %c256_i32_39 : i32
        %88 = tpu.assume_multiple %87, 256 : i32
        %89 = arith.index_cast %88 : i32 to index
        %c0_40 = arith.constant 0 : index
        %90 = vector.load %arg11[%89, %c0_40] : memref<512x128xf32, #tpu.memory_space<vmem>>, vector<256x128xf32>
        tpu.vector_store %arg11[%89, %c0_40], %86 {strides = array<i32>} : memref<512x128xf32, #tpu.memory_space<vmem>>, vector<256x128xf32>,
      }
      %c2_i32_31 = arith.constant 2 : i32
    } else {
    }
    return
  }
  func.func @transform_0(%arg0: i32, %arg1: i32, %arg2: i32) -> (i32, i32) {
    %c0_i32 = arith.constant 0 : i32
    %c0_i32_0 = arith.constant 0 : i32
    %c0_i32_1 = arith.constant 0 : i32
    return %c0_i32, %c0_i32_0 : i32, i32
  }
  func.func @transform_1(%arg0: i32, %arg1: i32, %arg2: i32) -> (i32, i32, i32) {
    %c0_i32 = arith.constant 0 : i32
    %c0_i32_0 = arith.constant 0 : i32
    %c0_i32_1 = arith.constant 0 : i32
    return %arg0, %c0_i32, %c0_i32_0 : i32, i32, i32
  }
  func.func @transform_2(%arg0: i32, %arg1: i32, %arg2: i32) -> (i32, i32, i32) {
    %c0_i32 = arith.constant 0 : i32
    return %arg0, %arg1, %arg2 : i32, i32, i32
  }
  func.func @transform_3(%arg0: i32, %arg1: i32, %arg2: i32) -> (i32, i32, i32) {
    %c0_i32 = arith.constant 0 : i32
    %c0_i32_0 = arith.constant 0 : i32
    %c0_i32_1 = arith.constant 0 : i32
    return %arg0, %c0_i32, %c0_i32_0 : i32, i32, i32
  }
  func.func @transform_4(%arg0: i32, %arg1: i32, %arg2: i32) -> i32 {
    %c0_i32 = arith.constant 0 : i32
    %c0_i32_0 = arith.constant 0 : i32
    return %c0_i32 : i32
  }
  func.func @transform_5(%arg0: i32, %arg1: i32, %arg2: i32) -> (i32, i32) {
    %c0_i32 = arith.constant 0 : i32
    %c0_i32_0 = arith.constant 0 : i32
    %c0_i32_1 = arith.constant 0 : i32
    return %c0_i32, %c0_i32_0 : i32, i32
  }
  func.func @transform_6(%arg0: i32, %arg1: i32, %arg2: i32) -> (i32, i32) {
    %c0_i32 = arith.constant 0 : i32
    %c0_i32_0 = arith.constant 0 : i32
    %c0_i32_1 = arith.constant 0 : i32
    return %c0_i32, %c0_i32_0 : i32, i32
  }
  func.func @transform_7(%arg0: i32, %arg1: i32, %arg2: i32) -> (i32, i32) {
    %c0_i32 = arith.constant 0 : i32
    %c0_i32_0 = arith.constant 0 : i32
    %c0_i32_1 = arith.constant 0 : i32
    return %c0_i32, %c0_i32_0 : i32, i32
  }
  func.func @transform_8(%arg0: i32, %arg1: i32, %arg2: i32) -> (i32, i32) {
    %c0_i32 = arith.constant 0 : i32
    %c0_i32_0 = arith.constant 0 : i32
    %c0_i32_1 = arith.constant 0 : i32
    return %c0_i32, %c0_i32_0 : i32, i32
  }
}

</mosaic_0001>

<bundles_post_ra>
// kernel: hgcn_forward.1
= control target key start
LH: loop header
LB: loop body
LE: loop exit
PB: predicated region body
PF: predicated region fallthrough
CT: control target
= control target key end

     0   :  { %s5180_s0 = inlined_call_operand.hbm [shape: f32[512,128], index: 0, kind: input, shape index: {}]   ;;  %s5181_s1 = inlined_call_operand.vmem [shape: bf16[3,128,128], index: 1, kind: input, shape index: {}]   ;;  %s5182_s2 = inlined_call_operand.hbm [shape: f32[3,512,512], index: 2, kind: input, shape index: {}]   ;;  %s5183_s3 = inlined_call_operand.hbm [shape: f32[3,1,128], index: 3, kind: input, shape index: {}]   ;;  %s5184_s4 = inlined_call_operand.hbm [shape: f32[3], index: 4, kind: input, shape index: {}]   ;;  %s5185_s5 = inlined_call_operand.vmem [shape: bf16[128,128], index: 5, kind: input, shape index: {}]   ;;  %s5186_s6 = inlined_call_operand.vmem [shape: bf16[1,128], index: 6, kind: input, shape index: {}]   ;;  %s5187_s7 = inlined_call_operand.vmem [shape: bf16[1,128], index: 7, kind: input, shape index: {}]   ;;  %s5188_s8 = inlined_call_operand.hbm [shape: f32[512,128], index: 8, kind: output, shape index: {}]  }
   0x1   :  { %5216 = sst [smem:[#allocation48_spill]] %s5180_s0 }
   0x2   :  { %5217 = sst [smem:[#allocation49_spill]] %s5181_s1 }
   0x3   :  { %5218 = sst [smem:[#allocation50_spill]] %s5182_s2 }
   0x4   :  { %5219 = sst [smem:[#allocation51_spill]] %s5183_s3 }
   0x5   :  { %5220 = sst [smem:[#allocation52_spill]] %s5184_s4 }
   0x6   :  { %5221 = sst [smem:[#allocation53_spill]] %s5185_s5 }
   0x7   :  { %5222 = sst [smem:[#allocation54_spill]] %s5186_s6 }
   0x8   :  { %5223 = sst [smem:[#allocation55_spill]] %s5187_s7 }
   0x9   :  { %5224 = sst [smem:[#allocation56_spill]] %s5188_s8 }
   0xa   :  { %13 = vsyncpa [#allocation7], 0 }
   0xb   :  { %14 = vsyncpa [#allocation11], 0 }
   0xc   :  { %16 = vsyncpa [#allocation11 + $0x1], 0 }
   0xd   :  { %17 = vsyncpa [#allocation9], 0 }
   0xe   :  { %18 = vsyncpa [#allocation8], 0  ;;  %s3779_s27 = smov 0   ;;  %s3781_s28 = smov 0  }
   0xf   :  { %s3783_s29 = smov 0   ;;  %s3785_s30 = smov 0  }
  0x10   :  { %s3787_s9 = smov 0   ;;  %s3789_s10 = smov 0  }
  0x11   :  { %s3791_s11 = smov 0   ;;  %s3793_s12 = smov 0  }
  0x12   :  { %s3795_s13 = smov 0   ;;  %s3797_s14 = smov 0  }
  0x13   :  { %s3799_s15 = smov 0   ;;  %s3801_s16 = smov 0  }
  0x14   :  { %s3803_s17 = smov 0  }
  0x15 LB: > { %5225 = sst [smem:[#allocation20_spill]] %s3671_s28  ;;  %s36_s18 = sadd.s32 1, %s3703_s14  ;;  %s3715_s17 = sphi %s3803_s17, %s24_s17   ;;  %s3711_s16 = sphi %s3801_s16, %s5410_s16   ;;  %s3707_s15 = sphi %s3799_s15, %s5400_s15   ;;  %s3703_s14 = sphi %s3797_s14, %s5409_s14   ;;  %s3699_s13 = sphi %s3795_s13, %s5408_s13   ;;  %s3695_s12 = sphi %s3793_s12, %s5399_s12   ;;  %s3691_s11 = sphi %s3791_s11, %s5407_s11   ;;  %s3687_s10 = sphi %s3789_s10, %s5406_s10   ;;  %s3683_s9 = sphi %s3787_s9, %s5405_s9   ;;  %s3679_s30 = sphi %s3785_s30, %s5404_s30   ;;  %s3675_s29 = sphi %s3783_s29, %s5403_s29   ;;  %s3671_s28 = sphi %s3781_s28, %s5402_s28   ;;  %s3667_s27 = sphi %s3779_s27, %s5398_s27  }
  0x16   : > { %5226 = sst [smem:[#allocation21_spill]] %s3691_s11  ;;  %s39_s19 = sadd.s32 1, %s3707_s15 }
  0x17   : > { %5227 = sst [smem:[#allocation22_spill]] %s3695_s12  ;;  %p37_p0 = scmp.ge.s32.totalorder %s36_s18, 2 }
  0x18   : > { %5228 = sst [smem:[#allocation23_spill]] %s3699_s13  ;;  %p108_p1 = scmp.ne.s32.totalorder %s3687_s10, %s3683_s9 }
  0x19   : > { %5229 = sst [smem:[#allocation24_spill]] %s3707_s15  ;;  %p109_p2 = scmp.eq.s32.totalorder %s3715_s17, 0 }
  0x1a   : > { %s5412_s18 = smov (%p37_p0, %s36_s18), 0  ;;  %s5414_s19 = smov (!%p37_p0, %s39_s19), %s3707_s15 }
  0x1b   : > { %p3859_p3 = por %p109_p2, %p108_p1  ;;  %p41_p4 = scmp.ge.s32.totalorder %s5414_s19, 2 }
  0x1c   : > { %p114_p5 = scmp.ne.s32.totalorder %s3683_s9, %s3679_s30  ;;  %p3251_p6 = scmp.lt.s32.totalorder %s3715_s17, 12 }
  0x1d   : > { %s310_s23 = sand.u32 1, %s3715_s17   ;;  %s312_s24 = sand.u32 1, %s3687_s10  }
  0x1e   : > { %s2537_s25 = sshll.u32 %s312_s24, 9  ;;  %s2539_s26 = sshll.u32 %s3703_s14, 1 }
  0x1f   : > { %s2694_s20 = sshll.u32 %s3707_s15, 7  ;;  %s2541_s8 = sshll.u32 %s3711_s16, 8 }
  0x20   : > { %s320_s7 = sadd.s32 %s2694_s20, %s2539_s26  ;;  %s314_s6 = scalar_lea.vmem [#allocation10], %s2537_s25 }
  0x21   : > { %s327_s21 = sshll.u32 %s314_s6, 4  ;;  %s322_s5 = sadd.s32 %s2541_s8, %s320_s7  ;;  %s328_s21 = int_to_ptr.vmem [resolvable:$true] %s327_s21 }
  0x22   : > { %s2542_s1 = sshll.u32 %s322_s5, 3  ;;  %p3243_p7 = pnand %p3251_p6, %p3859_p3 }
  0x23   : > { %s5231_s2 = sld [smem:[#allocation50_spill]]  ;;  %s3879_s3 = scalar_lea.sflag [#allocation11], %s310_s23 }
  0x24   : > { %s3721_s20 = smov 512   ;;  %s3722_s6 = smov 256  }
  0x25   : > { %s3723_s25 = smov 16   ;;  %s3883_s7 = sadd.s32 4294967295, %s3715_s17  }
  0x26   : > { %p115_p8 = scmp.eq.s32.totalorder %s3883_s7, 0  ;;  %p2533_p9 = scmp.ge.s32.totalorder %s3715_s17, 1 }
  0x27   : > { %p256_p10 = scmp.lt.s32.totalorder %s3715_s17, 13  ;;  %s5233_s0 = sld [smem:[#allocation48_spill]] }
  0x28   : > { %p3893_p11 = por %p115_p8, %p114_p5  ;;  %s3724_s30 = smov [#allocation6]  }
  0x29   : > { %s324_s24 = scalar_lea.hbm %s5231_s2, %s2542_s1  ;;  %p3900_p12 = pnand %p2533_p9, %p256_p10 }
  0x2a   : > { %s325_s13 = sshll.u32 %s324_s24, 4  ;;  %s5235_s4 = sld [smem:[#allocation52_spill]]  ;;  %s326_s13 = int_to_ptr.hbm [resolvable:$true] %s325_s13 }
  0x2b   : > { %3245 = dma.hbm_to_vmem [thread:$0]  (!%p3243_p7), %s326_s13, 8192, %s328_s21, %s3879_s3, %s3721_s20, %s3722_s6, %s3723_s25  }
  0x2c   : > { %p3235_p13 = pneg %p3900_p12  ;;  %s269_s13 = sshll.u32 %s3724_s30, 4  ;;  %s270_s13 = int_to_ptr.vmem [resolvable:$true] %s269_s13 }
  0x2d   : > { %s267_s11 = sshll.u32 %s5233_s0, 4  ;;  %s3725_s26 = smov 128   ;;  %s268_s11 = int_to_ptr.hbm [resolvable:$true] %s267_s11 }
  0x2e   : > { %p3236_p0 = pnand %p3235_p13, %p115_p8  ;;  %s3726_s24 = smov 8  }
  0x2f   : > { %s3727_s20 = smov [#allocation13]   ;;  %s43_s6 = sadd.s32 1, %s3711_s16 }
  0x30   : > { %s282_s23 = sshll.u32 %s5235_s4, 4  ;;  %s5416_s6 = smov (!%p41_p4, %s43_s6), %s3711_s16  ;;  %s283_s23 = int_to_ptr.hbm [resolvable:$true] %s282_s23 }
  0x31   : > { %3238 = dma.hbm_to_vmem [thread:$0]  (!%p3236_p0), %s268_s11, 8192, %s270_s13, [#allocation7], %s3725_s26, %s3725_s26, %s3726_s24  }
  0x32   : > { %3241 = dma.hbm_to_smem (!%p3236_p0), %s283_s23, 16, %s3727_s20, [#allocation9]  }
  0x33   : > { %s3915_s25 = scalar_select %p41_p4, 0, %s5414_s19  }
  0x34   : > { %s127_s8 = sadd.s32 1, %s3675_s29  ;;  %p45_p1 = scmp.ge.s32.totalorder %s5416_s6, 3 }
  0x35   : > { %5236 = sst [smem:[#allocation25_spill]] %s3915_s25  ;;  %s95_s5 = ssub.s32 %s3707_s15, %s3915_s25 }
  0x36   : > { %p134_p3 = scmp.ne.s32.totalorder %s3675_s29, %s3671_s28  ;;  %p140_p5 = scmp.ne.s32.totalorder %s3671_s28, %s3667_s27 }
  0x37   : > { %s339_s11 = sand.u32 1, %s3675_s29   ;;  %s5418_s6 = smov (%p45_p1, %s5416_s6), 0 }
  0x38   : > { %p3932_p7 = por %p134_p3, %p109_p2  ;;  %p3938_p4 = por %p140_p5, %p115_p8 }
  0x39   : > { %s94_s13 = ssub.s32 %s3711_s16, %s5418_s6  ;;  %s5239_s27 = ssub.s32 %s3703_s14, %s5412_s18 }
  0x3a   : > { %s96_s21 = sor.u32 %s95_s5, %s94_s13  ;;  %p125_p9 = scmp.eq.s32.totalorder %s94_s13, 0 }
  0x3b   : > { %s98_s22 = sor.u32 %s5239_s27, %s96_s21  ;;  %s5240_s24 = sld [smem:[#allocation51_spill]] }
  0x3c   : > { %p99_p2 = scmp.eq.s32.totalorder %s98_s22, 0  ;;  %s5241_s4 = sadd.s32 1, %s3687_s10 }
  0x3d   : > { %s3952_s2 = scalar_select %p125_p9, %s3675_s29, %s127_s8  }
  0x3e   : > { %s3957_s25 = scalar_select %p99_p2, %s3687_s10, %s5241_s4  }
  0x3f   : > { %s340_s15 = scalar_lea.vmem [#allocation12], %s339_s11  ;;  %p3246_p10 = pnand %p3251_p6, %p3932_p7 }
  0x40   : > { %s347_s28 = sshll.u32 %s340_s15, 4  ;;  %356 = sbr.rel (%p3900_p12) target bundleno = 1348 (0x544), region = 52  ;;  %s348_s28 = int_to_ptr.vmem [resolvable:$true] %s347_s28 }
  0x41   : > { %s343_s20 = scalar_lea.hbm %s5240_s24, %s3711_s16 }
  0x42   : > { %s345_s0 = sshll.u32 %s343_s20, 4  ;;  %s346_s0 = int_to_ptr.hbm [resolvable:$true] %s345_s0 }
  0x43   : > { %3248 = dma.hbm_to_vmem [thread:$0]  (!%p3246_p10), %s346_s0, 16, %s348_s28, %s3879_s3  }
  0x45   : > { %3646 = dma.done.wait (%p115_p8), [#allocation7], 8192  }
  0x46   : > { %3648 = vsyncadd (%p115_p8), [#allocation7], 4294959104  ;;  %s363_s4 = sand.u32 1, %s3883_s7   ;;  %s365_s5 = sand.u32 1, %s3683_s9  }
  0x47   : > { %s2545_s15 = sshll.u32 %s365_s5, 9  ;;  %s364_s8 = scalar_lea.sflag [#allocation11], %s363_s4 }
  0x48   : > { %s3972_s11 = scalar_lea.vmem [#allocation10], %s2545_s15 }
  0x49   : > { %3650 = dma.done.wait (%p3893_p11), %s364_s8, 8192  }
  0x4a   : > { %3652 = vsyncadd (%p3893_p11), %s364_s8, 4294959104  ;;  %s5242_s0 = sld [smem:[#allocation20_spill]] }
  0x50   : > { %s375_s3 = sand.u32 1, %s5242_s0  }
  0x51   : > { %s3979_s28 = scalar_lea.vmem [#allocation12], %s375_s3 }
  0x52   : > { %3654 = dma.done.wait (%p3938_p4), %s364_s8, 16  }
  0x53   : > { %3656 = vsyncadd (%p3938_p4), %s364_s8, 4294967280 }
  0x54   : > { %3658 = dma.done.wait (%p115_p8), [#allocation9], 16  }
  0x55   : > { %3660 = vsyncadd (%p115_p8), [#allocation9], 4294967280 }
  0x56   : > { %387 = sfence }
  0x57   : > { %s5243_s12 = sld [smem:[#allocation23_spill]] }
  0x58   : > { %s5244_s1 = sld [smem:[#allocation22_spill]] }
  0x59   : > { %s5245_s30 = sld [smem:[#allocation21_spill]] }
  0x5a   : > { %s5246_s27 = sld [smem:[#allocation49_spill]] }
  0x5d   : > { %p420_p6 = scmp.lt.s32.totalorder %s5243_s12, 2  ;;  %p427_p11 = scmp.eq.s32.totalorder %s5243_s12, 0 }
  0x5e   : > { %p428_p12 = scmp.eq.s32.totalorder %s5244_s1, 0 }
  0x5f   : > { %s5420_s12 = smov (!%p420_p6, %s5243_s12), 2  ;;  %p431_p0 = scmp.eq.s32.totalorder %s5245_s30, 0 }
  0x60   : > { %p429_p13 = pnand %p428_p12, %p427_p11  ;;  %s2695_s19 = sshll.u32 %s5420_s12, 6 }
  0x61   : > { %s3997_s22 = scalar_lea.vmem %s5246_s27, %s2695_s19 }
  0x62   : > { %p430_p1 = pneg %p429_p13 }
  0x64   : > { %p432_p8 = pnand %p431_p0, %p430_p1 }
  0x66   : > { %435 = sbr.rel (%p432_p8) target bundleno = 111 (0x6f), region = 72 }
  0x6b   : > { %vm436_vm0 = vcmask 0   ;;  %v3728_v0 = vmov 0.0  }
  0x6c   : > { %437 = vst.msk [vmem:[#allocation5] sm:$0x1] %vm436_vm0, %v3728_v0 }
  0x6d   : > { %438 = vst.msk [vmem:[#allocation5 + $0x1] sm:$0x1] %vm436_vm0, %v3728_v0 }
  0x6e   : > { %439 = vst.msk [vmem:[#allocation5 + $0x2] sm:$0x1] %vm436_vm0, %v3728_v0 }
  0x6f PF: > { %s5247_s23 = sld [smem:[#allocation21_spill]] }
  0x70   : > { %s5248_s24 = sld [smem:[#allocation22_spill]] }
  0x75   : > { %s4000_s26 = sshll.u32 %s5247_s23, 8 }
  0x76   : > { %p2550_p3 = scmp.ne.s32.totalorder %s5248_s24, 0 }
  0x77   : > { %s4012_s20 = scalar_lea.vmem (!%p2550_p3), [#allocation6], %s4000_s26  ;;  %s678_s4 = sshra.s32 (!%p2550_p3), %s4000_s26, 3 }
  0x78   : > { %443 = sbr.rel (%p2550_p3) target bundleno = 350 (0x15e), region = 76  ;;  %s2583_s5 = sshll.u32 (!%p2550_p3), %s678_s4, 2 }
  0x79   : > { %s4047_s15 = scalar_lea.vmem (!%p2550_p3), [#allocation3], %s2583_s5 }
  0x7d   : > { %v2703_v1 = vld [vmem:[%s3997_s22 + $0x38] sm:$0xff]  ;;  %v2702_v2 = vld [vmem:[%s3997_s22 + $0x30] sm:$0xff]  ;;  %v2701_v3 = vld [vmem:[%s3997_s22 + $0x28] sm:$0xff] }
  0x7e   : > { %557 = vmatpush.bf16.msra.mxu0 %v2703_v1  ;;  %3155 = vmatpush.bf16.msra.mxu1 %v2703_v1  ;;  %v2700_v4 = vld [vmem:[%s3997_s22 + $0x20] sm:$0xff]  ;;  %v2699_v5 = vld [vmem:[%s3997_s22 + $0x18] sm:$0xff]  ;;  %v2698_v6 = vld [vmem:[%s3997_s22 + $0x10] sm:$0xff] }
  0x7f   : > { %3156 = vmatpush.bf16.msra.mxu2 %v2703_v1  ;;  %3157 = vmatpush.bf16.msra.mxu3 %v2703_v1  ;;  %v2697_v7 = vld [vmem:[%s3997_s22 + $0x8] sm:$0xff]  ;;  %v2696_v8 = vld [vmem:[%s3997_s22] sm:$0xff]  ;;  %v447_v21 = vld [vmem:[%s4012_s20 + $0x10] sm:$0xff] }
  0x80   : > { %v445_v9 = vld [vmem:[%s4012_s20] sm:$0xff]  ;;  %v446_v10 = vld [vmem:[%s4012_s20 + $0x8] sm:$0xff]  ;;  %v448_v22 = vld [vmem:[%s4012_s20 + $0x18] sm:$0xff] }
  0x81   : > { %v453_v11 = vld [vmem:[%s4012_s20 + $0x40] sm:$0xff]  ;;  %v454_v12 = vld [vmem:[%s4012_s20 + $0x48] sm:$0xff]  ;;  %v477_v17 = vpack.c.bf16 %v446_v10, %v445_v9  ;;  %v455_v23 = vld [vmem:[%s4012_s20 + $0x50] sm:$0xff]  ;;  %v478_v29 = vpack.c.bf16 %v448_v22, %v447_v21 }
  0x82   : > { %558 = vmatpush.bf16.msra.mxu0 %v2702_v2  ;;  %3158 = vmatpush.bf16.msra.mxu1 %v2702_v2  ;;  %v461_v13 = vld [vmem:[%s4012_s20 + $0x80] sm:$0xff]  ;;  %v462_v14 = vld [vmem:[%s4012_s20 + $0x88] sm:$0xff]  ;;  %v481_v18 = vpack.c.bf16 %v454_v12, %v453_v11  ;;  %v456_v24 = vld [vmem:[%s4012_s20 + $0x58] sm:$0xff] }
  0x83   : > { %3159 = vmatpush.bf16.msra.mxu2 %v2702_v2  ;;  %3160 = vmatpush.bf16.msra.mxu3 %v2702_v2  ;;  %v469_v15 = vld [vmem:[%s4012_s20 + $0xc0] sm:$0xff]  ;;  %v470_v16 = vld [vmem:[%s4012_s20 + $0xc8] sm:$0xff]  ;;  %v485_v19 = vpack.c.bf16 %v462_v14, %v461_v13  ;;  %v463_v25 = vld [vmem:[%s4012_s20 + $0x90] sm:$0xff]  ;;  %v482_v30 = vpack.c.bf16 %v456_v24, %v455_v23 }
  0x84   : > { %v489_v20 = vpack.c.bf16 %v470_v16, %v469_v15  ;;  %v464_v26 = vld [vmem:[%s4012_s20 + $0x98] sm:$0xff]  ;;  %v471_v27 = vld [vmem:[%s4012_s20 + $0xd0] sm:$0xff]  ;;  %v449_v33 = vld [vmem:[%s4012_s20 + $0x20] sm:$0xff] }
  0x85   : > { %v472_v28 = vld [vmem:[%s4012_s20 + $0xd8] sm:$0xff]  ;;  %v486_v31 = vpack.c.bf16 %v464_v26, %v463_v25  ;;  %v450_v34 = vld [vmem:[%s4012_s20 + $0x28] sm:$0xff]  ;;  %v457_v35 = vld [vmem:[%s4012_s20 + $0x60] sm:$0xff] }
  0x86   : > { %559 = vmatpush.bf16.msra.mxu0 %v2701_v3  ;;  %3161 = vmatpush.bf16.msra.mxu1 %v2701_v3  ;;  %v490_v32 = vpack.c.bf16 %v472_v28, %v471_v27  ;;  %v458_v36 = vld [vmem:[%s4012_s20 + $0x68] sm:$0xff]  ;;  %v465_v37 = vld [vmem:[%s4012_s20 + $0xa0] sm:$0xff]  ;;  %v479_v41 = vpack.c.bf16 %v450_v34, %v449_v33  ;;  %v451_v45 = vld [vmem:[%s4012_s20 + $0x30] sm:$0xff] }
  0x87   : > { %3162 = vmatpush.bf16.msra.mxu2 %v2701_v3  ;;  %3163 = vmatpush.bf16.msra.mxu3 %v2701_v3  ;;  %v466_v38 = vld [vmem:[%s4012_s20 + $0xa8] sm:$0xff]  ;;  %v473_v39 = vld [vmem:[%s4012_s20 + $0xe0] sm:$0xff]  ;;  %v483_v42 = vpack.c.bf16 %v458_v36, %v457_v35  ;;  %v452_v46 = vld [vmem:[%s4012_s20 + $0x38] sm:$0xff] }
  0x88   : > { %v474_v40 = vld [vmem:[%s4012_s20 + $0xe8] sm:$0xff]  ;;  %v487_v43 = vpack.c.bf16 %v466_v38, %v465_v37  ;;  %v459_v47 = vld [vmem:[%s4012_s20 + $0x70] sm:$0xff]  ;;  %v460_v48 = vld [vmem:[%s4012_s20 + $0x78] sm:$0xff]  ;;  %v480_v53 = vpack.c.bf16 %v452_v46, %v451_v45 }
  0x89   : > { %v491_v44 = vpack.c.bf16 %v474_v40, %v473_v39  ;;  %v467_v49 = vld [vmem:[%s4012_s20 + $0xb0] sm:$0xff]  ;;  %v468_v50 = vld [vmem:[%s4012_s20 + $0xb8] sm:$0xff]  ;;  %v484_v54 = vpack.c.bf16 %v460_v48, %v459_v47 }
  0x8a   : > { %560 = vmatpush.bf16.msra.mxu0 %v2700_v4  ;;  %3164 = vmatpush.bf16.msra.mxu1 %v2700_v4  ;;  %v475_v51 = vld [vmem:[%s4012_s20 + $0xf0] sm:$0xff]  ;;  %v476_v52 = vld [vmem:[%s4012_s20 + $0xf8] sm:$0xff]  ;;  %v488_v55 = vpack.c.bf16 %v468_v50, %v467_v49 }
  0x8b   : > { %3165 = vmatpush.bf16.msra.mxu2 %v2700_v4  ;;  %3166 = vmatpush.bf16.msra.mxu3 %v2700_v4  ;;  %v492_v56 = vpack.c.bf16 %v476_v52, %v475_v51 }
  0x8e   : > { %561 = vmatpush.bf16.msra.mxu0 %v2699_v5  ;;  %3167 = vmatpush.bf16.msra.mxu1 %v2699_v5 }
  0x8f   : > { %3168 = vmatpush.bf16.msra.mxu2 %v2699_v5  ;;  %3169 = vmatpush.bf16.msra.mxu3 %v2699_v5 }
  0x92   : > { %562 = vmatpush.bf16.msra.mxu0 %v2698_v6  ;;  %3170 = vmatpush.bf16.msra.mxu1 %v2698_v6 }
  0x93   : > { %3171 = vmatpush.bf16.msra.mxu2 %v2698_v6  ;;  %3172 = vmatpush.bf16.msra.mxu3 %v2698_v6 }
  0x96   : > { %563 = vmatpush.bf16.msra.mxu0 %v2697_v7  ;;  %3173 = vmatpush.bf16.msra.mxu1 %v2697_v7 }
  0x97   : > { %3174 = vmatpush.bf16.msra.mxu2 %v2697_v7  ;;  %3175 = vmatpush.bf16.msra.mxu3 %v2697_v7 }
  0x9a   : > { %564 = vmatpush.bf16.msra.mxu0 %v2696_v8  ;;  %3176 = vmatpush.bf16.msra.mxu1 %v2696_v8 }
  0x9b   : > { %3177 = vmatpush.bf16.msra.mxu2 %v2696_v8  ;;  %3178 = vmatpush.bf16.msra.mxu3 %v2696_v8 }
  0x9d   : > { %565 = vmatmul.bf16.vlgmr.msra.gmra.mxu0 %v477_v17  ;;  %585 = vmatmul.bf16.vlgmr.msra.gmra.mxu1 %v481_v18 }
  0x9e   : > { %605 = vmatmul.bf16.vlgmr.msra.gmra.mxu2 %v485_v19  ;;  %625 = vmatmul.bf16.vlgmr.msra.gmra.mxu3 %v489_v20 }
  0xad   : > { %570 = vmatmul.bf16.gmra.mxu0 %v478_v29  ;;  %590 = vmatmul.bf16.gmra.mxu1 %v482_v30 }
  0xae   : > { %610 = vmatmul.bf16.gmra.mxu2 %v486_v31  ;;  %630 = vmatmul.bf16.gmra.mxu3 %v490_v32 }
  0xbd   : > { %575 = vmatmul.bf16.gmra.mxu0 %v479_v41  ;;  %595 = vmatmul.bf16.gmra.mxu1 %v483_v42 }
  0xbe   : > { %615 = vmatmul.bf16.gmra.mxu2 %v487_v43  ;;  %635 = vmatmul.bf16.gmra.mxu3 %v491_v44 }
  0xcd   : > { %580 = vmatmul.bf16.gmra.mxu0 %v480_v53  ;;  %600 = vmatmul.bf16.gmra.mxu1 %v484_v54 }
  0xce   : > { %620 = vmatmul.bf16.gmra.mxu2 %v488_v55  ;;  %640 = vmatmul.bf16.gmra.mxu3 %v492_v56 }
 0x11a   : > { %v566_v57 = vpop.f32.mrf.mxu0  ;;  %v586_v58 = vpop.f32.mrf.mxu1 }
 0x121   : > { %v606_v59 = vpop.f32.mrf.mxu2  ;;  %v626_v60 = vpop.f32.mrf.mxu3 }
 0x122   : > { %v568_v61 = vpop.f32.mrf.mxu0  ;;  %v588_v62 = vpop.f32.mrf.mxu1 }
 0x123   : > { %v2731_v63 = vpack.c.bf16 %v568_v61, %v566_v57  ;;  %v2751_v0 = vpack.c.bf16 %v588_v62, %v586_v58 }
 0x125   : > { %2732 = vst [vmem:[%s4047_s15] sm:$0xff] %v2731_v63  }
 0x126   : > { %3083 = vst [vmem:[%s4047_s15 + $0x20] sm:$0xff] %v2751_v0  }
 0x129   : > { %v608_v1 = vpop.f32.mrf.mxu2  ;;  %v628_v2 = vpop.f32.mrf.mxu3 }
 0x12a   : > { %v2771_v3 = vpack.c.bf16 %v608_v1, %v606_v59  ;;  %v2791_v4 = vpack.c.bf16 %v628_v2, %v626_v60  ;;  %v571_v5 = vpop.f32.mrf.mxu0  ;;  %v591_v6 = vpop.f32.mrf.mxu1 }
 0x12c   : > { %3087 = vst [vmem:[%s4047_s15 + $0x40] sm:$0xff] %v2771_v3  }
 0x12d   : > { %3091 = vst [vmem:[%s4047_s15 + $0x60] sm:$0xff] %v2791_v4  }
 0x131   : > { %v611_v7 = vpop.f32.mrf.mxu2  ;;  %v631_v8 = vpop.f32.mrf.mxu3 }
 0x132   : > { %v573_v9 = vpop.f32.mrf.mxu0  ;;  %v593_v10 = vpop.f32.mrf.mxu1 }
 0x133   : > { %v2736_v11 = vpack.c.bf16 %v573_v9, %v571_v5  ;;  %v2756_v12 = vpack.c.bf16 %v593_v10, %v591_v6 }
 0x135   : > { %3080 = vst [vmem:[%s4047_s15 + $0x8] sm:$0xff] %v2736_v11  }
 0x136   : > { %3084 = vst [vmem:[%s4047_s15 + $0x28] sm:$0xff] %v2756_v12  }
 0x139   : > { %v613_v13 = vpop.f32.mrf.mxu2  ;;  %v633_v14 = vpop.f32.mrf.mxu3 }
 0x13a   : > { %v2776_v15 = vpack.c.bf16 %v613_v13, %v611_v7  ;;  %v2796_v16 = vpack.c.bf16 %v633_v14, %v631_v8  ;;  %v576_v17 = vpop.f32.mrf.mxu0  ;;  %v596_v18 = vpop.f32.mrf.mxu1 }
 0x13c   : > { %3088 = vst [vmem:[%s4047_s15 + $0x48] sm:$0xff] %v2776_v15  }
 0x13d   : > { %3092 = vst [vmem:[%s4047_s15 + $0x68] sm:$0xff] %v2796_v16  }
 0x141   : > { %v616_v19 = vpop.f32.mrf.mxu2  ;;  %v636_v20 = vpop.f32.mrf.mxu3 }
 0x142   : > { %v578_v21 = vpop.f32.mrf.mxu0  ;;  %v598_v22 = vpop.f32.mrf.mxu1 }
 0x143   : > { %v2741_v23 = vpack.c.bf16 %v578_v21, %v576_v17  ;;  %v2761_v24 = vpack.c.bf16 %v598_v22, %v596_v18 }
 0x145   : > { %3081 = vst [vmem:[%s4047_s15 + $0x10] sm:$0xff] %v2741_v23  }
 0x146   : > { %3085 = vst [vmem:[%s4047_s15 + $0x30] sm:$0xff] %v2761_v24  }
 0x149   : > { %v618_v25 = vpop.f32.mrf.mxu2  ;;  %v638_v26 = vpop.f32.mrf.mxu3 }
 0x14a   : > { %v2781_v27 = vpack.c.bf16 %v618_v25, %v616_v19  ;;  %v2801_v28 = vpack.c.bf16 %v638_v26, %v636_v20  ;;  %v581_v29 = vpop.f32.mrf.mxu0  ;;  %v601_v30 = vpop.f32.mrf.mxu1 }
 0x14c   : > { %3089 = vst [vmem:[%s4047_s15 + $0x50] sm:$0xff] %v2781_v27  }
 0x14d   : > { %3093 = vst [vmem:[%s4047_s15 + $0x70] sm:$0xff] %v2801_v28  }
 0x151   : > { %v621_v31 = vpop.f32.mrf.mxu2  ;;  %v641_v32 = vpop.f32.mrf.mxu3 }
 0x152   : > { %v583_v33 = vpop.f32.mrf.mxu0  ;;  %v603_v34 = vpop.f32.mrf.mxu1 }
 0x153   : > { %v2746_v35 = vpack.c.bf16 %v583_v33, %v581_v29  ;;  %v2766_v36 = vpack.c.bf16 %v603_v34, %v601_v30 }
 0x155   : > { %3082 = vst [vmem:[%s4047_s15 + $0x18] sm:$0xff] %v2746_v35  }
 0x156   : > { %3086 = vst [vmem:[%s4047_s15 + $0x38] sm:$0xff] %v2766_v36  }
 0x159   : > { %v623_v37 = vpop.f32.mrf.mxu2  ;;  %v643_v38 = vpop.f32.mrf.mxu3 }
 0x15a   : > { %v2786_v39 = vpack.c.bf16 %v623_v37, %v621_v31  ;;  %v2806_v40 = vpack.c.bf16 %v643_v38, %v641_v32 }
 0x15c   : > { %3090 = vst [vmem:[%s4047_s15 + $0x58] sm:$0xff] %v2786_v39  }
 0x15d   : > { %3094 = vst [vmem:[%s4047_s15 + $0x78] sm:$0xff] %v2806_v40  }
 0x15e PF: > { %s5249_s8 = sld [smem:[#allocation21_spill]] }
 0x164   : > { %p2584_p5 = scmp.ne.s32.totalorder %s5249_s8, 0 }
 0x166   : > { %716 = sbr.rel (%p2584_p5) target bundleno = 396 (0x18c), region = 80 }
 0x16b   : > { %v3729_v41 = vmov 0.0  }
 0x16c   : > { %717 = vst [vmem:[#allocation2 + $0xb0] sm:$0xff] %v3729_v41 }
 0x16d   : > { %718 = vst [vmem:[#allocation2] sm:$0xff] %v3729_v41 }
 0x16e   : > { %719 = vst [vmem:[#allocation2 + $0xd8] sm:$0xff] %v3729_v41 }
 0x16f   : > { %720 = vst [vmem:[#allocation2 + $0x18] sm:$0xff] %v3729_v41 }
 0x170   : > { %721 = vst [vmem:[#allocation2 + $0x50] sm:$0xff] %v3729_v41 }
 0x171   : > { %722 = vst [vmem:[#allocation2 + $0x68] sm:$0xff] %v3729_v41 }
 0x172   : > { %723 = vst [vmem:[#allocation2 + $0x30] sm:$0xff] %v3729_v41 }
 0x173   : > { %724 = vst [vmem:[#allocation2 + $0x48] sm:$0xff] %v3729_v41 }
 0x174   : > { %725 = vst [vmem:[#allocation2 + $0x80] sm:$0xff] %v3729_v41 }
 0x175   : > { %726 = vst [vmem:[#allocation2 + $0x88] sm:$0xff] %v3729_v41 }
 0x176   : > { %727 = vst [vmem:[#allocation2 + $0xe8] sm:$0xff] %v3729_v41 }
 0x177   : > { %728 = vst [vmem:[#allocation2 + $0xb8] sm:$0xff] %v3729_v41 }
 0x178   : > { %729 = vst [vmem:[#allocation2 + $0x60] sm:$0xff] %v3729_v41 }
 0x179   : > { %730 = vst [vmem:[#allocation2 + $0xf0] sm:$0xff] %v3729_v41 }
 0x17a   : > { %731 = vst [vmem:[#allocation2 + $0x8] sm:$0xff] %v3729_v41 }
 0x17b   : > { %732 = vst [vmem:[#allocation2 + $0x78] sm:$0xff] %v3729_v41 }
 0x17c   : > { %733 = vst [vmem:[#allocation2 + $0x38] sm:$0xff] %v3729_v41 }
 0x17d   : > { %734 = vst [vmem:[#allocation2 + $0x58] sm:$0xff] %v3729_v41 }
 0x17e   : > { %735 = vst [vmem:[#allocation2 + $0x40] sm:$0xff] %v3729_v41 }
 0x17f   : > { %736 = vst [vmem:[#allocation2 + $0xc8] sm:$0xff] %v3729_v41 }
 0x180   : > { %737 = vst [vmem:[#allocation2 + $0xe0] sm:$0xff] %v3729_v41 }
 0x181   : > { %738 = vst [vmem:[#allocation2 + $0x90] sm:$0xff] %v3729_v41 }
 0x182   : > { %739 = vst [vmem:[#allocation2 + $0x70] sm:$0xff] %v3729_v41 }
 0x183   : > { %740 = vst [vmem:[#allocation2 + $0xc0] sm:$0xff] %v3729_v41 }
 0x184   : > { %741 = vst [vmem:[#allocation2 + $0xa8] sm:$0xff] %v3729_v41 }
 0x185   : > { %742 = vst [vmem:[#allocation2 + $0xd0] sm:$0xff] %v3729_v41 }
 0x186   : > { %743 = vst [vmem:[#allocation2 + $0x10] sm:$0xff] %v3729_v41 }
 0x187   : > { %744 = vst [vmem:[#allocation2 + $0x28] sm:$0xff] %v3729_v41 }
 0x188   : > { %745 = vst [vmem:[#allocation2 + $0xa0] sm:$0xff] %v3729_v41 }
 0x189   : > { %746 = vst [vmem:[#allocation2 + $0xf8] sm:$0xff] %v3729_v41 }
 0x18a   : > { %747 = vst [vmem:[#allocation2 + $0x20] sm:$0xff] %v3729_v41 }
 0x18b   : > { %748 = vst [vmem:[#allocation2 + $0x98] sm:$0xff] %v3729_v41 }
 0x18c PF: > { %s877_s0 = sshra.s32 %s4000_s26, 3  ;;  %v781_v56 = vld [vmem:[%s3972_s11] sm:$0xff]  ;;  %v783_v58 = vld [vmem:[%s3972_s11 + $0x10] sm:$0xff]  ;;  %v782_v62 = vld [vmem:[%s3972_s11 + $0x8] sm:$0xff]  ;;  %s5250_s1 = sld [smem:[#allocation21_spill]] }
 0x18d   : > { %s2585_s3 = sshll.u32 %s877_s0, 2  ;;  %v813_v59 = vld [vmem:[%s3972_s11 + $0x100] sm:$0xff]  ;;  %v815_v61 = vld [vmem:[%s3972_s11 + $0x110] sm:$0xff]  ;;  %v784_v63 = vld [vmem:[%s3972_s11 + $0x18] sm:$0xff]  ;;  %v845_v2 = vpack.c.bf16 %v783_v58, %v781_v56 }
 0x18e   : > { %s4067_s12 = scalar_lea.vmem [#allocation3], %s2585_s3  ;;  %v814_v0 = vld [vmem:[%s3972_s11 + $0x108] sm:$0xff]  ;;  %v816_v1 = vld [vmem:[%s3972_s11 + $0x118] sm:$0xff]  ;;  %v861_v3 = vpack.c.bf16 %v815_v61, %v813_v59  ;;  %v846_v4 = vpack.c.bf16 %v784_v63, %v782_v62  ;;  %v785_v6 = vld [vmem:[%s3972_s11 + $0x20] sm:$0xff] }
 0x18f   : > { %v2711_v42 = vld [vmem:[%s4067_s12 + $0x38] sm:$0xff]  ;;  %v2710_v44 = vld [vmem:[%s4067_s12 + $0x30] sm:$0xff]  ;;  %v2709_v46 = vld [vmem:[%s4067_s12 + $0x28] sm:$0xff]  ;;  %v862_v5 = vpack.c.bf16 %v816_v1, %v814_v0 }
 0x190   : > { %v2719_v43 = vld [vmem:[%s4067_s12 + $0x78] sm:$0xff]  ;;  %1009 = vmatpush.bf16.msra.mxu0 %v2711_v42  ;;  %3179 = vmatpush.bf16.msra.mxu2 %v2711_v42  ;;  %v2718_v45 = vld [vmem:[%s4067_s12 + $0x70] sm:$0xff]  ;;  %v2717_v47 = vld [vmem:[%s4067_s12 + $0x68] sm:$0xff] }
 0x191   : > { %1098 = vmatpush.bf16.msra.mxu1 %v2719_v43  ;;  %3187 = vmatpush.bf16.msra.mxu3 %v2719_v43  ;;  %v2708_v48 = vld [vmem:[%s4067_s12 + $0x20] sm:$0xff]  ;;  %v2707_v50 = vld [vmem:[%s4067_s12 + $0x18] sm:$0xff]  ;;  %v2706_v52 = vld [vmem:[%s4067_s12 + $0x10] sm:$0xff] }
 0x192   : > { %v2716_v49 = vld [vmem:[%s4067_s12 + $0x60] sm:$0xff]  ;;  %v2715_v51 = vld [vmem:[%s4067_s12 + $0x58] sm:$0xff]  ;;  %v2714_v53 = vld [vmem:[%s4067_s12 + $0x50] sm:$0xff]  ;;  %p1251_p7 = scmp.eq.s32.totalorder %s5250_s1, 1  ;;  %p2650_p4 = scmp.ne.s32.totalorder %s5250_s1, 1 }
 0x193   : > { %v2705_v54 = vld [vmem:[%s4067_s12 + $0x8] sm:$0xff]  ;;  %v2704_v57 = vld [vmem:[%s4067_s12] sm:$0xff]  ;;  %v787_v7 = vld [vmem:[%s3972_s11 + $0x30] sm:$0xff]  ;;  %s5251_s19 = sld [smem:[#allocation53_spill]] (!%p2650_p4) }
 0x194   : > { %1010 = vmatpush.bf16.msra.mxu0 %v2710_v44  ;;  %3180 = vmatpush.bf16.msra.mxu2 %v2710_v44  ;;  %v2713_v55 = vld [vmem:[%s4067_s12 + $0x48] sm:$0xff]  ;;  %v2712_v60 = vld [vmem:[%s4067_s12 + $0x40] sm:$0xff]  ;;  %v819_v9 = vld [vmem:[%s3972_s11 + $0x130] sm:$0xff]  ;;  %v847_v14 = vpack.c.bf16 %v787_v7, %v785_v6  ;;  %s5252_s13 = sld [smem:[#allocation23_spill]] (!%p2650_p4) }
 0x195   : > { %1099 = vmatpush.bf16.msra.mxu1 %v2718_v45  ;;  %3188 = vmatpush.bf16.msra.mxu3 %v2718_v45  ;;  %v817_v8 = vld [vmem:[%s3972_s11 + $0x120] sm:$0xff]  ;;  %v786_v10 = vld [vmem:[%s3972_s11 + $0x28] sm:$0xff]  ;;  %v788_v11 = vld [vmem:[%s3972_s11 + $0x38] sm:$0xff]  ;;  %s5253_s21 = sld [smem:[#allocation22_spill]] (!%p2650_p4) }
 0x196   : > { %v818_v12 = vld [vmem:[%s3972_s11 + $0x128] sm:$0xff]  ;;  %v820_v13 = vld [vmem:[%s3972_s11 + $0x138] sm:$0xff]  ;;  %v863_v15 = vpack.c.bf16 %v819_v9, %v817_v8  ;;  %v848_v16 = vpack.c.bf16 %v788_v11, %v786_v10  ;;  %v789_v18 = vld [vmem:[%s3972_s11 + $0x40] sm:$0xff]  ;;  %s5255_s15 = sld [smem:[#allocation55_spill]] (!%p2650_p4) }
 0x197   : > { %v864_v17 = vpack.c.bf16 %v820_v13, %v818_v12  ;;  %v791_v19 = vld [vmem:[%s3972_s11 + $0x50] sm:$0xff]  ;;  %v821_v20 = vld [vmem:[%s3972_s11 + $0x140] sm:$0xff]  ;;  %v790_v22 = vld [vmem:[%s3972_s11 + $0x48] sm:$0xff] }
 0x198   : > { %1011 = vmatpush.bf16.msra.mxu0 %v2709_v46  ;;  %3181 = vmatpush.bf16.msra.mxu2 %v2709_v46  ;;  %v823_v21 = vld [vmem:[%s3972_s11 + $0x150] sm:$0xff]  ;;  %v792_v23 = vld [vmem:[%s3972_s11 + $0x58] sm:$0xff]  ;;  %v822_v24 = vld [vmem:[%s3972_s11 + $0x148] sm:$0xff]  ;;  %v849_v26 = vpack.c.bf16 %v791_v19, %v789_v18 }
 0x199   : > { %1100 = vmatpush.bf16.msra.mxu1 %v2717_v47  ;;  %3189 = vmatpush.bf16.msra.mxu3 %v2717_v47  ;;  %v824_v25 = vld [vmem:[%s3972_s11 + $0x158] sm:$0xff]  ;;  %v865_v27 = vpack.c.bf16 %v823_v21, %v821_v20  ;;  %v850_v28 = vpack.c.bf16 %v792_v23, %v790_v22  ;;  %v793_v30 = vld [vmem:[%s3972_s11 + $0x60] sm:$0xff]  ;;  %v795_v31 = vld [vmem:[%s3972_s11 + $0x70] sm:$0xff] }
 0x19a   : > { %v866_v29 = vpack.c.bf16 %v824_v25, %v822_v24  ;;  %v825_v32 = vld [vmem:[%s3972_s11 + $0x160] sm:$0xff]  ;;  %v827_v33 = vld [vmem:[%s3972_s11 + $0x170] sm:$0xff]  ;;  %v794_v34 = vld [vmem:[%s3972_s11 + $0x68] sm:$0xff]  ;;  %v851_v38 = vpack.c.bf16 %v795_v31, %v793_v30  ;;  %s1323_s27 = sld [smem:[#allocation13 + %s5252_s13]] (!%p2650_p4)  ;;  %s2651_s22 = sshll.u32 (!%p2650_p4), %s5252_s13, 9 }
 0x19b   : > { %v796_v35 = vld [vmem:[%s3972_s11 + $0x78] sm:$0xff]  ;;  %v826_v36 = vld [vmem:[%s3972_s11 + $0x168] sm:$0xff]  ;;  %v867_v39 = vpack.c.bf16 %v827_v33, %v825_v32  ;;  %v797_v42 = vld [vmem:[%s3972_s11 + $0x80] sm:$0xff]  ;;  %s2652_s23 = sshll.u32 (!%p2650_p4), %s5253_s21, 8 }
 0x19c   : > { %1012 = vmatpush.bf16.msra.mxu0 %v2708_v48  ;;  %3182 = vmatpush.bf16.msra.mxu2 %v2708_v48  ;;  %v828_v37 = vld [vmem:[%s3972_s11 + $0x178] sm:$0xff]  ;;  %v852_v40 = vpack.c.bf16 %v796_v35, %v794_v34  ;;  %v799_v43 = vld [vmem:[%s3972_s11 + $0x90] sm:$0xff]  ;;  %v829_v44 = vld [vmem:[%s3972_s11 + $0x180] sm:$0xff]  ;;  %s1423_s20 = sadd.s32 (!%p2650_p4), %s2652_s23, %s2651_s22 }
 0x19d   : > { %1101 = vmatpush.bf16.msra.mxu1 %v2716_v49  ;;  %3190 = vmatpush.bf16.msra.mxu3 %v2716_v49  ;;  %v868_v41 = vpack.c.bf16 %v828_v37, %v826_v36  ;;  %v831_v45 = vld [vmem:[%s3972_s11 + $0x190] sm:$0xff]  ;;  %v798_v46 = vld [vmem:[%s3972_s11 + $0x88] sm:$0xff]  ;;  %v800_v47 = vld [vmem:[%s3972_s11 + $0x98] sm:$0xff]  ;;  %s1456_s4 = sshra.s32 (!%p2650_p4), %s1423_s20, 3  ;;  %s5254_s20 = sld [smem:[#allocation54_spill]] (!%p2650_p4) }
 0x19e   : > { %v830_v48 = vld [vmem:[%s3972_s11 + $0x188] sm:$0xff]  ;;  %v832_v49 = vld [vmem:[%s3972_s11 + $0x198] sm:$0xff]  ;;  %v833_v56 = vld [vmem:[%s3972_s11 + $0x1a0] sm:$0xff] }
 0x19f   : > { %v802_v58 = vld [vmem:[%s3972_s11 + $0xa8] sm:$0xff]  ;;  %v804_v59 = vld [vmem:[%s3972_s11 + $0xb8] sm:$0xff] }
 0x1a0   : > { %1013 = vmatpush.bf16.msra.mxu0 %v2707_v50  ;;  %3183 = vmatpush.bf16.msra.mxu2 %v2707_v50  ;;  %v853_v50 = vpack.c.bf16 %v799_v43, %v797_v42  ;;  %v836_v61 = vld [vmem:[%s3972_s11 + $0x1b8] sm:$0xff]  ;;  %v856_v0 = vpack.c.bf16 %v804_v59, %v802_v58  ;;  %v806_v6 = vld [vmem:[%s3972_s11 + $0xc8] sm:$0xff] }
 0x1a1   : > { %1102 = vmatpush.bf16.msra.mxu1 %v2715_v51  ;;  %3191 = vmatpush.bf16.msra.mxu3 %v2715_v51  ;;  %v869_v51 = vpack.c.bf16 %v831_v45, %v829_v44  ;;  %v808_v7 = vld [vmem:[%s3972_s11 + $0xd8] sm:$0xff]  ;;  %v838_v8 = vld [vmem:[%s3972_s11 + $0x1c8] sm:$0xff] }
 0x1a2   : > { %v840_v9 = vld [vmem:[%s3972_s11 + $0x1d8] sm:$0xff]  ;;  %v858_v12 = vpack.c.bf16 %v808_v7, %v806_v6  ;;  %v810_v18 = vld [vmem:[%s3972_s11 + $0xe8] sm:$0xff] }
 0x1a3   : > { %v874_v13 = vpack.c.bf16 %v840_v9, %v838_v8  ;;  %v812_v19 = vld [vmem:[%s3972_s11 + $0xf8] sm:$0xff]  ;;  %v842_v20 = vld [vmem:[%s3972_s11 + $0x1e8] sm:$0xff] }
 0x1a4   : > { %1014 = vmatpush.bf16.msra.mxu0 %v2706_v52  ;;  %3184 = vmatpush.bf16.msra.mxu2 %v2706_v52  ;;  %v854_v52 = vpack.c.bf16 %v800_v47, %v798_v46  ;;  %v844_v21 = vld [vmem:[%s3972_s11 + $0x1f8] sm:$0xff]  ;;  %v860_v24 = vpack.c.bf16 %v812_v19, %v810_v18  ;;  %v770_v18 = vld [vmem:[#allocation2 + $0x90] sm:$0xff] }
 0x1a5   : > { %1103 = vmatpush.bf16.msra.mxu1 %v2714_v53  ;;  %3192 = vmatpush.bf16.msra.mxu3 %v2714_v53  ;;  %v870_v53 = vpack.c.bf16 %v832_v49, %v830_v48  ;;  %v876_v25 = vpack.c.bf16 %v844_v21, %v842_v20  ;;  %v765_v32 = vld [vmem:[#allocation2 + $0x38] sm:$0xff]  ;;  %v750_v36 = vld [vmem:[#allocation2] sm:$0xff] }
 0x1a6   : > { %v766_v42 = vld [vmem:[#allocation2 + $0x58] sm:$0xff]  ;;  %v769_v8 = vld [vmem:[#allocation2 + $0xe0] sm:$0xff] }
 0x1a7   : > { %v751_v46 = vld [vmem:[#allocation2 + $0xd8] sm:$0xff] }
 0x1a8   : > { %1015 = vmatpush.bf16.msra.mxu0 %v2705_v54  ;;  %3185 = vmatpush.bf16.msra.mxu2 %v2705_v54  ;;  %v801_v54 = vld [vmem:[%s3972_s11 + $0xa0] sm:$0xff] }
 0x1a9   : > { %1104 = vmatpush.bf16.msra.mxu1 %v2713_v55  ;;  %3193 = vmatpush.bf16.msra.mxu3 %v2713_v55  ;;  %v803_v55 = vld [vmem:[%s3972_s11 + $0xb0] sm:$0xff] }
 0x1aa   : > { %v855_v62 = vpack.c.bf16 %v803_v55, %v801_v54 }
 0x1ac   : > { %1016 = vmatpush.bf16.msra.mxu0 %v2704_v57  ;;  %3186 = vmatpush.bf16.msra.mxu2 %v2704_v57  ;;  %v835_v57 = vld [vmem:[%s3972_s11 + $0x1b0] sm:$0xff] }
 0x1ad   : > { %1105 = vmatpush.bf16.msra.mxu1 %v2712_v60  ;;  %3194 = vmatpush.bf16.msra.mxu3 %v2712_v60  ;;  %v834_v60 = vld [vmem:[%s3972_s11 + $0x1a8] sm:$0xff]  ;;  %v871_v63 = vpack.c.bf16 %v835_v57, %v833_v56  ;;  %v752_v56 = vld [vmem:[#allocation2 + $0x18] sm:$0xff] }
 0x1ae   : > { %v872_v1 = vpack.c.bf16 %v836_v61, %v834_v60 }
 0x1af   : > { %1017 = vmatmul.bf16.vlgmr.msra.gmra.mxu0 %v845_v2  ;;  %1057 = vmatmul.bf16.vlgmr.msra.gmra.mxu2 %v861_v3  ;;  %v805_v2 = vld [vmem:[%s3972_s11 + $0xc0] sm:$0xff]  ;;  %v807_v3 = vld [vmem:[%s3972_s11 + $0xd0] sm:$0xff] }
 0x1b0   : > { %1106 = vmatmul.bf16.vlgmr.msra.gmra.mxu1 %v846_v4  ;;  %1146 = vmatmul.bf16.vlgmr.msra.gmra.mxu3 %v862_v5  ;;  %v837_v4 = vld [vmem:[%s3972_s11 + $0x1c0] sm:$0xff]  ;;  %v839_v5 = vld [vmem:[%s3972_s11 + $0x1d0] sm:$0xff]  ;;  %v857_v10 = vpack.c.bf16 %v807_v3, %v805_v2 }
 0x1b1   : > { %v873_v11 = vpack.c.bf16 %v839_v5, %v837_v4  ;;  %v753_v2 = vld [vmem:[#allocation2 + $0x50] sm:$0xff] }
 0x1bf   : > { %1022 = vmatmul.bf16.gmra.mxu0 %v847_v14  ;;  %1062 = vmatmul.bf16.gmra.mxu2 %v863_v15  ;;  %v809_v14 = vld [vmem:[%s3972_s11 + $0xe0] sm:$0xff]  ;;  %v811_v15 = vld [vmem:[%s3972_s11 + $0xf0] sm:$0xff] }
 0x1c0   : > { %1111 = vmatmul.bf16.gmra.mxu1 %v848_v16  ;;  %1151 = vmatmul.bf16.gmra.mxu3 %v864_v17  ;;  %v841_v16 = vld [vmem:[%s3972_s11 + $0x1e0] sm:$0xff]  ;;  %v843_v17 = vld [vmem:[%s3972_s11 + $0x1f0] sm:$0xff]  ;;  %v859_v22 = vpack.c.bf16 %v811_v15, %v809_v14 }
 0x1c1   : > { %v875_v23 = vpack.c.bf16 %v843_v17, %v841_v16 }
 0x1cf   : > { %1027 = vmatmul.bf16.gmra.mxu0 %v849_v26  ;;  %1067 = vmatmul.bf16.gmra.mxu2 %v865_v27  ;;  %v749_v27 = vld [vmem:[#allocation2 + $0xb0] sm:$0xff] }
 0x1d0   : > { %1116 = vmatmul.bf16.gmra.mxu1 %v850_v28  ;;  %1156 = vmatmul.bf16.gmra.mxu3 %v866_v29 }
 0x1df   : > { %1032 = vmatmul.bf16.gmra.mxu0 %v851_v38  ;;  %1072 = vmatmul.bf16.gmra.mxu2 %v867_v39 }
 0x1e0   : > { %1121 = vmatmul.bf16.gmra.mxu1 %v852_v40  ;;  %1161 = vmatmul.bf16.gmra.mxu3 %v868_v41 }
 0x1ef   : > { %1037 = vmatmul.bf16.gmra.mxu0 %v853_v50  ;;  %1077 = vmatmul.bf16.gmra.mxu2 %v869_v51 }
 0x1f0   : > { %1126 = vmatmul.bf16.gmra.mxu1 %v854_v52  ;;  %1166 = vmatmul.bf16.gmra.mxu3 %v870_v53  ;;  %v767_v52 = vld [vmem:[#allocation2 + $0x40] sm:$0xff] }
 0x1ff   : > { %1042 = vmatmul.bf16.gmra.mxu0 %v855_v62  ;;  %1082 = vmatmul.bf16.gmra.mxu2 %v871_v63  ;;  %v768_v62 = vld [vmem:[#allocation2 + $0xc8] sm:$0xff] }
 0x200   : > { %1131 = vmatmul.bf16.gmra.mxu1 %v856_v0  ;;  %1171 = vmatmul.bf16.gmra.mxu3 %v872_v1 }
 0x20f   : > { %1047 = vmatmul.bf16.gmra.mxu0 %v857_v10  ;;  %1087 = vmatmul.bf16.gmra.mxu2 %v873_v11 }
 0x210   : > { %1136 = vmatmul.bf16.gmra.mxu1 %v858_v12  ;;  %1176 = vmatmul.bf16.gmra.mxu3 %v874_v13  ;;  %v754_v12 = vld [vmem:[#allocation2 + $0x68] sm:$0xff] }
 0x21f   : > { %1052 = vmatmul.bf16.gmra.mxu0 %v859_v22  ;;  %1092 = vmatmul.bf16.gmra.mxu2 %v875_v23  ;;  %v755_v22 = vld [vmem:[#allocation2 + $0x30] sm:$0xff] }
 0x220   : > { %1141 = vmatmul.bf16.gmra.mxu1 %v860_v24  ;;  %1181 = vmatmul.bf16.gmra.mxu3 %v876_v25 }
 0x22c   : > { %v1018_v26 = vpop.f32.mrf.mxu0 }
 0x22d   : > { %v1107_v28 = vpop.f32.mrf.mxu1 }
 0x22e   : > { %v1108_v29 = vadd.f32 %v1107_v28, %v1018_v26  ;;  %v771_v28 = vld [vmem:[#allocation2 + $0x70] sm:$0xff] }
 0x230   : > { %v1187_v30 = vadd.f32 %v1108_v29, %v749_v27 }
 0x232   : > { %1219 = vst [vmem:[#allocation2 + $0xb0] sm:$0xff] %v1187_v30  ;;  %v1058_v31 = vpop.f32.mrf.mxu2 }
 0x233   : > { %v1147_v33 = vpop.f32.mrf.mxu3 }
 0x234   : > { %v1148_v34 = vadd.f32 %v1147_v33, %v1058_v31  ;;  %v1020_v35 = vpop.f32.mrf.mxu0 }
 0x235   : > { %v1109_v37 = vpop.f32.mrf.mxu1 }
 0x236   : > { %v1203_v38 = vadd.f32 %v1148_v34, %v765_v32  ;;  %v1110_v39 = vadd.f32 %v1109_v37, %v1020_v35  ;;  %v756_v32 = vld [vmem:[#allocation2 + $0x48] sm:$0xff] }
 0x238   : > { %1235 = vst [vmem:[#allocation2 + $0x38] sm:$0xff] %v1203_v38  ;;  %v1188_v40 = vadd.f32 %v1110_v39, %v750_v36  ;;  %v772_v38 = vld [vmem:[#allocation2 + $0xc0] sm:$0xff] }
 0x23a   : > { %1220 = vst [vmem:[#allocation2] sm:$0xff] %v1188_v40  ;;  %v1060_v41 = vpop.f32.mrf.mxu2 }
 0x23b   : > { %v1149_v43 = vpop.f32.mrf.mxu3 }
 0x23c   : > { %v1150_v44 = vadd.f32 %v1149_v43, %v1060_v41  ;;  %v1023_v45 = vpop.f32.mrf.mxu0 }
 0x23d   : > { %v1112_v47 = vpop.f32.mrf.mxu1 }
 0x23e   : > { %v1204_v48 = vadd.f32 %v1150_v44, %v766_v42  ;;  %v1113_v49 = vadd.f32 %v1112_v47, %v1023_v45  ;;  %v757_v42 = vld [vmem:[#allocation2 + $0x80] sm:$0xff] }
 0x240   : > { %1236 = vst [vmem:[#allocation2 + $0x58] sm:$0xff] %v1204_v48  ;;  %v1189_v50 = vadd.f32 %v1113_v49, %v751_v46  ;;  %v773_v48 = vld [vmem:[#allocation2 + $0xa8] sm:$0xff] }
 0x242   : > { %1221 = vst [vmem:[#allocation2 + $0xd8] sm:$0xff] %v1189_v50  ;;  %v1063_v51 = vpop.f32.mrf.mxu2 }
 0x243   : > { %v1152_v53 = vpop.f32.mrf.mxu3 }
 0x244   : > { %v1153_v54 = vadd.f32 %v1152_v53, %v1063_v51  ;;  %v1025_v55 = vpop.f32.mrf.mxu0 }
 0x245   : > { %v1114_v57 = vpop.f32.mrf.mxu1 }
 0x246   : > { %v1205_v58 = vadd.f32 %v1153_v54, %v767_v52  ;;  %v1115_v59 = vadd.f32 %v1114_v57, %v1025_v55  ;;  %v758_v52 = vld [vmem:[#allocation2 + $0x88] sm:$0xff] }
 0x248   : > { %1237 = vst [vmem:[#allocation2 + $0x40] sm:$0xff] %v1205_v58  ;;  %v1190_v60 = vadd.f32 %v1115_v59, %v752_v56  ;;  %v774_v58 = vld [vmem:[#allocation2 + $0xd0] sm:$0xff] }
 0x24a   : > { %1222 = vst [vmem:[#allocation2 + $0x18] sm:$0xff] %v1190_v60  ;;  %v1065_v61 = vpop.f32.mrf.mxu2 }
 0x24b   : > { %v1154_v63 = vpop.f32.mrf.mxu3 }
 0x24c   : > { %v1155_v0 = vadd.f32 %v1154_v63, %v1065_v61  ;;  %v1028_v1 = vpop.f32.mrf.mxu0 }
 0x24d   : > { %v1117_v3 = vpop.f32.mrf.mxu1 }
 0x24e   : > { %v1206_v4 = vadd.f32 %v1155_v0, %v768_v62  ;;  %v1118_v5 = vadd.f32 %v1117_v3, %v1028_v1  ;;  %v759_v62 = vld [vmem:[#allocation2 + $0xe8] sm:$0xff] }
 0x250   : > { %1238 = vst [vmem:[#allocation2 + $0xc8] sm:$0xff] %v1206_v4  ;;  %v1191_v6 = vadd.f32 %v1118_v5, %v753_v2  ;;  %v775_v4 = vld [vmem:[#allocation2 + $0x10] sm:$0xff] }
 0x252   : > { %1223 = vst [vmem:[#allocation2 + $0x50] sm:$0xff] %v1191_v6  ;;  %v1068_v7 = vpop.f32.mrf.mxu2 }
 0x253   : > { %v1157_v9 = vpop.f32.mrf.mxu3 }
 0x254   : > { %v1158_v10 = vadd.f32 %v1157_v9, %v1068_v7  ;;  %v1030_v11 = vpop.f32.mrf.mxu0 }
 0x255   : > { %v1119_v13 = vpop.f32.mrf.mxu1 }
 0x256   : > { %v1207_v14 = vadd.f32 %v1158_v10, %v769_v8  ;;  %v1120_v15 = vadd.f32 %v1119_v13, %v1030_v11  ;;  %v760_v8 = vld [vmem:[#allocation2 + $0xb8] sm:$0xff] }
 0x258   : > { %1239 = vst [vmem:[#allocation2 + $0xe0] sm:$0xff] %v1207_v14  ;;  %v1192_v16 = vadd.f32 %v1120_v15, %v754_v12  ;;  %v776_v14 = vld [vmem:[#allocation2 + $0x28] sm:$0xff] }
 0x25a   : > { %1224 = vst [vmem:[#allocation2 + $0x68] sm:$0xff] %v1192_v16  ;;  %v1070_v17 = vpop.f32.mrf.mxu2 }
 0x25b   : > { %v1159_v19 = vpop.f32.mrf.mxu3 }
 0x25c   : > { %v1160_v20 = vadd.f32 %v1159_v19, %v1070_v17  ;;  %v1033_v21 = vpop.f32.mrf.mxu0 }
 0x25d   : > { %v1122_v23 = vpop.f32.mrf.mxu1 }
 0x25e   : > { %v1208_v24 = vadd.f32 %v1160_v20, %v770_v18  ;;  %v1123_v25 = vadd.f32 %v1122_v23, %v1033_v21  ;;  %v761_v18 = vld [vmem:[#allocation2 + $0x60] sm:$0xff] }
 0x260   : > { %1240 = vst [vmem:[#allocation2 + $0x90] sm:$0xff] %v1208_v24  ;;  %v1193_v26 = vadd.f32 %v1123_v25, %v755_v22  ;;  %v777_v24 = vld [vmem:[#allocation2 + $0xa0] sm:$0xff] }
 0x262   : > { %1225 = vst [vmem:[#allocation2 + $0x30] sm:$0xff] %v1193_v26  ;;  %v1073_v27 = vpop.f32.mrf.mxu2 }
 0x263   : > { %v1162_v29 = vpop.f32.mrf.mxu3 }
 0x264   : > { %v1163_v30 = vadd.f32 %v1162_v29, %v1073_v27  ;;  %v1035_v31 = vpop.f32.mrf.mxu0 }
 0x265   : > { %v1124_v33 = vpop.f32.mrf.mxu1 }
 0x266   : > { %v1209_v34 = vadd.f32 %v1163_v30, %v771_v28  ;;  %v1125_v35 = vadd.f32 %v1124_v33, %v1035_v31  ;;  %v762_v28 = vld [vmem:[#allocation2 + $0xf0] sm:$0xff] }
 0x268   : > { %1241 = vst [vmem:[#allocation2 + $0x70] sm:$0xff] %v1209_v34  ;;  %v1194_v36 = vadd.f32 %v1125_v35, %v756_v32  ;;  %v778_v34 = vld [vmem:[#allocation2 + $0xf8] sm:$0xff] }
 0x26a   : > { %1226 = vst [vmem:[#allocation2 + $0x48] sm:$0xff] %v1194_v36  ;;  %v1075_v37 = vpop.f32.mrf.mxu2 }
 0x26b   : > { %v1164_v39 = vpop.f32.mrf.mxu3 }
 0x26c   : > { %v1165_v40 = vadd.f32 %v1164_v39, %v1075_v37  ;;  %v1038_v41 = vpop.f32.mrf.mxu0 }
 0x26d   : > { %v1127_v43 = vpop.f32.mrf.mxu1 }
 0x26e   : > { %v1210_v44 = vadd.f32 %v1165_v40, %v772_v38  ;;  %v1128_v45 = vadd.f32 %v1127_v43, %v1038_v41  ;;  %v763_v38 = vld [vmem:[#allocation2 + $0x8] sm:$0xff] }
 0x270   : > { %1242 = vst [vmem:[#allocation2 + $0xc0] sm:$0xff] %v1210_v44  ;;  %v1195_v46 = vadd.f32 %v1128_v45, %v757_v42  ;;  %v779_v44 = vld [vmem:[#allocation2 + $0x20] sm:$0xff] }
 0x272   : > { %1227 = vst [vmem:[#allocation2 + $0x80] sm:$0xff] %v1195_v46  ;;  %v1078_v47 = vpop.f32.mrf.mxu2 }
 0x273   : > { %v1167_v49 = vpop.f32.mrf.mxu3 }
 0x274   : > { %v1168_v50 = vadd.f32 %v1167_v49, %v1078_v47  ;;  %v1040_v51 = vpop.f32.mrf.mxu0 }
 0x275   : > { %v1129_v53 = vpop.f32.mrf.mxu1 }
 0x276   : > { %v1211_v54 = vadd.f32 %v1168_v50, %v773_v48  ;;  %v1130_v55 = vadd.f32 %v1129_v53, %v1040_v51  ;;  %v764_v48 = vld [vmem:[#allocation2 + $0x78] sm:$0xff] }
 0x278   : > { %1243 = vst [vmem:[#allocation2 + $0xa8] sm:$0xff] %v1211_v54  ;;  %v1196_v56 = vadd.f32 %v1130_v55, %v758_v52  ;;  %v780_v54 = vld [vmem:[#allocation2 + $0x98] sm:$0xff] }
 0x27a   : > { %1228 = vst [vmem:[#allocation2 + $0x88] sm:$0xff] %v1196_v56  ;;  %v1080_v57 = vpop.f32.mrf.mxu2 }
 0x27b   : > { %v1169_v59 = vpop.f32.mrf.mxu3 }
 0x27c   : > { %v1170_v60 = vadd.f32 %v1169_v59, %v1080_v57  ;;  %v1043_v61 = vpop.f32.mrf.mxu0 }
 0x27d   : > { %v1132_v63 = vpop.f32.mrf.mxu1 }
 0x27e   : > { %v1212_v0 = vadd.f32 %v1170_v60, %v774_v58  ;;  %v1133_v1 = vadd.f32 %v1132_v63, %v1043_v61 }
 0x280   : > { %1244 = vst [vmem:[#allocation2 + $0xd0] sm:$0xff] %v1212_v0  ;;  %v1197_v2 = vadd.f32 %v1133_v1, %v759_v62 }
 0x282   : > { %1229 = vst [vmem:[#allocation2 + $0xe8] sm:$0xff] %v1197_v2  ;;  %v1083_v3 = vpop.f32.mrf.mxu2 }
 0x283   : > { %v1172_v5 = vpop.f32.mrf.mxu3 }
 0x284   : > { %v1173_v6 = vadd.f32 %v1172_v5, %v1083_v3  ;;  %v1045_v7 = vpop.f32.mrf.mxu0 }
 0x285   : > { %v1134_v9 = vpop.f32.mrf.mxu1 }
 0x286   : > { %v1213_v10 = vadd.f32 %v1173_v6, %v775_v4  ;;  %v1135_v11 = vadd.f32 %v1134_v9, %v1045_v7 }
 0x288   : > { %1245 = vst [vmem:[#allocation2 + $0x10] sm:$0xff] %v1213_v10  ;;  %v1198_v12 = vadd.f32 %v1135_v11, %v760_v8 }
 0x28a   : > { %1230 = vst [vmem:[#allocation2 + $0xb8] sm:$0xff] %v1198_v12  ;;  %v1085_v13 = vpop.f32.mrf.mxu2 }
 0x28b   : > { %v1174_v15 = vpop.f32.mrf.mxu3 }
 0x28c   : > { %v1175_v16 = vadd.f32 %v1174_v15, %v1085_v13  ;;  %v1048_v17 = vpop.f32.mrf.mxu0 }
 0x28d   : > { %v1137_v19 = vpop.f32.mrf.mxu1 }
 0x28e   : > { %v1214_v20 = vadd.f32 %v1175_v16, %v776_v14  ;;  %v1138_v21 = vadd.f32 %v1137_v19, %v1048_v17 }
 0x290   : > { %1246 = vst [vmem:[#allocation2 + $0x28] sm:$0xff] %v1214_v20  ;;  %v1199_v22 = vadd.f32 %v1138_v21, %v761_v18 }
 0x292   : > { %1231 = vst [vmem:[#allocation2 + $0x60] sm:$0xff] %v1199_v22  ;;  %v1088_v23 = vpop.f32.mrf.mxu2 }
 0x293   : > { %v1177_v25 = vpop.f32.mrf.mxu3 }
 0x294   : > { %v1178_v26 = vadd.f32 %v1177_v25, %v1088_v23  ;;  %v1050_v27 = vpop.f32.mrf.mxu0 }
 0x295   : > { %v1139_v29 = vpop.f32.mrf.mxu1 }
 0x296   : > { %v1215_v30 = vadd.f32 %v1178_v26, %v777_v24  ;;  %v1140_v31 = vadd.f32 %v1139_v29, %v1050_v27 }
 0x298   : > { %1247 = vst [vmem:[#allocation2 + $0xa0] sm:$0xff] %v1215_v30  ;;  %v1200_v32 = vadd.f32 %v1140_v31, %v762_v28 }
 0x29a   : > { %1232 = vst [vmem:[#allocation2 + $0xf0] sm:$0xff] %v1200_v32  ;;  %v1090_v33 = vpop.f32.mrf.mxu2 }
 0x29b   : > { %v1179_v35 = vpop.f32.mrf.mxu3 }
 0x29c   : > { %v1180_v36 = vadd.f32 %v1179_v35, %v1090_v33  ;;  %v1053_v37 = vpop.f32.mrf.mxu0 }
 0x29d   : > { %v1142_v39 = vpop.f32.mrf.mxu1 }
 0x29e   : > { %v1216_v40 = vadd.f32 %v1180_v36, %v778_v34  ;;  %v1143_v41 = vadd.f32 %v1142_v39, %v1053_v37 }
 0x2a0   : > { %1248 = vst [vmem:[#allocation2 + $0xf8] sm:$0xff] %v1216_v40  ;;  %v1201_v42 = vadd.f32 %v1143_v41, %v763_v38 }
 0x2a2   : > { %1233 = vst [vmem:[#allocation2 + $0x8] sm:$0xff] %v1201_v42  ;;  %v1093_v43 = vpop.f32.mrf.mxu2 }
 0x2a3   : > { %v1182_v45 = vpop.f32.mrf.mxu3 }
 0x2a4   : > { %v1183_v46 = vadd.f32 %v1182_v45, %v1093_v43  ;;  %v1055_v47 = vpop.f32.mrf.mxu0 }
 0x2a5   : > { %v1144_v49 = vpop.f32.mrf.mxu1 }
 0x2a6   : > { %v1217_v50 = vadd.f32 %v1183_v46, %v779_v44  ;;  %v1145_v51 = vadd.f32 %v1144_v49, %v1055_v47 }
 0x2a8   : > { %1249 = vst [vmem:[#allocation2 + $0x20] sm:$0xff] %v1217_v50  ;;  %v1202_v52 = vadd.f32 %v1145_v51, %v764_v48 }
 0x2aa   : > { %1234 = vst [vmem:[#allocation2 + $0x78] sm:$0xff] %v1202_v52  ;;  %v1095_v53 = vpop.f32.mrf.mxu2 }
 0x2ab   : > { %v1184_v55 = vpop.f32.mrf.mxu3 }
 0x2ac   : > { %v1185_v56 = vadd.f32 %v1184_v55, %v1095_v53  ;;  %1254 = sbr.rel (%p2650_p4) target bundleno = 1095 (0x447), region = 84 }
 0x2ae   : > { %v1218_v57 = vadd.f32 %v1185_v56, %v780_v54 }
 0x2b0   : > { %1250 = vst [vmem:[#allocation2 + $0x98] sm:$0xff] %v1218_v57 }
 0x2b1   : > { %v2727_v58 = vld [vmem:[%s5251_s19 + $0x38] sm:$0xff]  ;;  %v2726_v59 = vld [vmem:[%s5251_s19 + $0x30] sm:$0xff]  ;;  %v1256_v61 = vld [vmem:[#allocation2] sm:$0xff]  ;;  %v4170_v8 = vstv %s1323_s27 }
 0x2b2   : > { %1655 = vmatpush.bf16.msra.mxu0 %v2727_v58  ;;  %3195 = vmatpush.bf16.msra.mxu1 %v2727_v58  ;;  %v1255_v60 = vld [vmem:[#allocation2 + $0xb0] sm:$0xff]  ;;  %v4161_v62 = vld [vmem:[%s3979_s28] ss:$0 sm:$0xff]  ;;  %v1264_v0 = vld [vmem:[#allocation2 + $0x88] sm:$0xff]  ;;  %s2653_s28 = sshll.u32 %s1456_s4, 2 }
 0x2b3   : > { %3196 = vmatpush.bf16.msra.mxu2 %v2727_v58  ;;  %3197 = vmatpush.bf16.msra.mxu3 %v2727_v58  ;;  %v1263_v63 = vld [vmem:[#allocation2 + $0x80] sm:$0xff]  ;;  %v1271_v1 = vld [vmem:[#allocation2 + $0x38] sm:$0xff]  ;;  %v1291_v2 = vadd.f32 %v4161_v62, %v1255_v60  ;;  %v1292_v3 = vadd.f32 %v4161_v62, %v1256_v61  ;;  %v1300_v5 = vadd.f32 %v4161_v62, %v1264_v0  ;;  %v2725_v7 = vld [vmem:[%s5251_s19 + $0x28] sm:$0xff]  ;;  %s4190_s3 = scalar_lea.vmem [#allocation4], %s2653_s28  ;;  %s1875_s28 = scalar_lea.vmem [#allocation5], %s5252_s13 }
 0x2b4   : > { %v1299_v4 = vadd.f32 %v4161_v62, %v1263_v63  ;;  %v1272_v6 = vld [vmem:[#allocation2 + $0x58] sm:$0xff]  ;;  %v1307_v9 = vadd.f32 %v4161_v62, %v1271_v1  ;;  %v2724_v18 = vld [vmem:[%s5251_s19 + $0x20] sm:$0xff]  ;;  %v1265_v28 = vld [vmem:[#allocation2 + $0xe8] sm:$0xff] }
 0x2b5   : > { %v1308_v10 = vadd.f32 %v4161_v62, %v1272_v6  ;;  %vm1324_vm1 = vcmp.ge.f32.partialorder %v1291_v2, 0.0  ;;  %vm1325_vm2 = vcmp.ge.f32.partialorder %v1292_v3, 0.0  ;;  %v1357_v11 = vmul.f32 %v4170_v8, %v1291_v2  ;;  %v1257_v13 = vld [vmem:[#allocation2 + $0xd8] sm:$0xff]  ;;  %v1273_v35 = vld [vmem:[#allocation2 + $0x40] sm:$0xff]  ;;  %v1274_v40 = vld [vmem:[#allocation2 + $0xc8] sm:$0xff] }
 0x2b6   : > { %1656 = vmatpush.bf16.msra.mxu0 %v2726_v59  ;;  %3198 = vmatpush.bf16.msra.mxu1 %v2726_v59  ;;  %v1358_v12 = vmul.f32 %v4170_v8, %v1292_v3  ;;  %v1365_v14 = vmul.f32 %v4170_v8, %v1299_v4  ;;  %v1366_v15 = vmul.f32 %v4170_v8, %v1300_v5  ;;  %vm1332_vm3 = vcmp.ge.f32.partialorder %v1299_v4, 0.0  ;;  %v1258_v20 = vld [vmem:[#allocation2 + $0x18] sm:$0xff]  ;;  %v2722_v42 = vld [vmem:[%s5251_s19 + $0x10] sm:$0xff]  ;;  %v1260_v57 = vld [vmem:[#allocation2 + $0x68] sm:$0xff] }
 0x2b7   : > { %3199 = vmatpush.bf16.msra.mxu2 %v2726_v59  ;;  %3200 = vmatpush.bf16.msra.mxu3 %v2726_v59  ;;  %v4178_v16 = vsel %vm1324_vm1, %v1291_v2, %v1357_v11  ;;  %vm1333_vm4 = vcmp.ge.f32.partialorder %v1300_v5, 0.0  ;;  %v1293_v21 = vadd.f32 %v4161_v62, %v1257_v13  ;;  %vm1340_vm5 = vcmp.ge.f32.partialorder %v1307_v9, 0.0  ;;  %v2723_v29 = vld [vmem:[%s5251_s19 + $0x18] sm:$0xff]  ;;  %v1259_v49 = vld [vmem:[#allocation2 + $0x50] sm:$0xff]  ;;  %v2721_v58 = vld [vmem:[%s5251_s19 + $0x8] sm:$0xff] }
 0x2b8   : > { %v4180_v17 = vsel %vm1325_vm2, %v1292_v3, %v1358_v12  ;;  %vm1341_vm6 = vcmp.ge.f32.partialorder %v1308_v10, 0.0  ;;  %v1373_v22 = vmul.f32 %v4170_v8, %v1307_v9  ;;  %v1374_v23 = vmul.f32 %v4170_v8, %v1308_v10  ;;  %v1266_v32 = vld [vmem:[#allocation2 + $0xb8] sm:$0xff]  ;;  %v1267_v3 = vld [vmem:[#allocation2 + $0x60] sm:$0xff] }
 0x2b9   : > { %v2811_v19 = vpack.c.bf16 %v4180_v17, %v4178_v16  ;;  %v1397_v24 = vsel %vm1332_vm3, %v1299_v4, %v1365_v14  ;;  %v4193_v25 = vsel %vm1333_vm4, %v1300_v5, %v1366_v15  ;;  %v1294_v27 = vadd.f32 %v4161_v62, %v1258_v20  ;;  %v2720_v13 = vld [vmem:[%s5251_s19] sm:$0xff] }
 0x2ba   : > { %1657 = vmatpush.bf16.msra.mxu0 %v2725_v7  ;;  %3201 = vmatpush.bf16.msra.mxu1 %v2725_v7  ;;  %v2831_v26 = vpack.c.bf16 %v4193_v25, %v1397_v24  ;;  %v1405_v30 = vsel %vm1340_vm5, %v1307_v9, %v1373_v22  ;;  %v1406_v31 = vsel %vm1341_vm6, %v1308_v10, %v1374_v23  ;;  %vm1326_vm7 = vcmp.ge.f32.partialorder %v1293_v21, 0.0  ;;  %v1268_v9 = vld [vmem:[#allocation2 + $0xf0] sm:$0xff] }
 0x2bb   : > { %3202 = vmatpush.bf16.msra.mxu2 %v2725_v7  ;;  %2812 = vst [vmem:[%s4190_s3] sm:$0xff] %v2811_v19   ;;  %3203 = vmatpush.bf16.msra.mxu3 %v2725_v7  ;;  %v2851_v33 = vpack.c.bf16 %v1406_v31, %v1405_v30  ;;  %vm1327_vm8 = vcmp.ge.f32.partialorder %v1294_v27, 0.0  ;;  %v1359_v34 = vmul.f32 %v4170_v8, %v1293_v21  ;;  %v1280_v22 = vld [vmem:[#allocation2 + $0xd0] sm:$0xff] }
 0x2bc   : > { %3098 = vst [vmem:[%s4190_s3 + $0x20] sm:$0xff] %v2831_v26   ;;  %v1360_v36 = vmul.f32 %v4170_v8, %v1294_v27  ;;  %v1301_v37 = vadd.f32 %v4161_v62, %v1265_v28  ;;  %v1424_v38 = vpack.c.bf16 %v4178_v16, %v4178_v16  ;;  %v1302_v39 = vadd.f32 %v4161_v62, %v1266_v32  ;;  %v1275_v32 = vld [vmem:[#allocation2 + $0xe0] sm:$0xff] }
 0x2bd   : > { %3102 = vst [vmem:[%s4190_s3 + $0x40] sm:$0xff] %v2851_v33   ;;  %v1309_v41 = vadd.f32 %v4161_v62, %v1273_v35  ;;  %v4212_v43 = vsel %vm1326_vm7, %v1293_v21, %v1359_v34  ;;  %v1425_v46 = vpack.c.bf16 %v4180_v17, %v4180_v17  ;;  %v1432_v47 = vpack.c.bf16 %v1397_v24, %v1397_v24  ;;  %v1276_v33 = vld [vmem:[#allocation2 + $0x90] sm:$0xff] }
 0x2be   : > { %1658 = vmatpush.bf16.msra.mxu0 %v2724_v18  ;;  %3204 = vmatpush.bf16.msra.mxu1 %v2724_v18  ;;  %v4214_v44 = vsel %vm1327_vm8, %v1294_v27, %v1360_v36  ;;  %vm1334_vm9 = vcmp.ge.f32.partialorder %v1301_v37, 0.0  ;;  %v1367_v45 = vmul.f32 %v4170_v8, %v1301_v37  ;;  %vm1335_vm10 = vcmp.ge.f32.partialorder %v1302_v39, 0.0 }
 0x2bf   : > { %3205 = vmatpush.bf16.msra.mxu2 %v2724_v18  ;;  %3206 = vmatpush.bf16.msra.mxu3 %v2724_v18  ;;  %v2816_v48 = vpack.c.bf16 %v4214_v44, %v4212_v43  ;;  %v1433_v50 = vpack.c.bf16 %v4193_v25, %v4193_v25  ;;  %v1440_v51 = vpack.c.bf16 %v1405_v30, %v1405_v30  ;;  %vm1342_vm11 = vcmp.ge.f32.partialorder %v1309_v41, 0.0  ;;  %v1279_v18 = vld [vmem:[#allocation2 + $0xa8] sm:$0xff] }
 0x2c0   : > { %v1368_v52 = vmul.f32 %v4170_v8, %v1302_v39  ;;  %v1310_v53 = vadd.f32 %v4161_v62, %v1274_v40  ;;  %v1441_v54 = vpack.c.bf16 %v1406_v31, %v1406_v31  ;;  %v4226_v55 = vsel %vm1334_vm9, %v1301_v37, %v1367_v45  ;;  %v1261_v45 = vld [vmem:[#allocation2 + $0x30] sm:$0xff] }
 0x2c1   : > { %3095 = vst [vmem:[%s4190_s3 + $0x8] sm:$0xff] %v2816_v48   ;;  %v1375_v56 = vmul.f32 %v4170_v8, %v1309_v41  ;;  %v1295_v61 = vadd.f32 %v4161_v62, %v1259_v49  ;;  %v1543_v63 = vunpack.c.l.b16 %v1424_v38  ;;  %v1544_v0 = vunpack.c.l.b16 %v1425_v46  ;;  %v1262_v48 = vld [vmem:[#allocation2 + $0x48] sm:$0xff] }
 0x2c2   : > { %1659 = vmatpush.bf16.msra.mxu0 %v2723_v29  ;;  %3207 = vmatpush.bf16.msra.mxu1 %v2723_v29  ;;  %v4233_v59 = vsel %vm1335_vm10, %v1302_v39, %v1368_v52  ;;  %vm1343_vm12 = vcmp.ge.f32.partialorder %v1310_v53, 0.0  ;;  %v1376_v60 = vmul.f32 %v4170_v8, %v1310_v53  ;;  %v1551_v1 = vunpack.c.l.b16 %v1432_v47 }
 0x2c3   : > { %3208 = vmatpush.bf16.msra.mxu2 %v2723_v29  ;;  %3209 = vmatpush.bf16.msra.mxu3 %v2723_v29  ;;  %v2836_v2 = vpack.c.bf16 %v4233_v59, %v4226_v55  ;;  %v1552_v4 = vunpack.c.l.b16 %v1433_v50  ;;  %v4240_v5 = vsel %vm1342_vm11, %v1309_v41, %v1375_v56  ;;  %v1296_v7 = vadd.f32 %v4161_v62, %v1260_v57  ;;  %v1269_v56 = vld [vmem:[#allocation2 + $0x8] sm:$0xff] }
 0x2c4   : > { %v4242_v6 = vsel %vm1343_vm12, %v1310_v53, %v1376_v60  ;;  %v1559_v10 = vunpack.c.l.b16 %v1440_v51  ;;  %v1560_v11 = vunpack.c.l.b16 %v1441_v54  ;;  %vm1328_vm13 = vcmp.ge.f32.partialorder %v1295_v61, 0.0 }
 0x2c5   : > { %3099 = vst [vmem:[%s4190_s3 + $0x28] sm:$0xff] %v2836_v2   ;;  %v2856_v12 = vpack.c.bf16 %v4242_v6, %v4240_v5  ;;  %vm1329_vm14 = vcmp.ge.f32.partialorder %v1296_v7, 0.0  ;;  %v1361_v14 = vmul.f32 %v4170_v8, %v1295_v61  ;;  %v1362_v15 = vmul.f32 %v4170_v8, %v1296_v7 }
 0x2c6   : > { %1660 = vmatpush.bf16.msra.mxu0 %v2722_v42  ;;  %3210 = vmatpush.bf16.msra.mxu1 %v2722_v42  ;;  %v1303_v16 = vadd.f32 %v4161_v62, %v1267_v3  ;;  %v1304_v17 = vadd.f32 %v4161_v62, %v1268_v9  ;;  %v1575_v23 = vpack.c.b16 %v1544_v0, %v1543_v63 }
 0x2c7   : > { %3211 = vmatpush.bf16.msra.mxu2 %v2722_v42  ;;  %3212 = vmatpush.bf16.msra.mxu3 %v2722_v42  ;;  %3103 = vst [vmem:[%s4190_s3 + $0x48] sm:$0xff] %v2856_v12   ;;  %v4256_v19 = vsel %vm1328_vm13, %v1295_v61, %v1361_v14  ;;  %v4258_v20 = vsel %vm1329_vm14, %v1296_v7, %v1362_v15  ;;  %v1270_v61 = vld [vmem:[#allocation2 + $0x78] sm:$0xff]  ;;  %v1282_v15 = vld [vmem:[#allocation2 + $0x28] sm:$0xff] }
 0x2c8   : > { %vm1336_vm15 = vcmp.ge.f32.partialorder %v1303_v16, 0.0  ;;  %v1369_v21 = vmul.f32 %v4170_v8, %v1303_v16  ;;  %v1579_v24 = vpack.c.b16 %v1552_v4, %v1551_v1  ;;  %v1426_v25 = vpack.c.bf16 %v4212_v43, %v4212_v43 }
 0x2c9   : > { %v2821_v26 = vpack.c.bf16 %v4258_v20, %v4256_v19  ;;  %v1583_v27 = vpack.c.b16 %v1560_v11, %v1559_v10  ;;  %vm1337_vm0 = vcmp.ge.f32.partialorder %v1304_v17, 0.0  ;;  %v1370_v28 = vmul.f32 %v4170_v8, %v1304_v17  ;;  %v1281_v10 = vld [vmem:[#allocation2 + $0x10] sm:$0xff] }
 0x2ca   : > { %1661 = vmatpush.bf16.msra.mxu0 %v2721_v58  ;;  %3213 = vmatpush.bf16.msra.mxu1 %v2721_v58  ;;  %v1315_v29 = vadd.f32 %v4161_v62, %v1279_v18  ;;  %v4268_v30 = vsel %vm1336_vm15, %v1303_v16, %v1369_v21  ;;  %v1316_v31 = vadd.f32 %v4161_v62, %v1280_v22  ;;  %v4277_v38 = vunpack.c.l.b16 %v1426_v25 }
 0x2cb   : > { %3214 = vmatpush.bf16.msra.mxu2 %v2721_v58  ;;  %3215 = vmatpush.bf16.msra.mxu3 %v2721_v58  ;;  %3096 = vst [vmem:[%s4190_s3 + $0x10] sm:$0xff] %v2821_v26   ;;  %v4271_v34 = vsel %vm1337_vm0, %v1304_v17, %v1370_v28  ;;  %v1311_v36 = vadd.f32 %v4161_v62, %v1275_v32  ;;  %v1278_v32 = vld [vmem:[#allocation2 + $0xc0] sm:$0xff] }
 0x2cc   : > { %vm1348_vm1 = vcmp.ge.f32.partialorder %v1315_v29, 0.0  ;;  %v1381_v35 = vmul.f32 %v4170_v8, %v1315_v29  ;;  %v1427_v37 = vpack.c.bf16 %v4214_v44, %v4214_v44  ;;  %v1434_v39 = vpack.c.bf16 %v4226_v55, %v4226_v55 }
 0x2cd   : > { %v2841_v40 = vpack.c.bf16 %v4271_v34, %v4268_v30  ;;  %vm1349_vm2 = vcmp.ge.f32.partialorder %v1316_v31, 0.0  ;;  %v1382_v41 = vmul.f32 %v4170_v8, %v1316_v31  ;;  %v1312_v43 = vadd.f32 %v4161_v62, %v1276_v33 }
 0x2ce   : > { %1662 = vmatpush.bf16.msra.mxu0 %v2720_v13  ;;  %3216 = vmatpush.bf16.msra.mxu1 %v2720_v13  ;;  %v1413_v42 = vsel %vm1348_vm1, %v1315_v29, %v1381_v35  ;;  %v1435_v46 = vpack.c.bf16 %v4233_v59, %v4233_v59  ;;  %vm1344_vm3 = vcmp.ge.f32.partialorder %v1311_v36, 0.0  ;;  %v1377_v47 = vmul.f32 %v4170_v8, %v1311_v36 }
 0x2cf   : > { %3217 = vmatpush.bf16.msra.mxu2 %v2720_v13  ;;  %3218 = vmatpush.bf16.msra.mxu3 %v2720_v13  ;;  %3100 = vst [vmem:[%s4190_s3 + $0x30] sm:$0xff] %v2841_v40   ;;  %v1448_v44 = vpack.c.bf16 %v1413_v42, %v1413_v42  ;;  %v1414_v49 = vsel %vm1349_vm2, %v1316_v31, %v1382_v41  ;;  %vm1345_vm4 = vcmp.ge.f32.partialorder %v1312_v43, 0.0  ;;  %v1546_v63 = vunpack.c.l.b16 %v1427_v37  ;;  %v1277_v31 = vld [vmem:[#allocation2 + $0x70] sm:$0xff] }
 0x2d0   : > { %v1378_v50 = vmul.f32 %v4170_v8, %v1312_v43  ;;  %v1297_v51 = vadd.f32 %v4161_v62, %v1261_v45  ;;  %v1442_v52 = vpack.c.bf16 %v4240_v5, %v4240_v5  ;;  %v1449_v53 = vpack.c.bf16 %v1414_v49, %v1414_v49  ;;  %v1283_v45 = vld [vmem:[#allocation2 + $0xa0] sm:$0xff] }
 0x2d1   : > { %1663 = vmatmul.bf16.vlgmr.msra.gmra.mxu0 %v1575_v23  ;;  %1683 = vmatmul.bf16.vlgmr.msra.gmra.mxu1 %v1579_v24  ;;  %v2871_v54 = vpack.c.bf16 %v1414_v49, %v1413_v42  ;;  %v1567_v55 = vunpack.c.l.b16 %v1448_v44  ;;  %v1443_v57 = vpack.c.bf16 %v4242_v6, %v4242_v6  ;;  %v4295_v58 = vsel %vm1344_vm3, %v1311_v36, %v1377_v47  ;;  %v1285_v44 = vld [vmem:[#allocation2 + $0x20] sm:$0xff]  ;;  %v1286_v49 = vld [vmem:[#allocation2 + $0x98] sm:$0xff] }
 0x2d2   : > { %1703 = vmatmul.bf16.vlgmr.msra.gmra.mxu2 %v1583_v27  ;;  %v4297_v59 = vsel %vm1345_vm4, %v1312_v43, %v1378_v50  ;;  %v1298_v60 = vadd.f32 %v4161_v62, %v1262_v48  ;;  %v1568_v0 = vunpack.c.l.b16 %v1449_v53  ;;  %vm1330_vm5 = vcmp.ge.f32.partialorder %v1297_v51, 0.0 }
 0x2d3   : > { %3106 = vst [vmem:[%s4190_s3 + $0x60] sm:$0xff] %v2871_v54   ;;  %v2861_v1 = vpack.c.bf16 %v4297_v59, %v4295_v58  ;;  %v1363_v2 = vmul.f32 %v4170_v8, %v1297_v51  ;;  %v1305_v4 = vadd.f32 %v4161_v62, %v1269_v56  ;;  %v1553_v5 = vunpack.c.l.b16 %v1434_v39 }
 0x2d4   : > { %vm1331_vm6 = vcmp.ge.f32.partialorder %v1298_v60, 0.0  ;;  %v1364_v3 = vmul.f32 %v4170_v8, %v1298_v60  ;;  %v1554_v6 = vunpack.c.l.b16 %v1435_v46  ;;  %v1587_v7 = vpack.c.b16 %v1568_v0, %v1567_v55  ;;  %v1284_v46 = vld [vmem:[#allocation2 + $0xf8] sm:$0xff] }
 0x2d5   : > { %3104 = vst [vmem:[%s4190_s3 + $0x50] sm:$0xff] %v2861_v1   ;;  %v1306_v9 = vadd.f32 %v4161_v62, %v1270_v61  ;;  %v1561_v11 = vunpack.c.l.b16 %v1442_v52  ;;  %v1562_v12 = vunpack.c.l.b16 %v1443_v57  ;;  %v4308_v13 = vsel %vm1330_vm5, %v1297_v51, %v1363_v2 }
 0x2d6   : > { %v4310_v14 = vsel %vm1331_vm6, %v1298_v60, %v1364_v3  ;;  %1723 = vmatmul.bf16.vlgmr.msra.gmra.mxu3 %v1587_v7  ;;  %v1371_v17 = vmul.f32 %v4170_v8, %v1305_v4  ;;  %vm1338_vm7 = vcmp.ge.f32.partialorder %v1305_v4, 0.0  ;;  %v1317_v21 = vadd.f32 %v4161_v62, %v1281_v10 }
 0x2d7   : > { %v2826_v16 = vpack.c.bf16 %v4310_v14, %v4308_v13  ;;  %vm1339_vm8 = vcmp.ge.f32.partialorder %v1306_v9, 0.0  ;;  %v1372_v18 = vmul.f32 %v4170_v8, %v1306_v9  ;;  %v1576_v22 = vpack.c.b16 %v1546_v63, %v4277_v38 }
 0x2d8   : > { %v1580_v23 = vpack.c.b16 %v1554_v6, %v1553_v5  ;;  %v1428_v24 = vpack.c.bf16 %v4256_v19, %v4256_v19  ;;  %v1318_v25 = vadd.f32 %v4161_v62, %v1282_v15  ;;  %v1584_v26 = vpack.c.b16 %v1562_v12, %v1561_v11 }
 0x2d9   : > { %3097 = vst [vmem:[%s4190_s3 + $0x18] sm:$0xff] %v2826_v16   ;;  %vm1350_vm9 = vcmp.ge.f32.partialorder %v1317_v21, 0.0  ;;  %v1383_v27 = vmul.f32 %v4170_v8, %v1317_v21  ;;  %v4323_v28 = vsel %vm1338_vm7, %v1305_v4, %v1371_v17  ;;  %v4325_v29 = vsel %vm1339_vm8, %v1306_v9, %v1372_v18 }
 0x2da   : > { %vm1351_vm10 = vcmp.ge.f32.partialorder %v1318_v25, 0.0  ;;  %v1384_v33 = vmul.f32 %v4170_v8, %v1318_v25  ;;  %v1313_v36 = vadd.f32 %v4161_v62, %v1277_v31  ;;  %v1314_v19 = vadd.f32 %v4161_v62, %v1278_v32 }
 0x2db   : > { %v1415_v35 = vsel %vm1350_vm9, %v1317_v21, %v1383_v27  ;;  %v1429_v37 = vpack.c.bf16 %v4258_v20, %v4258_v20  ;;  %v1547_v38 = vunpack.c.l.b16 %v1428_v24  ;;  %v2846_v39 = vpack.c.bf16 %v4325_v29, %v4323_v28 }
 0x2dc   : > { %v1450_v40 = vpack.c.bf16 %v1415_v35, %v1415_v35  ;;  %v1436_v41 = vpack.c.bf16 %v4268_v30, %v4268_v30  ;;  %v1416_v42 = vsel %vm1351_vm10, %v1318_v25, %v1384_v33  ;;  %vm1346_vm11 = vcmp.ge.f32.partialorder %v1313_v36, 0.0 }
 0x2dd   : > { %v1379_v43 = vmul.f32 %v4170_v8, %v1313_v36  ;;  %3101 = vst [vmem:[%s4190_s3 + $0x38] sm:$0xff] %v2846_v39   ;;  %v1451_v47 = vpack.c.bf16 %v1416_v42, %v1416_v42  ;;  %v2876_v20 = vpack.c.bf16 %v1416_v42, %v1415_v35  ;;  %vm1347_vm12 = vcmp.ge.f32.partialorder %v1314_v19, 0.0 }
 0x2de   : > { %v1569_v48 = vunpack.c.l.b16 %v1450_v40  ;;  %v1437_v50 = vpack.c.bf16 %v4271_v34, %v4271_v34  ;;  %v1380_v51 = vmul.f32 %v4170_v8, %v1314_v19  ;;  %v1319_v30 = vadd.f32 %v4161_v62, %v1283_v45 }
 0x2df   : > { %v1320_v52 = vadd.f32 %v4161_v62, %v1284_v46  ;;  %v1444_v53 = vpack.c.bf16 %v4295_v58, %v4295_v58  ;;  %3107 = vst [vmem:[%s4190_s3 + $0x68] sm:$0xff] %v2876_v20   ;;  %v1570_v54 = vunpack.c.l.b16 %v1451_v47  ;;  %v1321_v55 = vadd.f32 %v4161_v62, %v1285_v44  ;;  %v1776_v44 = vld [vmem:[%s5255_s15] sm:$0x1] }
 0x2e0   : > { %v1322_v56 = vadd.f32 %v4161_v62, %v1286_v49  ;;  %v1445_v57 = vpack.c.bf16 %v4297_v59, %v4297_v59  ;;  %v1411_v34 = vsel %vm1346_vm11, %v1313_v36, %v1379_v43  ;;  %v1412_v60 = vsel %vm1347_vm12, %v1314_v19, %v1380_v51  ;;  %v1508_v43 = vld [vmem:[%s5254_s20] sm:$0x1] }
 0x2e1   : > { %1668 = vmatmul.bf16.gmra.mxu0 %v1576_v22  ;;  %1688 = vmatmul.bf16.gmra.mxu1 %v1580_v23  ;;  %v1385_v61 = vmul.f32 %v4170_v8, %v1319_v30  ;;  %v1588_v63 = vpack.c.b16 %v1570_v54, %v1569_v48  ;;  %v2866_v0 = vpack.c.bf16 %v1412_v60, %v1411_v34  ;;  %vm1352_vm13 = vcmp.ge.f32.partialorder %v1319_v30, 0.0 }
 0x2e2   : > { %1708 = vmatmul.bf16.gmra.mxu2 %v1584_v26  ;;  %vm1353_vm14 = vcmp.ge.f32.partialorder %v1320_v52, 0.0  ;;  %v1548_v58 = vunpack.c.l.b16 %v1429_v37  ;;  %v1555_v1 = vunpack.c.l.b16 %v1436_v41  ;;  %v1556_v2 = vunpack.c.l.b16 %v1437_v50 }
 0x2e3   : > { %v1386_v3 = vmul.f32 %v4170_v8, %v1320_v52  ;;  %3105 = vst [vmem:[%s4190_s3 + $0x58] sm:$0xff] %v2866_v0   ;;  %vm1354_vm15 = vcmp.ge.f32.partialorder %v1321_v55, 0.0  ;;  %vm1355_vm0 = vcmp.ge.f32.partialorder %v1322_v56, 0.0  ;;  %v1387_v62 = vmul.f32 %v4170_v8, %v1321_v55 }
 0x2e4   : > { %v1388_v59 = vmul.f32 %v4170_v8, %v1322_v56  ;;  %v1563_v4 = vunpack.c.l.b16 %v1444_v53  ;;  %v1564_v5 = vunpack.c.l.b16 %v1445_v57  ;;  %v1417_v6 = vsel %vm1352_vm13, %v1319_v30, %v1385_v61 }
 0x2e5   : > { %v1418_v7 = vsel %vm1353_vm14, %v1320_v52, %v1386_v3  ;;  %v1419_v10 = vsel %vm1354_vm15, %v1321_v55, %v1387_v62  ;;  %v1577_v12 = vpack.c.b16 %v1548_v58, %v1547_v38  ;;  %v1581_v15 = vpack.c.b16 %v1556_v2, %v1555_v1 }
 0x2e6   : > { %1728 = vmatmul.bf16.gmra.mxu3 %v1588_v63  ;;  %v2881_v9 = vpack.c.bf16 %v1418_v7, %v1417_v6  ;;  %v1420_v11 = vsel %vm1355_vm0, %v1322_v56, %v1388_v59  ;;  %v1585_v17 = vpack.c.b16 %v1564_v5, %v1563_v4  ;;  %v1452_v18 = vpack.c.bf16 %v1417_v6, %v1417_v6 }
 0x2e7   : > { %v2886_v16 = vpack.c.bf16 %v1420_v11, %v1419_v10  ;;  %v1453_v21 = vpack.c.bf16 %v1418_v7, %v1418_v7  ;;  %v1430_v23 = vpack.c.bf16 %v4308_v13, %v4308_v13  ;;  %v1431_v24 = vpack.c.bf16 %v4310_v14, %v4310_v14 }
 0x2e8   : > { %3108 = vst [vmem:[%s4190_s3 + $0x70] sm:$0xff] %v2881_v9   ;;  %v1571_v8 = vunpack.c.l.b16 %v1452_v18  ;;  %v1438_v25 = vpack.c.bf16 %v4323_v28, %v4323_v28  ;;  %v1439_v26 = vpack.c.bf16 %v4325_v29, %v4325_v29  ;;  %v1446_v27 = vpack.c.bf16 %v1411_v34, %v1411_v34 }
 0x2e9   : > { %3109 = vst [vmem:[%s4190_s3 + $0x78] sm:$0xff] %v2886_v16   ;;  %v1572_v22 = vunpack.c.l.b16 %v1453_v21  ;;  %v1447_v31 = vpack.c.bf16 %v1412_v60, %v1412_v60  ;;  %v1549_v33 = vunpack.c.l.b16 %v1430_v23  ;;  %v1550_v35 = vunpack.c.l.b16 %v1431_v24 }
 0x2ea   : > { %v1557_v36 = vunpack.c.l.b16 %v1438_v25  ;;  %v1558_v19 = vunpack.c.l.b16 %v1439_v26  ;;  %v1565_v37 = vunpack.c.l.b16 %v1446_v27  ;;  %v1454_v14 = vpack.c.bf16 %v1419_v10, %v1419_v10 }
 0x2eb   : > { %v1589_v32 = vpack.c.b16 %v1572_v22, %v1571_v8  ;;  %v1566_v38 = vunpack.c.l.b16 %v1447_v31  ;;  %v1578_v13 = vpack.c.b16 %v1550_v35, %v1549_v33  ;;  %v1455_v41 = vpack.c.bf16 %v1420_v11, %v1420_v11 }
 0x2ec   : > { %v1582_v39 = vpack.c.b16 %v1558_v19, %v1557_v36  ;;  %v1573_v28 = vunpack.c.l.b16 %v1454_v14  ;;  %v1509_v45 = vunpack.c.l.bf16 %v1508_v43  ;;  %v1777_v50 = vunpack.c.l.bf16 %v1776_v44 }
 0x2ed   : > { %v1586_v40 = vpack.c.b16 %v1566_v38, %v1565_v37  ;;  %v1574_v29 = vunpack.c.l.b16 %v1455_v41  ;;  %vm1915_vm1 = vcmask 0  }
 0x2ee   : > { %v4369_v46 = vperm.slane %v1509_v45, 0  ;;  %v4376_v51 = vperm.slane %v1777_v50, 0 }
 0x2ef   : > { %v1590_v42 = vpack.c.b16 %v1574_v29, %v1573_v28 }
 0x2f1   : > { %1673 = vmatmul.bf16.gmra.mxu0 %v1577_v12  ;;  %1693 = vmatmul.bf16.gmra.mxu1 %v1581_v15 }
 0x2f2   : > { %1713 = vmatmul.bf16.gmra.mxu2 %v1585_v17 }
 0x2f6   : > { %1733 = vmatmul.bf16.gmra.mxu3 %v1589_v32 }
 0x301   : > { %1678 = vmatmul.bf16.gmra.mxu0 %v1578_v13  ;;  %1698 = vmatmul.bf16.gmra.mxu1 %v1582_v39 }
 0x302   : > { %1718 = vmatmul.bf16.gmra.mxu2 %v1586_v40 }
 0x306   : > { %1738 = vmatmul.bf16.gmra.mxu3 %v1590_v42 }
 0x34e   : > { %v1664_v47 = vpop.f32.mrf.mxu0  ;;  %v1684_v20 = vpop.f32.mrf.mxu1 }
 0x34f   : > { %v1665_v48 = vadd.f32 %v1664_v47, %v4369_v46  ;;  %v1685_v49 = vadd.f32 %v1684_v20, %v4369_v46 }
 0x351   : > { %3382 = vtanh.f32 %v1665_v48 }
 0x352   : > { %3384 = vtanh.f32 %v1685_v49 }
 0x355   : > { %v4378_v30 = vpop.f32.mrf.mxu2 }
 0x356   : > { %v1666_v52 = vpop.f32.mrf.mxu0  ;;  %v1686_v53 = vpop.f32.mrf.mxu1 }
 0x357   : > { %v3383_v54 = vpop.eup %3382  ;;  %v1667_v55 = vadd.f32 %v1666_v52, %v4369_v46  ;;  %v1687_v60 = vadd.f32 %v1686_v53, %v4369_v46 }
 0x358   : > { %v3385_v56 = vpop.eup %3384  ;;  %v1779_v57 = vmul.f32 %v3383_v54, %v4376_v51 }
 0x359   : > { %3386 = vtanh.f32 %v1667_v55  ;;  %v1787_v34 = vmul.f32 %v3385_v56, %v4376_v51  ;;  %v4392_v11 = vpop.f32.mrf.mxu3 }
 0x35a   : > { %1811 = vadd.xlane.f32.xlu0 %v1779_v57  ;;  %3388 = vtanh.f32 %v1687_v60 }
 0x35b   : > { %1827 = vadd.xlane.f32.xlu2 %v1787_v34  ;;  %v1705_v34 = vadd.f32 %v4378_v30, %v4369_v46 }
 0x35d   : > { %v4384_v61 = vpop.f32.mrf.mxu2 }
 0x35e   : > { %v1669_v63 = vpop.f32.mrf.mxu0  ;;  %v1689_v0 = vpop.f32.mrf.mxu1  ;;  %v1707_v20 = vadd.f32 %v4384_v61, %v4369_v46 }
 0x35f   : > { %v3387_v58 = vpop.eup %3386  ;;  %v1670_v1 = vadd.f32 %v1669_v63, %v4369_v46  ;;  %v1690_v3 = vadd.f32 %v1689_v0, %v4369_v46 }
 0x360   : > { %v1780_v2 = vmul.f32 %v3387_v58, %v4376_v51  ;;  %v3389_v62 = vpop.eup %3388 }
 0x361   : > { %3390 = vtanh.f32 %v1670_v1  ;;  %v1788_v10 = vmul.f32 %v3389_v62, %v4376_v51  ;;  %v4401_v25 = vpop.f32.mrf.mxu3 }
 0x362   : > { %1813 = vadd.xlane.f32.xlu0 %v1780_v2  ;;  %3392 = vtanh.f32 %v1690_v3 }
 0x365   : > { %v1709_v59 = vpop.f32.mrf.mxu2 }
 0x366   : > { %v1671_v4 = vpop.f32.mrf.mxu0  ;;  %v1691_v5 = vpop.f32.mrf.mxu1  ;;  %v1710_v47 = vadd.f32 %v1709_v59, %v4369_v46 }
 0x367   : > { %v3391_v6 = vpop.eup %3390  ;;  %v1692_v7 = vadd.f32 %v1691_v5, %v4369_v46  ;;  %v1672_v15 = vadd.f32 %v1671_v4, %v4369_v46 }
 0x368   : > { %v1781_v9 = vmul.f32 %v3391_v6, %v4376_v51  ;;  %v3393_v12 = vpop.eup %3392 }
 0x369   : > { %3394 = vtanh.f32 %v1692_v7  ;;  %v1789_v21 = vmul.f32 %v3393_v12, %v4376_v51  ;;  %v4408_v40 = vpop.f32.mrf.mxu3 }
 0x36a   : > { %1815 = vadd.xlane.f32.xlu1 %v1781_v9  ;;  %1829 = vadd.xlane.f32.xlu0 %v1788_v10  ;;  %3396 = vtanh.f32 %v1672_v15 }
 0x36d   : > { %v4395_v16 = vpop.f32.mrf.mxu2 }
 0x36e   : > { %v1674_v17 = vpop.f32.mrf.mxu0  ;;  %v1694_v18 = vpop.f32.mrf.mxu1  ;;  %v1712_v30 = vadd.f32 %v4395_v16, %v4369_v46  ;;  %v1725_v16 = vadd.f32 %v4392_v11, %v4369_v46 }
 0x36f   : > { %v1675_v8 = vadd.f32 %v1674_v17, %v4369_v46  ;;  %v1695_v22 = vadd.f32 %v1694_v18, %v4369_v46  ;;  %v3395_v23 = vpop.eup %3394 }
 0x370   : > { %v1790_v24 = vmul.f32 %v3395_v23, %v4376_v51  ;;  %v3397_v26 = vpop.eup %3396 }
 0x371   : > { %3398 = vtanh.f32 %v1675_v8  ;;  %v1782_v38 = vmul.f32 %v3397_v26, %v4376_v51  ;;  %v1731_v56 = vpop.f32.mrf.mxu3  ;;  %v1730_v8 = vadd.f32 %v4408_v40, %v4369_v46 }
 0x372   : > { %3400 = vtanh.f32 %v1695_v22  ;;  %1831 = vadd.xlane.f32.xlu1 %v1789_v21  ;;  %1833 = vadd.xlane.f32.xlu2 %v1790_v24 }
 0x375   : > { %v1714_v27 = vpop.f32.mrf.mxu2 }
 0x376   : > { %v1676_v31 = vpop.f32.mrf.mxu0  ;;  %v1696_v32 = vpop.f32.mrf.mxu1  ;;  %v1715_v61 = vadd.f32 %v1714_v27, %v4369_v46  ;;  %v1727_v27 = vadd.f32 %v4401_v25, %v4369_v46 }
 0x377   : > { %v3399_v33 = vpop.eup %3398  ;;  %v1677_v35 = vadd.f32 %v1676_v31, %v4369_v46  ;;  %v1697_v36 = vadd.f32 %v1696_v32, %v4369_v46  ;;  %v1732_v31 = vadd.f32 %v1731_v56, %v4369_v46 }
 0x378   : > { %v3401_v19 = vpop.eup %3400  ;;  %v1783_v37 = vmul.f32 %v3399_v33, %v4376_v51 }
 0x379   : > { %3402 = vtanh.f32 %v1677_v35  ;;  %v1791_v13 = vmul.f32 %v3401_v19, %v4376_v51  ;;  %v1734_v4 = vpop.f32.mrf.mxu3 }
 0x37a   : > { %3404 = vtanh.f32 %v1697_v36  ;;  %1817 = vadd.xlane.f32.xlu1 %v1782_v38  ;;  %1819 = vadd.xlane.f32.xlu2 %v1783_v37 }
 0x37b   : > { %1835 = vadd.xlane.f32.xlu0 %v1791_v13 }
 0x37d   : > { %v1716_v39 = vpop.f32.mrf.mxu2 }
 0x37e   : > { %v1679_v14 = vpop.f32.mrf.mxu0  ;;  %v1699_v41 = vpop.f32.mrf.mxu1  ;;  %v1717_v5 = vadd.f32 %v1716_v39, %v4369_v46  ;;  %v1735_v39 = vadd.f32 %v1734_v4, %v4369_v46 }
 0x37f   : > { %v3403_v28 = vpop.eup %3402  ;;  %v1680_v29 = vadd.f32 %v1679_v14, %v4369_v46  ;;  %v1700_v42 = vadd.f32 %v1699_v41, %v4369_v46 }
 0x380   : > { %v3405_v43 = vpop.eup %3404  ;;  %v1784_v45 = vmul.f32 %v3403_v28, %v4376_v51 }
 0x381   : > { %3406 = vtanh.f32 %v1680_v29  ;;  %v1792_v44 = vmul.f32 %v3405_v43, %v4376_v51  ;;  %v1736_v22 = vpop.f32.mrf.mxu3 }
 0x382   : > { %3408 = vtanh.f32 %v1700_v42  ;;  %1821 = vadd.xlane.f32.xlu2 %v1784_v45  ;;  %v1737_v33 = vadd.f32 %v1736_v22, %v4369_v46 }
 0x383   : > { %1837 = vadd.xlane.f32.xlu1 %v1792_v44  ;;  %3410 = vtanh.f32 %v1710_v47 }
 0x384   : > { %3412 = vtanh.f32 %v1707_v20 }
 0x385   : > { %v1719_v48 = vpop.f32.mrf.mxu2 }
 0x386   : > { %v1681_v49 = vpop.f32.mrf.mxu0  ;;  %v1701_v54 = vpop.f32.mrf.mxu1  ;;  %v1720_v18 = vadd.f32 %v1719_v48, %v4369_v46 }
 0x387   : > { %v3407_v50 = vpop.eup %3406  ;;  %v1682_v52 = vadd.f32 %v1681_v49, %v4369_v46  ;;  %v1702_v60 = vadd.f32 %v1701_v54, %v4369_v46 }
 0x388   : > { %v3409_v53 = vpop.eup %3408  ;;  %v1785_v55 = vmul.f32 %v3407_v50, %v4376_v51 }
 0x389   : > { %3414 = vtanh.f32 %v1682_v52  ;;  %v1793_v57 = vmul.f32 %v3409_v53, %v4376_v51  ;;  %v3411_v63 = vpop.eup %3410  ;;  %v1739_v19 = vpop.f32.mrf.mxu3 }
 0x38a   : > { %1823 = vadd.xlane.f32.xlu0 %v1785_v55  ;;  %v3413_v0 = vpop.eup %3412  ;;  %3416 = vtanh.f32 %v1705_v34  ;;  %v1797_v3 = vmul.f32 %v3411_v63, %v4376_v51  ;;  %v1740_v25 = vadd.f32 %v1739_v19, %v4369_v46 }
 0x38b   : > { %1839 = vadd.xlane.f32.xlu2 %v1793_v57  ;;  %3418 = vtanh.f32 %v1702_v60  ;;  %v1796_v62 = vmul.f32 %v3413_v0, %v4376_v51 }
 0x38c   : > { %3420 = vtanh.f32 %v1715_v61 }
 0x38d   : > { %v1721_v1 = vpop.f32.mrf.mxu2  ;;  %3422 = vtanh.f32 %v1712_v30 }
 0x38e   : > { %v1722_v59 = vadd.f32 %v1721_v1, %v4369_v46 }
 0x38f   : > { %v3415_v58 = vpop.eup %3414 }
 0x390   : > { %v1786_v2 = vmul.f32 %v3415_v58, %v4376_v51  ;;  %v3417_v6 = vpop.eup %3416  ;;  %3424 = vtanh.f32 %v1722_v59 }
 0x391   : > { %v3419_v7 = vpop.eup %3418  ;;  %3426 = vtanh.f32 %v1717_v5  ;;  %v1795_v10 = vmul.f32 %v3417_v6, %v4376_v51  ;;  %v1741_v28 = vpop.f32.mrf.mxu3 }
 0x392   : > { %1825 = vadd.xlane.f32.xlu1 %v1786_v2  ;;  %1847 = vadd.xlane.f32.xlu0 %v1797_v3  ;;  %v3421_v9 = vpop.eup %3420  ;;  %v1794_v12 = vmul.f32 %v3419_v7, %v4376_v51  ;;  %3428 = vtanh.f32 %v1725_v16  ;;  %v1742_v44 = vadd.f32 %v1741_v28, %v4369_v46 }
 0x393   : > { %1845 = vadd.xlane.f32.xlu2 %v1796_v62  ;;  %v1799_v15 = vmul.f32 %v3421_v9, %v4376_v51  ;;  %v3423_v17 = vpop.eup %3422  ;;  %3430 = vtanh.f32 %v1720_v18 }
 0x394   : > { %3432 = vtanh.f32 %v1730_v8  ;;  %v1798_v26 = vmul.f32 %v3423_v17, %v4376_v51 }
 0x395   : > { %3434 = vtanh.f32 %v1727_v27 }
 0x396   : > { %v3425_v21 = vpop.eup %3424  ;;  %3436 = vtanh.f32 %v1732_v31 }
 0x397   : > { %v3427_v23 = vpop.eup %3426  ;;  %v1802_v24 = vmul.f32 %v3425_v21, %v4376_v51  ;;  %3438 = vtanh.f32 %v1737_v33 }
 0x398   : > { %v1800_v11 = vmul.f32 %v3427_v23, %v4376_v51  ;;  %v3429_v32 = vpop.eup %3428  ;;  %3440 = vtanh.f32 %v1740_v25 }
 0x399   : > { %v3431_v35 = vpop.eup %3430  ;;  %v1803_v38 = vmul.f32 %v3429_v32, %v4376_v51  ;;  %3442 = vtanh.f32 %v1735_v39 }
 0x39a   : > { %1843 = vadd.xlane.f32.xlu1 %v1795_v10  ;;  %1841 = vadd.xlane.f32.xlu0 %v1794_v12  ;;  %v3433_v36 = vpop.eup %3432  ;;  %v1801_v37 = vmul.f32 %v3431_v35, %v4376_v51  ;;  %3444 = vtanh.f32 %v1742_v44 }
 0x39b   : > { %1851 = vadd.xlane.f32.xlu2 %v1799_v15  ;;  %v1805_v13 = vmul.f32 %v3433_v36, %v4376_v51  ;;  %v3435_v40 = vpop.eup %3434 }
 0x39c   : > { %v3437_v14 = vpop.eup %3436  ;;  %v1804_v29 = vmul.f32 %v3435_v40, %v4376_v51 }
 0x39d   : > { %v3439_v41 = vpop.eup %3438  ;;  %v1806_v42 = vmul.f32 %v3437_v14, %v4376_v51 }
 0x39e   : > { %v1808_v43 = vmul.f32 %v3439_v41, %v4376_v51  ;;  %v3441_v45 = vpop.eup %3440 }
 0x39f   : > { %v3443_v47 = vpop.eup %3442  ;;  %v1809_v20 = vmul.f32 %v3441_v45, %v4376_v51 }
 0x3a0   : > { %v1807_v48 = vmul.f32 %v3443_v47, %v4376_v51  ;;  %v3445_v49 = vpop.eup %3444 }
 0x3a1   : > { %v1810_v50 = vmul.f32 %v3445_v49, %v4376_v51 }
 0x3a2   : > { %1849 = vadd.xlane.f32.xlu1 %v1798_v26  ;;  %1853 = vadd.xlane.f32.xlu0 %v1800_v11 }
 0x3a3   : > { %1857 = vadd.xlane.f32.xlu2 %v1802_v24 }
 0x3aa   : > { %1855 = vadd.xlane.f32.xlu1 %v1801_v37  ;;  %1859 = vadd.xlane.f32.xlu0 %v1803_v38 }
 0x3ab   : > { %1863 = vadd.xlane.f32.xlu2 %v1805_v13 }
 0x3b2   : > { %1861 = vadd.xlane.f32.xlu1 %v1804_v29  ;;  %1865 = vadd.xlane.f32.xlu0 %v1806_v42 }
 0x3b3   : > { %1869 = vadd.xlane.f32.xlu2 %v1808_v43 }
 0x3ba   : > { %1867 = vadd.xlane.f32.xlu1 %v1807_v48  ;;  %1871 = vadd.xlane.f32.xlu0 %v1809_v20 }
 0x3c2   : > { %1873 = vadd.xlane.f32.xlu1 %v1810_v50 }
 0x3cd   : > { %v1812_v52 = vpop.xlane.xlu0 %1811 }
 0x3ce   : > { %v1828_v53 = vpop.xlane.xlu2 %1827 }
 0x3d5   : > { %v1814_v55 = vpop.xlane.xlu0 %1813 }
 0x3d6   : > { %v1877_v0 = vadd.f32 %v1814_v55, %v1812_v52 }
 0x3dd   : > { %v1816_v54 = vpop.xlane.xlu1 %1815  ;;  %v1830_v46 = vpop.xlane.xlu0 %1829 }
 0x3de   : > { %v1878_v58 = vadd.f32 %v1877_v0, %v1816_v54 }
 0x3e5   : > { %v1834_v56 = vpop.xlane.xlu2 %1833  ;;  %v1832_v57 = vpop.xlane.xlu1 %1831 }
 0x3ed   : > { %v1820_v34 = vpop.xlane.xlu2 %1819  ;;  %v1818_v60 = vpop.xlane.xlu1 %1817 }
 0x3ee   : > { %v1836_v61 = vpop.xlane.xlu0 %1835  ;;  %v1879_v1 = vadd.f32 %v1878_v58, %v1818_v60 }
 0x3f0   : > { %v1880_v62 = vadd.f32 %v1879_v1, %v1820_v34 }
 0x3f5   : > { %v1822_v63 = vpop.xlane.xlu2 %1821 }
 0x3f6   : > { %v1838_v2 = vpop.xlane.xlu1 %1837  ;;  %v1881_v51 = vadd.f32 %v1880_v62, %v1822_v63 }
 0x3fd   : > { %v1824_v3 = vpop.xlane.xlu0 %1823 }
 0x3fe   : > { %v1840_v30 = vpop.xlane.xlu2 %1839  ;;  %v1882_v59 = vadd.f32 %v1881_v51, %v1824_v3 }
 0x405   : > { %v1826_v4 = vpop.xlane.xlu1 %1825  ;;  %v1848_v5 = vpop.xlane.xlu0 %1847 }
 0x406   : > { %v1883_v6 = vadd.f32 %v1882_v59, %v1826_v4  ;;  %v1846_v9 = vpop.xlane.xlu2 %1845 }
 0x408   : > { %v1884_v7 = vadd.f32 %v1883_v6, %v1828_v53 }
 0x40a   : > { %v1885_v10 = vadd.f32 %v1884_v7, %v1830_v46 }
 0x40c   : > { %v1886_v12 = vadd.f32 %v1885_v10, %v1832_v57 }
 0x40d   : > { %v1844_v15 = vpop.xlane.xlu1 %1843  ;;  %v1842_v16 = vpop.xlane.xlu0 %1841 }
 0x40e   : > { %v1887_v17 = vadd.f32 %v1886_v12, %v1834_v56  ;;  %v1852_v8 = vpop.xlane.xlu2 %1851  ;;  %v1876_v56 = vld [vmem:[%s1875_s28] sm:$0x1] }
 0x410   : > { %v1888_v18 = vadd.f32 %v1887_v17, %v1836_v61 }
 0x412   : > { %v1889_v21 = vadd.f32 %v1888_v18, %v1838_v2 }
 0x414   : > { %v1890_v22 = vadd.f32 %v1889_v21, %v1840_v30 }
 0x415   : > { %v1850_v23 = vpop.xlane.xlu1 %1849  ;;  %v1854_v24 = vpop.xlane.xlu0 %1853 }
 0x416   : > { %v1891_v26 = vadd.f32 %v1890_v22, %v1842_v16  ;;  %v1858_v32 = vpop.xlane.xlu2 %1857 }
 0x418   : > { %v1892_v11 = vadd.f32 %v1891_v26, %v1844_v15 }
 0x41a   : > { %v1893_v27 = vadd.f32 %v1892_v11, %v1846_v9 }
 0x41c   : > { %v1894_v31 = vadd.f32 %v1893_v27, %v1848_v5 }
 0x41d   : > { %v1856_v33 = vpop.xlane.xlu1 %1855  ;;  %v1860_v36 = vpop.xlane.xlu0 %1859 }
 0x41e   : > { %v1895_v35 = vadd.f32 %v1894_v31, %v1850_v23  ;;  %v1864_v39 = vpop.xlane.xlu2 %1863 }
 0x420   : > { %v1896_v19 = vadd.f32 %v1895_v35, %v1852_v8 }
 0x422   : > { %v1897_v37 = vadd.f32 %v1896_v19, %v1854_v24 }
 0x424   : > { %v1898_v38 = vadd.f32 %v1897_v37, %v1856_v33 }
 0x425   : > { %v1862_v25 = vpop.xlane.xlu1 %1861  ;;  %v1866_v14 = vpop.xlane.xlu0 %1865 }
 0x426   : > { %v1899_v13 = vadd.f32 %v1898_v38, %v1858_v32  ;;  %v1870_v45 = vpop.xlane.xlu2 %1869 }
 0x428   : > { %v1900_v40 = vadd.f32 %v1899_v13, %v1860_v36 }
 0x42a   : > { %v1901_v41 = vadd.f32 %v1900_v40, %v1862_v25 }
 0x42c   : > { %v1902_v28 = vadd.f32 %v1901_v41, %v1864_v39 }
 0x42d   : > { %v1868_v29 = vpop.xlane.xlu1 %1867  ;;  %v1872_v47 = vpop.xlane.xlu0 %1871 }
 0x42e   : > { %v1903_v42 = vadd.f32 %v1902_v28, %v1866_v14 }
 0x430   : > { %v1904_v43 = vadd.f32 %v1903_v42, %v1868_v29 }
 0x432   : > { %v1905_v44 = vadd.f32 %v1904_v43, %v1870_v45 }
 0x434   : > { %v1906_v20 = vadd.f32 %v1905_v44, %v1872_v47 }
 0x435   : > { %v1874_v48 = vpop.xlane.xlu1 %1873 }
 0x436   : > { %v1907_v49 = vadd.f32 %v1906_v20, %v1874_v48 }
 0x438   : > { %v1908_v50 = vrot.slane %v1907_v49, 4 }
 0x43a   : > { %v1909_v52 = vadd.f32 %v1908_v50, %v1907_v49 }
 0x43c   : > { %v1910_v53 = vrot.slane %v1909_v52, 2 }
 0x43e   : > { %v1911_v54 = vadd.f32 %v1910_v53, %v1909_v52 }
 0x440   : > { %v1912_v55 = vrot.slane %v1911_v54, 1 }
 0x442   : > { %v1913_v57 = vadd.f32 %v1912_v55, %v1911_v54 }
 0x444   : > { %v1914_v46 = vadd.f32 %v1913_v57, %v1876_v56 }
 0x446   : > { %1916 = vst.msk [vmem:[%s1875_s28] sm:$0x1] %vm1915_vm1, %v1914_v46 }
 0x447 PF: > { %s5256_s8 = sld [smem:[#allocation23_spill]] }
 0x448   : > { %s5257_s0 = sld [smem:[#allocation22_spill]] }
 0x44d   : > { %p1917_p9 = scmp.eq.s32.totalorder %s5256_s8, 2 }
 0x44e   : > { %p1918_p2 = scmp.eq.s32.totalorder %s5257_s0, 1 }
 0x450   : > { %p1919_p10 = pnand %p1918_p2, %p1917_p9 }
 0x452   : > { %p1920_p6 = pneg %p1919_p10 }
 0x454   : > { %p1921_p11 = pnand %p1920_p6, %p1251_p7 }
 0x455   : > { %s4469_s13 = smov (!%p1921_p11), 0  }
 0x456   : > { %1924 = sbr.rel (%p1921_p11) target bundleno = 1338 (0x53a), region = 88 }
 0x45b   : > { %v1925_v34 = vld [vmem:[#allocation5] sm:$0x1]  ;;  %v1928_v60 = vld [vmem:[#allocation5 + $0x1] sm:$0x1]  ;;  %v1931_v61 = vld [vmem:[#allocation5 + $0x2] sm:$0x1] }
 0x45c   : > { %v1926_v63 = vmul.f32 0.001953125, %v1925_v34  ;;  %v1929_v0 = vmul.f32 0.001953125, %v1928_v60  ;;  %v1932_v58 = vmul.f32 0.001953125, %v1931_v61 }
 0x45e   : > { %v1933_v1 = vmax.f32 %v1926_v63, %v1929_v0 }
 0x460   : > { %v1934_v2 = vmax.f32 %v1933_v1, %v1932_v58 }
 0x462   : > { %v1935_v3 = vsub.f32 %v1926_v63, %v1934_v2  ;;  %v1938_v30 = vsub.f32 %v1929_v0, %v1934_v2  ;;  %v1941_v62 = vsub.f32 %v1932_v58, %v1934_v2 }
 0x464   : > { %v1936_v51 = vmul.f32 1.442695, %v1935_v3  ;;  %v1939_v59 = vmul.f32 1.442695, %v1938_v30  ;;  %v1942_v4 = vmul.f32 1.442695, %v1941_v62 }
 0x466   : > { %3446 = vpow2.f32 %v1936_v51 }
 0x467   : > { %3448 = vpow2.f32 %v1939_v59 }
 0x468   : > { %3450 = vpow2.f32 %v1942_v4 }
 0x46c   : > { %v3447_v5 = vpop.eup %3446 }
 0x46d   : > { %v3449_v6 = vpop.eup %3448 }
 0x46e   : > { %v3451_v7 = vpop.eup %3450  ;;  %v1944_v9 = vadd.f32 %v3449_v6, %v3447_v5 }
 0x470   : > { %v1945_v10 = vadd.f32 %v3451_v7, %v1944_v9 }
 0x472   : > { %3452 = vrcp.f32 %v1945_v10 }
 0x478   : > { %v3453_v12 = vpop.eup %3452 }
 0x479   : > { %v4463_v15 = vmul.f32 %v3453_v12, %v3447_v5  ;;  %v4465_v16 = vmul.f32 %v3453_v12, %v3449_v6  ;;  %v4467_v17 = vmul.f32 %v3453_v12, %v3451_v7 }
 0x47b   : > { %5259 = vst [vmem:[#allocation26_spill] sm:$0xff] %v4463_v15 }
 0x47c   : > { %5260 = vst [vmem:[#allocation27_spill] sm:$0xff] %v4465_v16 }
 0x47d   : > { %5261 = vst [vmem:[#allocation28_spill] sm:$0xff] %v4467_v17 }
 0x47e LB: >> { %v3730_v8 = vmov 0   ;;  %s4478_s12 = sshll.u32 %s3719_s13, 8  ;;  %s1955_s13 = sadd.s32 1, %s3719_s13   ;;  %s3719_s13 = sphi %s4469_s13, %s1955_s13  }
 0x47f   : >> { %3454 = vset.pattern.permute.xlu0 %v3730_v8  ;;  %3455 = vset.pattern.permute.xlu1 %v3730_v8  ;;  %s1957_s1 = sshra.s32 %s4478_s12, 3  ;;  %s2063_s30 = sadd.s32 512, %s4478_s12 }
 0x480   : >> { %s2687_s11 = sshll.u32 %s1957_s1, 2  ;;  %s4482_s21 = sshra.s32 %s2063_s30, 3 }
 0x481   : >> { %s4484_s27 = scalar_lea.vmem [#allocation4], %s2687_s11  ;;  %s2688_s22 = sshll.u32 %s4482_s21, 2 }
 0x482   : >> { %v5262_v15 = vld [vmem:[#allocation26_spill] sm:$0xff]  ;;  %v4493_v26 = vld [vmem:[%s4484_s27 + $0x10] sm:$0xff]   ;;  %v4496_v11 = vld [vmem:[%s4484_s27 + $0x18] sm:$0xff]   ;;  %s2202_s23 = sadd.s32 1024, %s4478_s12  ;;  %s4562_s24 = scalar_lea.vmem [#allocation4], %s2688_s22 }
 0x483   : >> { %v2026_v18 = vperm.slane %v5262_v15, 0  ;;  %v5264_v16 = vld [vmem:[#allocation27_spill] sm:$0xff]  ;;  %v4487_v23 = vld [vmem:[%s4484_s27] sm:$0xff]   ;;  %v4515_v25 = vld [vmem:[%s4484_s27 + $0x38] sm:$0xff]   ;;  %s4551_s26 = sshra.s32 %s2202_s23, 3  ;;  %v5276_v19 = vunpack.c.l.bf16 %v4493_v26  ;;  %v5278_v0 = vunpack.c.l.bf16 %v4496_v11  ;;  %s4942_s5 = scalar_lea.vmem [#allocation14], %s4478_s12 }
 0x484   : >> { %v5263_v17 = vld [vmem:[#allocation28_spill] sm:$0xff]  ;;  %v2133_v22 = vperm.slane %v5264_v16, 0  ;;  %v4490_v24 = vld [vmem:[%s4484_s27 + $0x8] sm:$0xff]   ;;  %v4499_v27 = vld [vmem:[%s4484_s27 + $0x20] sm:$0xff]   ;;  %v2890_v31 = vunpack.c.l.bf16 %v4487_v23  ;;  %v2891_v32 = vunpack.c.h.bf16 %v4487_v23  ;;  %s2689_s20 = sshll.u32 %s4551_s26, 2  ;;  %v5277_v23 = vunpack.c.h.bf16 %v4493_v26  ;;  %p1952_p12 = scmp.ge.s32.totalorder %s1955_s13, 2  }
 0x485   : >> { %v2272_v21 = vperm.slane %v5263_v17, 0  ;;  %2028 = vperm.xlu0 %3454, %v2026_v18   ;;  %v4505_v33 = vld [vmem:[%s4484_s27 + $0x28] sm:$0xff]   ;;  %v4508_v35 = vld [vmem:[%s4484_s27 + $0x30] sm:$0xff]   ;;  %v2894_v36 = vunpack.c.l.bf16 %v4490_v24  ;;  %v4518_v13 = vld [vmem:[%s4484_s27 + $0x40] sm:$0xff]   ;;  %s4647_s4 = scalar_lea.vmem [#allocation4], %s2689_s20  ;;  %v5275_v3 = vunpack.c.h.bf16 %v4490_v24  ;;  %v5280_v24 = vunpack.c.l.bf16 %v4499_v27 }
 0x486   : >> { %v4526_v28 = vld [vmem:[%s4484_s27 + $0x48] sm:$0xff]   ;;  %v4529_v29 = vld [vmem:[%s4484_s27 + $0x50] sm:$0xff]   ;;  %v4536_v47 = vld [vmem:[%s4484_s27 + $0x58] sm:$0xff]   ;;  %v5282_v26 = vunpack.c.l.bf16 %v4505_v33 }
 0x487   : >> { %2274 = vperm.xlu1 %3455, %v2272_v21   ;;  %v4539_v20 = vld [vmem:[%s4484_s27 + $0x60] sm:$0xff]   ;;  %v4546_v53 = vld [vmem:[%s4484_s27 + $0x68] sm:$0xff]   ;;  %v4549_v54 = vld [vmem:[%s4484_s27 + $0x70] sm:$0xff]  }
 0x488   : >> { %v4558_v34 = vld [vmem:[%s4484_s27 + $0x78] sm:$0xff]   ;;  %v4565_v60 = vld [vmem:[%s4562_s24] sm:$0xff]   ;;  %v4572_v1 = vld [vmem:[%s4562_s24 + $0x8] sm:$0xff]  }
 0x489   : >> { %5265 = vst [vmem:[#allocation29_spill] sm:$0xff] %v4558_v34  ;;  %v4575_v2 = vld [vmem:[%s4562_s24 + $0x10] sm:$0xff]   ;;  %v4582_v59 = vld [vmem:[%s4562_s24 + $0x18] sm:$0xff]   ;;  %v4585_v4 = vld [vmem:[%s4562_s24 + $0x20] sm:$0xff]   ;;  %v5292_v34 = vunpack.c.l.bf16 %v4565_v60 }
 0x48a   : >> { %v4593_v10 = vld [vmem:[%s4562_s24 + $0x28] sm:$0xff]   ;;  %v4596_v12 = vld [vmem:[%s4562_s24 + $0x30] sm:$0xff]   ;;  %v4603_v6 = vld [vmem:[%s4562_s24 + $0x38] sm:$0xff]  }
 0x48b   : >> { %v4606_v5 = vld [vmem:[%s4562_s24 + $0x40] sm:$0xff]   ;;  %v4613_v21 = vld [vmem:[%s4562_s24 + $0x48] sm:$0xff]   ;;  %v4616_v58 = vld [vmem:[%s4562_s24 + $0x50] sm:$0xff]  }
 0x48c   : >> { %v4623_v62 = vld [vmem:[%s4562_s24 + $0x58] sm:$0xff]   ;;  %v4626_v63 = vld [vmem:[%s4562_s24 + $0x60] sm:$0xff]   ;;  %v4633_v61 = vld [vmem:[%s4562_s24 + $0x68] sm:$0xff]  }
 0x48d   : >> { %2135 = vperm.xlu0 %3454, %v2133_v22   ;;  %5266 = vst [vmem:[#allocation30_spill] sm:$0xff] %v4633_v61  ;;  %v4636_v8 = vld [vmem:[%s4562_s24 + $0x70] sm:$0xff]   ;;  %v4643_v9 = vld [vmem:[%s4562_s24 + $0x78] sm:$0xff]   ;;  %v4650_v22 = vld [vmem:[%s4647_s4] sm:$0xff]  }
 0x48e   : >> { %5267 = vst [vmem:[#allocation31_spill] sm:$0xff] %v4636_v8  ;;  %v4657_v18 = vld [vmem:[%s4647_s4 + $0x8] sm:$0xff]   ;;  %v4660_v30 = vld [vmem:[%s4647_s4 + $0x10] sm:$0xff]   ;;  %v4667_v51 = vld [vmem:[%s4647_s4 + $0x18] sm:$0xff]   ;;  %v5316_v61 = vunpack.c.l.bf16 %v4650_v22 }
 0x48f   : >> { %5268 = vst [vmem:[#allocation32_spill] sm:$0xff] %v4643_v9  ;;  %v4670_v46 = vld [vmem:[%s4647_s4 + $0x20] sm:$0xff]   ;;  %v4679_v56 = vld [vmem:[%s4647_s4 + $0x28] sm:$0xff]   ;;  %v4682_v50 = vld [vmem:[%s4647_s4 + $0x30] sm:$0xff]  }
 0x490   : >> { %v4689_v52 = vld [vmem:[%s4647_s4 + $0x38] sm:$0xff]   ;;  %v4692_v44 = vld [vmem:[%s4647_s4 + $0x40] sm:$0xff]   ;;  %v4699_v49 = vld [vmem:[%s4647_s4 + $0x48] sm:$0xff]  }
 0x491   : >> { %v4702_v43 = vld [vmem:[%s4647_s4 + $0x50] sm:$0xff]   ;;  %v4709_v41 = vld [vmem:[%s4647_s4 + $0x58] sm:$0xff]   ;;  %v4712_v7 = vld [vmem:[%s4647_s4 + $0x60] sm:$0xff]  }
 0x492   : >> { %5269 = vst [vmem:[#allocation33_spill] sm:$0xff] %v4702_v43  ;;  %v4719_v48 = vld [vmem:[%s4647_s4 + $0x68] sm:$0xff]   ;;  %v4722_v39 = vld [vmem:[%s4647_s4 + $0x70] sm:$0xff]   ;;  %v4729_v37 = vld [vmem:[%s4647_s4 + $0x78] sm:$0xff]  }
 0x493   : >> { %5270 = vst [vmem:[#allocation34_spill] sm:$0xff] %v4709_v41 }
 0x494   : >> { %5271 = vst [vmem:[#allocation35_spill] sm:$0xff] %v4712_v7 }
 0x495   : >> { %5272 = vst [vmem:[#allocation36_spill] sm:$0xff] %v4719_v48  ;;  %v5293_v48 = vunpack.c.h.bf16 %v4565_v60 }
 0x496   : >> { %5273 = vst [vmem:[#allocation37_spill] sm:$0xff] %v4722_v39  ;;  %v5290_v39 = vunpack.c.l.bf16 %v4526_v28 }
 0x497   : >> { %5274 = vst [vmem:[#allocation38_spill] sm:$0xff] %v4729_v37  ;;  %v5288_v37 = vunpack.c.l.bf16 %v4518_v13 }
 0x4f7   : >> { %v4672_v55 = vpop.permute.xlu0 %2028 }
 0x4f8   : >> { %v2031_v38 = vmul.f32 %v2890_v31, %v4672_v55  ;;  %v2032_v14 = vmul.f32 %v2891_v32, %v4672_v55  ;;  %v2033_v42 = vmul.f32 %v2894_v36, %v4672_v55  ;;  %v2034_v57 = vmul.f32 %v5275_v3, %v4672_v55 }
 0x4f9   : >> { %v2035_v31 = vmul.f32 %v5276_v19, %v4672_v55  ;;  %v2036_v32 = vmul.f32 %v5277_v23, %v4672_v55  ;;  %v2037_v40 = vmul.f32 %v5278_v0, %v4672_v55  ;;  %v5279_v36 = vunpack.c.h.bf16 %v4496_v11 }
 0x4fa   : >> { %v2039_v3 = vmul.f32 %v5280_v24, %v4672_v55  ;;  %v5281_v19 = vunpack.c.h.bf16 %v4499_v27  ;;  %v4776_v23 = vmul.f32 %v5282_v26, %v4672_v55  ;;  %v5283_v0 = vunpack.c.h.bf16 %v4505_v33 }
 0x4fb   : >> { %v2038_v15 = vmul.f32 %v5279_v36, %v4672_v55  ;;  %v5284_v11 = vunpack.c.l.bf16 %v4508_v35  ;;  %v5285_v24 = vunpack.c.h.bf16 %v4508_v35  ;;  %v5287_v33 = vunpack.c.h.bf16 %v4515_v25 }
 0x4fc   : >> { %v2040_v16 = vmul.f32 %v5281_v19, %v4672_v55  ;;  %v4781_v17 = vmul.f32 %v5283_v0, %v4672_v55  ;;  %v5286_v19 = vunpack.c.l.bf16 %v4515_v25  ;;  %v5289_v35 = vunpack.c.h.bf16 %v4518_v13 }
 0x4fd   : >> { %v4786_v36 = vmul.f32 %v5284_v11, %v4672_v55  ;;  %v4791_v27 = vmul.f32 %v5285_v24, %v4672_v55  ;;  %v4801_v0 = vmul.f32 %v5287_v33, %v4672_v55  ;;  %v4806_v11 = vmul.f32 %v5288_v37, %v4672_v55 }
 0x4fe   : >> { %v4796_v26 = vmul.f32 %v5286_v19, %v4672_v55  ;;  %v4811_v24 = vmul.f32 %v5289_v35, %v4672_v55  ;;  %v4816_v19 = vmul.f32 %v5290_v39, %v4672_v55  ;;  %v5291_v25 = vunpack.c.h.bf16 %v4526_v28 }
 0x4ff   : >> { %v4759_v45 = vpop.permute.xlu0 %2135  ;;  %v5294_v35 = vunpack.c.l.bf16 %v4529_v29  ;;  %v5295_v39 = vunpack.c.h.bf16 %v4529_v29  ;;  %v5297_v28 = vunpack.c.l.bf16 %v4536_v47 }
 0x500   : >> { %v4821_v33 = vmul.f32 %v5291_v25, %v4672_v55  ;;  %v2138_v37 = vmul.f32 %v5292_v34, %v4759_v45  ;;  %v2139_v13 = vmul.f32 %v5293_v48, %v4759_v45  ;;  %v5299_v34 = vunpack.c.l.bf16 %v4572_v1 }
 0x501   : >> { %v4832_v9 = vmul.f32 %v5294_v35, %v4672_v55  ;;  %v4837_v7 = vmul.f32 %v5295_v39, %v4672_v55  ;;  %v4842_v25 = vmul.f32 %v5297_v28, %v4672_v55  ;;  %v5300_v48 = vunpack.c.h.bf16 %v4536_v47 }
 0x502   : >> { %v2140_v60 = vmul.f32 %v5299_v34, %v4759_v45  ;;  %v5302_v35 = vunpack.c.l.bf16 %v4539_v20  ;;  %v5304_v39 = vunpack.c.h.bf16 %v4539_v20  ;;  %v5306_v28 = vunpack.c.h.bf16 %v4572_v1  ;;  %v4865_v34 = vpop.permute.xlu1 %2274 }
 0x503   : >> { %5296 = vst [vmem:[#allocation39_spill] sm:$0xff] %v4837_v7  ;;  %v4850_v8 = vmul.f32 %v5300_v48, %v4672_v55  ;;  %v5307_v47 = vunpack.c.l.bf16 %v4546_v53  ;;  %v5311_v20 = vunpack.c.l.bf16 %v4549_v54  ;;  %v5313_v1 = vunpack.c.l.bf16 %v4575_v2 }
 0x504   : >> { %5298 = vst [vmem:[#allocation40_spill] sm:$0xff] %v4842_v25  ;;  %v4855_v29 = vmul.f32 %v5302_v35, %v4672_v55  ;;  %v4860_v41 = vmul.f32 %v5304_v39, %v4672_v55  ;;  %v2141_v25 = vmul.f32 %v5306_v28, %v4759_v45  ;;  %v5309_v35 = vunpack.c.h.bf16 %v4546_v53 }
 0x505   : >> { %5301 = vst [vmem:[#allocation41_spill] sm:$0xff] %v4850_v8  ;;  %v4870_v48 = vmul.f32 %v5307_v47, %v4672_v55  ;;  %v4880_v39 = vmul.f32 %v5311_v20, %v4672_v55  ;;  %v2142_v28 = vmul.f32 %v5313_v1, %v4759_v45  ;;  %v5315_v47 = vunpack.c.l.bf16 %v4582_v59 }
 0x506   : >> { %5303 = vst [vmem:[#allocation42_spill] sm:$0xff] %v4855_v29  ;;  %v4875_v29 = vmul.f32 %v5309_v35, %v4672_v55  ;;  %v2170_v53 = vadd.f32 %v2138_v37, %v2031_v38  ;;  %v2171_v35 = vadd.f32 %v2139_v13, %v2032_v14  ;;  %v2277_v20 = vmul.f32 %v5316_v61, %v4865_v34 }
 0x507   : >> { %5305 = vst [vmem:[#allocation43_spill] sm:$0xff] %v4860_v41  ;;  %v5314_v41 = vunpack.c.h.bf16 %v4575_v2  ;;  %v5318_v1 = vunpack.c.l.bf16 %v4657_v18  ;;  %v5321_v38 = vunpack.c.h.bf16 %v4582_v59  ;;  %v5322_v61 = vunpack.c.h.bf16 %v4657_v18 }
 0x508   : >> { %5308 = vst [vmem:[#allocation44_spill] sm:$0xff] %v4870_v48  ;;  %v2144_v48 = vmul.f32 %v5315_v47, %v4759_v45  ;;  %v5325_v47 = vunpack.c.l.bf16 %v4660_v30 }
 0x509   : >> { %5310 = vst [vmem:[#allocation45_spill] sm:$0xff] %v4875_v29  ;;  %v2143_v8 = vmul.f32 %v5314_v41, %v4759_v45  ;;  %v2172_v29 = vadd.f32 %v2140_v60, %v2033_v42  ;;  %v2279_v2 = vmul.f32 %v5318_v1, %v4865_v34  ;;  %v5319_v41 = vunpack.c.h.bf16 %v4549_v54 }
 0x50a   : >> { %5312 = vst [vmem:[#allocation46_spill] sm:$0xff] %v4880_v39  ;;  %v5317_v39 = vunpack.c.h.bf16 %v4650_v22  ;;  %v2145_v14 = vmul.f32 %v5321_v38, %v4759_v45  ;;  %v2173_v42 = vadd.f32 %v2141_v25, %v2034_v57  ;;  %v2280_v37 = vmul.f32 %v5322_v61, %v4865_v34 }
 0x50b   : >> { %v4903_v43 = vmul.f32 %v5319_v41, %v4672_v55  ;;  %v5323_v22 = vunpack.c.l.bf16 %v4585_v4  ;;  %v5324_v60 = vunpack.c.h.bf16 %v4585_v4  ;;  %v2174_v54 = vadd.f32 %v2142_v28, %v2035_v31 }
 0x50c   : >> { %v2278_v7 = vmul.f32 %v5317_v39, %v4865_v34  ;;  %v2281_v1 = vmul.f32 %v5325_v47, %v4865_v34  ;;  %v5326_v57 = vunpack.c.l.bf16 %v4593_v10  ;;  %v2175_v18 = vadd.f32 %v2143_v8, %v2036_v32 }
 0x50d   : >> { %5320 = vst [vmem:[#allocation47_spill] sm:$0xff] %v4903_v43  ;;  %v2146_v13 = vmul.f32 %v5323_v22, %v4759_v45  ;;  %v2147_v39 = vmul.f32 %v5324_v60, %v4759_v45  ;;  %v2176_v25 = vadd.f32 %v2144_v48, %v2037_v40  ;;  %v5327_v41 = vunpack.c.h.bf16 %v4660_v30 }
 0x50e   : >> { %v2148_v59 = vmul.f32 %v5326_v57, %v4759_v45  ;;  %v5328_v4 = vunpack.c.l.bf16 %v4667_v51  ;;  %v2309_v31 = vadd.f32 %v2277_v20, %v2170_v53  ;;  %v2310_v28 = vadd.f32 %v2278_v7, %v2171_v35 }
 0x50f   : >> { %v2282_v38 = vmul.f32 %v5327_v41, %v4865_v34  ;;  %v2311_v22 = vadd.f32 %v2279_v2, %v2172_v29  ;;  %v5329_v60 = vunpack.c.h.bf16 %v4593_v10  ;;  %v2177_v43 = vadd.f32 %v2145_v14, %v2038_v15 }
 0x510   : >> { %v2283_v61 = vmul.f32 %v5328_v4, %v4865_v34  ;;  %v5330_v8 = vunpack.c.h.bf16 %v4667_v51  ;;  %v2312_v32 = vadd.f32 %v2280_v37, %v2173_v42  ;;  %v5331_v30 = vunpack.c.l.bf16 %v4596_v12  ;;  %2342 = vst [vmem:[%s4942_s5] sm:$0xff] %v2309_v31 }
 0x511   : >> { %v2149_v47 = vmul.f32 %v5329_v60, %v4759_v45  ;;  %v2178_v57 = vadd.f32 %v2146_v13, %v2039_v3  ;;  %v5332_v53 = vunpack.c.l.bf16 %v4670_v46  ;;  %v2313_v29 = vadd.f32 %v2281_v1, %v2174_v54  ;;  %2343 = vst [vmem:[%s4942_s5 + $0x8] sm:$0xff] %v2310_v28 }
 0x512   : >> { %v2284_v40 = vmul.f32 %v5330_v8, %v4865_v34  ;;  %v2150_v48 = vmul.f32 %v5331_v30, %v4759_v45  ;;  %v5333_v15 = vunpack.c.h.bf16 %v4596_v12  ;;  %v2179_v10 = vadd.f32 %v2147_v39, %v2040_v16  ;;  %2344 = vst [vmem:[%s4942_s5 + $0x10] sm:$0xff] %v2311_v22 }
 0x513   : >> { %v2285_v7 = vmul.f32 %v5332_v53, %v4865_v34  ;;  %v5334_v3 = vunpack.c.h.bf16 %v4670_v46  ;;  %v2314_v20 = vadd.f32 %v2282_v38, %v2175_v18  ;;  %v5335_v2 = vunpack.c.l.bf16 %v4603_v6  ;;  %2345 = vst [vmem:[%s4942_s5 + $0x18] sm:$0xff] %v2312_v32 }
 0x514   : >> { %v2151_v51 = vmul.f32 %v5333_v15, %v4759_v45  ;;  %v2180_v42 = vadd.f32 %v2148_v59, %v4776_v23  ;;  %v5336_v37 = vunpack.c.l.bf16 %v4679_v56  ;;  %v2315_v12 = vadd.f32 %v2283_v61, %v2176_v25  ;;  %2346 = vst [vmem:[%s4942_s5 + $0x20] sm:$0xff] %v2313_v29 }
 0x515   : >> { %v2286_v35 = vmul.f32 %v5334_v3, %v4865_v34  ;;  %v2152_v14 = vmul.f32 %v5335_v2, %v4759_v45  ;;  %v5337_v16 = vunpack.c.h.bf16 %v4603_v6  ;;  %v2181_v39 = vadd.f32 %v2149_v47, %v4781_v17  ;;  %2347 = vst [vmem:[%s4942_s5 + $0x28] sm:$0xff] %v2314_v20 }
 0x516   : >> { %v2287_v13 = vmul.f32 %v5336_v37, %v4865_v34  ;;  %v5338_v54 = vunpack.c.h.bf16 %v4679_v56  ;;  %v2316_v18 = vadd.f32 %v2284_v40, %v2177_v43  ;;  %v5339_v23 = vunpack.c.l.bf16 %v4606_v5  ;;  %2348 = vst [vmem:[%s4942_s5 + $0x30] sm:$0xff] %v2315_v12 }
 0x517   : >> { %v2153_v46 = vmul.f32 %v5337_v16, %v4759_v45  ;;  %v2182_v25 = vadd.f32 %v2150_v48, %v4786_v36  ;;  %v5340_v41 = vunpack.c.l.bf16 %v4682_v50  ;;  %v2317_v38 = vadd.f32 %v2285_v7, %v2178_v57 }
 0x518   : >> { %v2288_v1 = vmul.f32 %v5338_v54, %v4865_v34  ;;  %v2154_v59 = vmul.f32 %v5339_v23, %v4759_v45  ;;  %v5341_v17 = vunpack.c.h.bf16 %v4606_v5  ;;  %v2183_v43 = vadd.f32 %v2151_v51, %v4791_v27  ;;  %2349 = vst [vmem:[%s4942_s5 + $0x38] sm:$0xff] %v2316_v18 }
 0x519   : >> { %v2289_v6 = vmul.f32 %v5340_v41, %v4865_v34  ;;  %v5342_v4 = vunpack.c.h.bf16 %v4682_v50  ;;  %v2318_v31 = vadd.f32 %v2286_v35, %v2179_v10  ;;  %v5343_v36 = vunpack.c.l.bf16 %v4613_v21  ;;  %2350 = vst [vmem:[%s4942_s5 + $0x40] sm:$0xff] %v2317_v38  ;;  %v5363_v38 = vld [vmem:[#allocation40_spill] sm:$0xff] }
 0x51a   : >> { %v2155_v56 = vmul.f32 %v5341_v17, %v4759_v45  ;;  %v2184_v22 = vadd.f32 %v2152_v14, %v4796_v26  ;;  %v5344_v60 = vunpack.c.l.bf16 %v4689_v52  ;;  %v2319_v47 = vadd.f32 %v2287_v13, %v2180_v42 }
 0x51b   : >> { %v2290_v61 = vmul.f32 %v5342_v4, %v4865_v34  ;;  %v2156_v28 = vmul.f32 %v5343_v36, %v4759_v45  ;;  %v5345_v50 = vunpack.c.h.bf16 %v4613_v21  ;;  %v2185_v8 = vadd.f32 %v2153_v46, %v4801_v0  ;;  %2351 = vst [vmem:[%s4942_s5 + $0x48] sm:$0xff] %v2318_v31  ;;  %v5356_v46 = vld [vmem:[#allocation33_spill] sm:$0xff] }
 0x51c   : >> { %v2291_v5 = vmul.f32 %v5344_v60, %v4865_v34  ;;  %v5346_v40 = vunpack.c.h.bf16 %v4689_v52  ;;  %v2320_v30 = vadd.f32 %v2288_v1, %v2181_v39  ;;  %v5347_v26 = vunpack.c.l.bf16 %v4616_v58  ;;  %2352 = vst [vmem:[%s4942_s5 + $0x50] sm:$0xff] %v2319_v47  ;;  %v5359_v1 = vld [vmem:[#allocation39_spill] sm:$0xff]  ;;  %v5367_v36 = vld [vmem:[#allocation41_spill] sm:$0xff] }
 0x51d   : >> { %v2157_v27 = vmul.f32 %v5345_v50, %v4759_v45  ;;  %v2186_v57 = vadd.f32 %v2154_v59, %v4806_v11  ;;  %v5348_v53 = vunpack.c.l.bf16 %v4692_v44  ;;  %v2321_v7 = vadd.f32 %v2289_v6, %v2182_v25  ;;  %v5369_v47 = vld [vmem:[#allocation31_spill] sm:$0xff] }
 0x51e   : >> { %v2292_v32 = vmul.f32 %v5346_v40, %v4865_v34  ;;  %v2158_v48 = vmul.f32 %v5347_v26, %v4759_v45  ;;  %v5349_v52 = vunpack.c.h.bf16 %v4616_v58  ;;  %v2187_v29 = vadd.f32 %v2155_v56, %v4811_v24  ;;  %2353 = vst [vmem:[%s4942_s5 + $0x58] sm:$0xff] %v2320_v30  ;;  %v5364_v56 = vld [vmem:[#allocation34_spill] sm:$0xff] }
 0x51f   : >> { %v2293_v21 = vmul.f32 %v5348_v53, %v4865_v34  ;;  %v5350_v15 = vunpack.c.h.bf16 %v4692_v44  ;;  %v2322_v10 = vadd.f32 %v2290_v61, %v2183_v43  ;;  %v5351_v11 = vunpack.c.l.bf16 %v4623_v62  ;;  %2354 = vst [vmem:[%s4942_s5 + $0x60] sm:$0xff] %v2321_v7 }
 0x520   : >> { %v2159_v0 = vmul.f32 %v5349_v52, %v4759_v45  ;;  %v2188_v35 = vadd.f32 %v2156_v28, %v4816_v19  ;;  %v5352_v20 = vunpack.c.l.bf16 %v4699_v49  ;;  %v2323_v2 = vadd.f32 %v2291_v5, %v2184_v22 }
 0x521   : >> { %v2294_v51 = vmul.f32 %v5350_v15, %v4865_v34  ;;  %v2160_v3 = vmul.f32 %v5351_v11, %v4759_v45  ;;  %v5353_v44 = vunpack.c.h.bf16 %v4623_v62  ;;  %v2189_v14 = vadd.f32 %v2157_v27, %v4821_v33  ;;  %2355 = vst [vmem:[%s4942_s5 + $0x68] sm:$0xff] %v2322_v10  ;;  %v5377_v15 = vld [vmem:[#allocation32_spill] sm:$0xff] }
 0x522   : >> { %v2295_v58 = vmul.f32 %v5352_v20, %v4865_v34  ;;  %v5354_v42 = vunpack.c.h.bf16 %v4699_v49  ;;  %v2324_v13 = vadd.f32 %v2292_v32, %v2185_v8  ;;  %v5355_v19 = vunpack.c.l.bf16 %v4626_v63  ;;  %2356 = vst [vmem:[%s4942_s5 + $0x70] sm:$0xff] %v2323_v2  ;;  %v5371_v8 = vld [vmem:[#allocation42_spill] sm:$0xff]  ;;  %v5372_v32 = vld [vmem:[#allocation35_spill] sm:$0xff]  ;;  %v5379_v11 = vld [vmem:[#allocation44_spill] sm:$0xff] }
 0x523   : >> { %v2161_v24 = vmul.f32 %v5353_v44, %v4759_v45  ;;  %v2190_v16 = vadd.f32 %v2158_v48, %v4832_v9  ;;  %v5357_v39 = vunpack.c.l.bf16 %v5356_v46  ;;  %v2325_v54 = vadd.f32 %v2293_v21, %v2186_v57  ;;  %v5361_v9 = vld [vmem:[#allocation30_spill] sm:$0xff]  ;;  %v5375_v21 = vld [vmem:[#allocation43_spill] sm:$0xff] }
 0x524   : >> { %v2296_v37 = vmul.f32 %v5354_v42, %v4865_v34  ;;  %v2162_v12 = vmul.f32 %v5355_v19, %v4759_v45  ;;  %v5358_v49 = vunpack.c.h.bf16 %v4626_v63  ;;  %v2191_v18 = vadd.f32 %v2159_v0, %v5359_v1  ;;  %2357 = vst [vmem:[%s4942_s5 + $0x78] sm:$0xff] %v2324_v13 }
 0x525   : >> { %v2297_v62 = vmul.f32 %v5357_v39, %v4865_v34  ;;  %v5360_v23 = vunpack.c.h.bf16 %v5356_v46  ;;  %v2326_v25 = vadd.f32 %v2294_v51, %v2187_v29  ;;  %v5362_v41 = vunpack.c.l.bf16 %v5361_v9  ;;  %2358 = vst [vmem:[%s4942_s5 + $0x80] sm:$0xff] %v2325_v54  ;;  %v5387_v39 = vld [vmem:[#allocation46_spill] sm:$0xff]  ;;  %v5388_v54 = vld [vmem:[#allocation37_spill] sm:$0xff] }
 0x526   : >> { %v2163_v33 = vmul.f32 %v5358_v49, %v4759_v45  ;;  %v2192_v17 = vadd.f32 %v2160_v3, %v5363_v38  ;;  %v5365_v43 = vunpack.c.l.bf16 %v5364_v56  ;;  %v2327_v4 = vadd.f32 %v2295_v58, %v2188_v35  ;;  %v5380_v35 = vld [vmem:[#allocation36_spill] sm:$0xff]  ;;  %v5393_v38 = vld [vmem:[#allocation38_spill] sm:$0xff] }
 0x527   : >> { %v2298_v59 = vmul.f32 %v5360_v23, %v4865_v34  ;;  %v2164_v6 = vmul.f32 %v5362_v41, %v4759_v45  ;;  %v5366_v61 = vunpack.c.h.bf16 %v5361_v9  ;;  %v2193_v28 = vadd.f32 %v2161_v24, %v5367_v36  ;;  %2359 = vst [vmem:[%s4942_s5 + $0x88] sm:$0xff] %v2326_v25  ;;  %v5391_v23 = vld [vmem:[#allocation47_spill] sm:$0xff] }
 0x528   : >> { %v2299_v63 = vmul.f32 %v5365_v43, %v4865_v34  ;;  %v5368_v22 = vunpack.c.h.bf16 %v5364_v56  ;;  %v2328_v5 = vadd.f32 %v2296_v37, %v2189_v14  ;;  %v5370_v50 = vunpack.c.l.bf16 %v5369_v47  ;;  %2360 = vst [vmem:[%s4942_s5 + $0x90] sm:$0xff] %v2327_v4  ;;  %v5383_v14 = vld [vmem:[#allocation45_spill] sm:$0xff] }
 0x529   : >> { %v2165_v31 = vmul.f32 %v5366_v61, %v4759_v45  ;;  %v2194_v40 = vadd.f32 %v2162_v12, %v5371_v8  ;;  %v5373_v30 = vunpack.c.l.bf16 %v5372_v32  ;;  %v2329_v48 = vadd.f32 %v2297_v62, %v2190_v16  ;;  %v5385_v12 = vld [vmem:[#allocation29_spill] sm:$0xff] }
 0x52a   : >> { %v2300_v60 = vmul.f32 %v5368_v22, %v4865_v34  ;;  %v2166_v27 = vmul.f32 %v5370_v50, %v4759_v45  ;;  %v5374_v57 = vunpack.c.h.bf16 %v5369_v47  ;;  %v2195_v7 = vadd.f32 %v2163_v33, %v5375_v21  ;;  %2361 = vst [vmem:[%s4942_s5 + $0x98] sm:$0xff] %v2328_v5 }
 0x52b   : >> { %v2301_v26 = vmul.f32 %v5373_v30, %v4865_v34  ;;  %v5376_v52 = vunpack.c.h.bf16 %v5372_v32  ;;  %v2330_v29 = vadd.f32 %v2298_v59, %v2191_v18  ;;  %v5378_v51 = vunpack.c.l.bf16 %v5377_v15  ;;  %2362 = vst [vmem:[%s4942_s5 + $0xa0] sm:$0xff] %v2329_v48 }
 0x52c   : >> { %v2167_v53 = vmul.f32 %v5374_v57, %v4759_v45  ;;  %v2196_v3 = vadd.f32 %v2164_v6, %v5379_v11  ;;  %v5381_v20 = vunpack.c.l.bf16 %v5380_v35  ;;  %v2331_v2 = vadd.f32 %v2299_v63, %v2192_v17 }
 0x52d   : >> { %v2302_v0 = vmul.f32 %v5376_v52, %v4865_v34  ;;  %v2168_v10 = vmul.f32 %v5378_v51, %v4759_v45  ;;  %v5382_v44 = vunpack.c.h.bf16 %v5377_v15  ;;  %v2197_v42 = vadd.f32 %v2165_v31, %v5383_v14  ;;  %2363 = vst [vmem:[%s4942_s5 + $0xa8] sm:$0xff] %v2330_v29 }
 0x52e   : >> { %v2303_v58 = vmul.f32 %v5381_v20, %v4865_v34  ;;  %v5384_v37 = vunpack.c.h.bf16 %v5380_v35  ;;  %v2332_v19 = vadd.f32 %v2300_v60, %v2193_v28  ;;  %v5386_v16 = vunpack.c.l.bf16 %v5385_v12  ;;  %2364 = vst [vmem:[%s4942_s5 + $0xb0] sm:$0xff] %v2331_v2 }
 0x52f   : >> { %v2169_v24 = vmul.f32 %v5382_v44, %v4759_v45  ;;  %v2198_v62 = vadd.f32 %v2166_v27, %v5387_v39  ;;  %v5389_v49 = vunpack.c.l.bf16 %v5388_v54  ;;  %v2333_v33 = vadd.f32 %v2301_v26, %v2194_v40 }
 0x530   : >> { %v2304_v13 = vmul.f32 %v5384_v37, %v4865_v34  ;;  %v2061_v46 = vmul.f32 %v5386_v16, %v4672_v55  ;;  %v5390_v1 = vunpack.c.h.bf16 %v5385_v12  ;;  %v2199_v59 = vadd.f32 %v2167_v53, %v5391_v23  ;;  %2365 = vst [vmem:[%s4942_s5 + $0xb8] sm:$0xff] %v2332_v19 }
 0x531   : >> { %v2305_v45 = vmul.f32 %v5389_v49, %v4865_v34  ;;  %v5392_v25 = vunpack.c.h.bf16 %v5388_v54  ;;  %v2334_v41 = vadd.f32 %v2302_v0, %v2195_v7  ;;  %v5394_v17 = vunpack.c.l.bf16 %v5393_v38  ;;  %2366 = vst [vmem:[%s4942_s5 + $0xc0] sm:$0xff] %v2333_v33 }
 0x532   : >> { %v2062_v18 = vmul.f32 %v5390_v1, %v4672_v55  ;;  %v2200_v6 = vadd.f32 %v2168_v10, %v2061_v46  ;;  %v2335_v43 = vadd.f32 %v2303_v58, %v2196_v3  ;;  %v5395_v63 = vunpack.c.h.bf16 %v5393_v38 }
 0x533   : >> { %v2306_v9 = vmul.f32 %v5392_v25, %v4865_v34  ;;  %v2307_v56 = vmul.f32 %v5394_v17, %v4865_v34  ;;  %v2336_v61 = vadd.f32 %v2304_v13, %v2197_v42  ;;  %v2337_v31 = vadd.f32 %v2305_v45, %v2198_v62  ;;  %2367 = vst [vmem:[%s4942_s5 + $0xc8] sm:$0xff] %v2334_v41 }
 0x534   : >> { %v2201_v55 = vadd.f32 %v2169_v24, %v2062_v18  ;;  %v2308_v4 = vmul.f32 %v5395_v63, %v4865_v34  ;;  %2368 = vst [vmem:[%s4942_s5 + $0xd0] sm:$0xff] %v2335_v43 }
 0x535   : >> { %v2338_v36 = vadd.f32 %v2306_v9, %v2199_v59  ;;  %v2339_v28 = vadd.f32 %v2307_v56, %v2200_v6  ;;  %2369 = vst [vmem:[%s4942_s5 + $0xd8] sm:$0xff] %v2336_v61  ;;  %1954 = sbr.rel (!%p1952_p12) target bundleno = 1150 (0x47e), region = 151 }
 0x536   : >> { %v2340_v22 = vadd.f32 %v2308_v4, %v2201_v55  ;;  %2370 = vst [vmem:[%s4942_s5 + $0xe0] sm:$0xff] %v2337_v31 }
 0x537   : >> { %2371 = vst [vmem:[%s4942_s5 + $0xe8] sm:$0xff] %v2338_v36 }
 0x538   : >> { %2372 = vst [vmem:[%s4942_s5 + $0xf0] sm:$0xff] %v2339_v28 }
 0x539   : >> { %2373 = vst [vmem:[%s4942_s5 + $0xf8] sm:$0xff] %v2340_v22 }
 0x53a PF: > { %p3254_p13 = scmp.eq.s32.totalorder %s3883_s7, 11  ;;  %s5396_s8 = sld [smem:[#allocation56_spill]] }
 0x53b   : > { %s3731_s3 = smov [#allocation14]   ;;  %s3732_s1 = smov 128  }
 0x53c   : > { %s2379_s12 = sshll.u32 %s3731_s3, 4  ;;  %s3733_s11 = smov 8   ;;  %s2380_s12 = int_to_ptr.vmem [resolvable:$true] %s2379_s12 }
 0x540   : > { %s2381_s0 = sshll.u32 %s5396_s8, 4  ;;  %s2382_s0 = int_to_ptr.hbm [resolvable:$true] %s2381_s0 }
 0x541   : > { %3232 = dma.vmem_to_hbm [thread:$0]  (%p3254_p13), %s2380_s12, 8192, %s2382_s0, [#allocation8], %s3732_s1, %s3732_s1, %s3733_s11  }
 0x542   : > { %3662 = dma.done.wait (%p3254_p13), [#allocation8], 8192  }
 0x543   : > { %3664 = vsyncadd (%p3254_p13), [#allocation8], 4294959104 }
 0x544 PF: > { %s24_s17 = sadd.s32 1, %s3715_s17   ;;  %s5398_s27 = sld [smem:[#allocation20_spill]] }
 0x545   : > { %p5136_p0 = scmp.ge.s32.totalorder %s24_s17, 14   ;;  %s5399_s12 = sld [smem:[#allocation24_spill]] }
 0x546   : > { %s5400_s15 = sld [smem:[#allocation25_spill]]  ;;  %s5402_s28 = smov %s3675_s29 }
 0x547   : > { %s5403_s29 = smov %s3952_s2  ;;  %s5404_s30 = smov %s3683_s9 }
 0x548   : > { %s5405_s9 = smov %s3687_s10  ;;  %s5406_s10 = smov %s3957_s25 }
 0x549   : > { %s5407_s11 = smov %s3703_s14  ;;  %s5408_s13 = smov %s3711_s16 }
 0x54a   : > { %s5409_s14 = smov %s5412_s18  ;;  %s5410_s16 = smov %s5418_s6 }
 0x54b   :  { %23 = sbr.rel (!%p5136_p0) target bundleno = 21 (0x15), region = 162 }
 0x550   :  { %2398 = vsyncpa [#allocation7], 1 }
 0x551   :  { %2400 = vsyncpa [#allocation7 + $0x1], 1 }
 0x552   :  { %2401 = vsyncpa [#allocation11], 1 }
 0x553   :  { %2403 = vsyncpa [#allocation11 + $0x1], 1 }
 0x554   :  { %2404 = vsyncpa [#allocation8], 1 }
 0x555   :  { %2406 = vsyncpa [#allocation8 + $0x1], 1 }
 0x556   :  { %2407 = vsyncpa [#allocation9], 1 }
 0x557   :  { %2409 = vsyncpa [#allocation9 + $0x1], 1 }

</bundles_post_ra>
